<compile_context>
chip_gen: v7x
topology: tpu7x:2x2x1
jax: 0.10.0
libtpu: 0.0.40
codegen_flags: <defaults>
</compile_context>

<pallas_src>
import jax
import jax.numpy as jnp
from jax.experimental import pallas as pl
from jax.experimental.pallas import tpu as pltpu


def _lstm_kernel(x2d_ref, x2dt_ref, h0l_ref, h0c_ref, c0l_ref, c0c_ref,
                 wihl_ref, wihc_ref, whhl_ref, whhc_ref, bl_ref, bc_ref,
                 out_ref, cn_ref):
    """Fused single-layer LSTM forward (batch == 1 specialization).

    x2d_ref  : (T*B, D)   flattened input sequence (flatten done in wrapper)
    x2dt_ref : (D, T*B)   its transpose (for the column-layout projection)
    h0l/c0l  : (B, H)     initial hidden/cell state, lane ("row") layout
    h0c/c0c  : (H, B)     initial hidden/cell state, sublane ("column") layout
    wihl     : (D, 4H)    input->gates weights, gate blocks [i|f|g|o] on lanes
    wihc     : (4H, D)    same weights, PyTorch orientation
    whhl     : (H, 4H)    hidden->gates weights, lane-gate layout
    whhc     : (4H, H)    same weights, PyTorch orientation
    bl / bc  : (1, 4H) / (4H, 1)  combined bias (b_ih + b_hh), both layouts
    out_ref  : (T*B, H)   per-step hidden outputs (single store at the end)
    cn_ref   : (B, H)     final cell state
    """
    TB, _D = x2d_ref.shape
    H, H4 = whhl_ref.shape
    B = h0l_ref.shape[0]
    T = TB // B
    f32 = jnp.float32

    # ---- Hoisted input projection + bias (parallel, off the serial chain) --
    # Computed once in each layout with a single MXU matmul each.
    xproj_lane = (jnp.dot(x2d_ref[...].astype(f32), wihl_ref[...].astype(f32),
                          preferred_element_type=f32)
                  + bl_ref[...].astype(f32))              # (T*B, 4H)
    xproj_col = (jnp.dot(wihc_ref[...].astype(f32), x2dt_ref[...].astype(f32),
                         preferred_element_type=f32)
                 + bc_ref[...].astype(f32))               # (4H, T*B)

    # Hoisted, vreg-resident recurrent weights (both orientations).
    whh_lane = whhl_ref[...].astype(f32)                  # (H, 4H)
    whh_col = whhc_ref[...].astype(f32)                   # (4H, H)

    h_lane = h0l_ref[...].astype(f32)                     # (1, H)  lanes
    h_col = h0c_ref[...].astype(f32)                      # (H, 1)  sublanes
    c_lane = c0l_ref[...].astype(f32)
    c_col = c0c_ref[...].astype(f32)

    # ---- Serial recurrence, fully unrolled (T is a static python int) ------
    # No MXU and no layout-changing op inside the loop: each step runs the
    # same math in two fixed layouts; each layout's matvec broadcasts the
    # OTHER layout's previous h over the resident W_hh and reduces over H.
    out_rows = []
    for t in range(T):
        # Path A: lane-oriented gate row (1, 4H); consumes previous h_col.
        ga = (xproj_lane[t:t + 1, :]
              + jnp.sum(jnp.broadcast_to(h_col, (H, H4)) * whh_lane,
                        axis=0, keepdims=True))           # (1, 4H)
        sa = jax.nn.sigmoid(ga)                           # full-width EUP
        ta = jnp.tanh(ga)                                 # full-width EUP
        c_lane = sa[:, H:2 * H] * c_lane + sa[:, 0:H] * ta[:, 2 * H:3 * H]
        h_lane_new = sa[:, 3 * H:4 * H] * jnp.tanh(c_lane)

        # Path B: sublane-oriented gate column (4H, 1); consumes previous
        # h_lane.  Gate blocks here are vreg-aligned sublane slices (free).
        gb = (xproj_col[:, t:t + 1]
              + jnp.sum(jnp.broadcast_to(h_lane, (H4, H)) * whh_col,
                        axis=1, keepdims=True))           # (4H, 1)
        sb = jax.nn.sigmoid(gb)
        tb = jnp.tanh(gb)
        c_col = sb[H:2 * H, :] * c_col + sb[0:H, :] * tb[2 * H:3 * H, :]
        h_col = sb[3 * H:4 * H, :] * jnp.tanh(c_col)

        h_lane = h_lane_new
        out_rows.append(h_lane)

    # ---- Single-shot stores (no per-step masked stores in the loop) --------
    out_ref[...] = jnp.concatenate(out_rows, axis=0).astype(out_ref.dtype)
    cn_ref[...] = c_lane.astype(cn_ref.dtype)


@jax.jit
def lstm_forward(x, h0, c0, w_ih, w_hh, b_ih, b_hh):
    """Equivalent of lstm_for_demonstration.forward(inputs, hidden).

    Returns (out, (h_n, c_n)) with PyTorch nn.LSTM semantics.
    """
    T, B, D = x.shape
    H = w_hh.shape[1]
    H4 = 4 * H
    assert w_ih.shape == (H4, D) and w_hh.shape == (H4, H)
    # TODO(synk): the VPU broadcast/reduce recurrence assumes batch == 1 (the
    # demo configuration); for B > 1 switch the recurrent matvec back to an
    # MXU (B,H)x(H,4H) matmul and add a batch-tiled "parallel" grid axis.
    assert B == 1

    f32 = jnp.float32
    # All reshapes/transposes done here (free XLA metadata), not in-kernel.
    x2d = x.reshape(T * B, D)
    x2dt = x2d.T                        # (D, T*B)
    h0_lane = h0.reshape(B, H)
    c0_lane = c0.reshape(B, H)
    h0_col = h0_lane.T                  # (H, B)
    c0_col = c0_lane.T
    # Fused gate layout: PyTorch gate order i(0:H), f(H:2H), g(2H:3H), o(3H:4H).
    wih_lane = w_ih.T                   # (D, 4H)
    wih_col = w_ih                      # (4H, D)
    whh_lane = w_hh.T                   # (H, 4H)
    whh_col = w_hh                      # (4H, H)
    b = (b_ih + b_hh).astype(f32)
    b_lane = b.reshape(1, H4)
    b_col = b.reshape(H4, 1)

    vmem = pl.BlockSpec(memory_space=pltpu.MemorySpace.VMEM)
    itemsize = jnp.dtype(x.dtype).itemsize
    cost = pl.CostEstimate(
        flops=4 * T * B * (D + H) * H4,
        transcendentals=6 * T * B * H4,
        bytes_accessed=itemsize * (2 * x.size + T * B * H + B * H)
        + 4 * 2 * (w_ih.size + w_hh.size) + 4 * (b_lane.size + b_col.size),
    )

    out2d, c_last = pl.pallas_call(
        _lstm_kernel,
        out_shape=(
            jax.ShapeDtypeStruct((T * B, H), x.dtype),
            jax.ShapeDtypeStruct((B, H), x.dtype),
        ),
        in_specs=[vmem] * 12,
        out_specs=(vmem, vmem),
        cost_estimate=cost,
    )(x2d, x2dt, h0_lane, h0_col, c0_lane, c0_col,
      wih_lane, wih_col, whh_lane, whh_col, b_lane, b_col)

    out = out2d.reshape(T, B, H)
    h_n = out2d[T * B - B:].reshape(1, B, H)   # h_n == out[-1]; no extra kernel output
    c_n = c_last.reshape(1, B, H)
    return out, (h_n, c_n)


def lstm_reference(x, h0, c0, w_ih, w_hh, b_ih, b_hh):
    """Pure-JAX reference with identical nn.LSTM semantics."""

    def step(carry, x_t):
        h, c = carry
        gates = x_t @ w_ih.T + h @ w_hh.T + b_ih + b_hh
        i, f, g, o = jnp.split(gates, 4, axis=-1)
        i, f, o = jax.nn.sigmoid(i), jax.nn.sigmoid(f), jax.nn.sigmoid(o)
        g = jnp.tanh(g)
        c = f * c + i * g
        h = o * jnp.tanh(c)
        return (h, c), h

    (hT, cT), out = jax.lax.scan(step, (h0[0], c0[0]), x)
    return out, (hT[None], cT[None])


if __name__ == "__main__":
    # Shapes from the PyTorch demo script.
    sequence_length = 20
    batch_size = 1
    lstm_depth = 1
    model_dimension = 8        # in_dim == out_dim == 8
    H = model_dimension

    key = jax.random.PRNGKey(0)
    kx, kh, kc, k1, k2, k3, k4 = jax.random.split(key, 7)

    inputs = jax.random.normal(
        kx, (sequence_length, batch_size, model_dimension), jnp.float32)
    h0 = jax.random.normal(kh, (lstm_depth, batch_size, H), jnp.float32)
    c0 = jax.random.normal(kc, (lstm_depth, batch_size, H), jnp.float32)

    # nn.LSTM default init: U(-1/sqrt(H), 1/sqrt(H)) for all weights/biases.
    bound = 1.0 / jnp.sqrt(jnp.float32(H))
    w_ih = jax.random.uniform(k1, (4 * H, model_dimension), jnp.float32,
                              -bound, bound)
    w_hh = jax.random.uniform(k2, (4 * H, H), jnp.float32, -bound, bound)
    b_ih = jax.random.uniform(k3, (4 * H,), jnp.float32, -bound, bound)
    b_hh = jax.random.uniform(k4, (4 * H,), jnp.float32, -bound, bound)

    out, (h_n, c_n) = lstm_forward(inputs, h0, c0, w_ih, w_hh, b_ih, b_hh)
    jax.block_until_ready((out, h_n, c_n))

    ref_out, (ref_h, ref_c) = lstm_reference(inputs, h0, c0, w_ih, w_hh,
                                             b_ih, b_hh)
    assert out.shape == (sequence_length, batch_size, H)
    assert h_n.shape == (lstm_depth, batch_size, H)
    assert c_n.shape == (lstm_depth, batch_size, H)
    assert jnp.allclose(out, ref_out, atol=1e-3, rtol=1e-3)
    assert jnp.allclose(h_n, ref_h, atol=1e-3, rtol=1e-3)
    assert jnp.allclose(c_n, ref_c, atol=1e-3, rtol=1e-3)

    print("KERNEL_OK")
</pallas_src>

<mosaic_0001>
module attributes {stable_mosaic.version = 11 : i64} {
  func.func @_lstm_kernel(%arg0: memref<20x8xf32, #tpu.memory_space<vmem>>, %arg1: memref<8x20xf32, #tpu.memory_space<vmem>>, %arg2: memref<1x8xf32, #tpu.memory_space<vmem>>, %arg3: memref<8x1xf32, #tpu.memory_space<vmem>>, %arg4: memref<1x8xf32, #tpu.memory_space<vmem>>, %arg5: memref<8x1xf32, #tpu.memory_space<vmem>>, %arg6: memref<8x32xf32, #tpu.memory_space<vmem>>, %arg7: memref<32x8xf32, #tpu.memory_space<vmem>>, %arg8: memref<8x32xf32, #tpu.memory_space<vmem>>, %arg9: memref<32x8xf32, #tpu.memory_space<vmem>>, %arg10: memref<1x32xf32, #tpu.memory_space<vmem>>, %arg11: memref<32x1xf32, #tpu.memory_space<vmem>>, %arg12: memref<20x8xf32, #tpu.memory_space<vmem>>, %arg13: memref<1x8xf32, #tpu.memory_space<vmem>>) attributes {dimension_semantics = [], scalar_prefetch = 0 : i64, scratch_operands = 0 : i64, tpu.core_type = #tpu.core_type<tc>} {
    %c0 = arith.constant 0 : index
    %c0_0 = arith.constant 0 : index
    %0 = vector.load %arg0[%c0, %c0_0] : memref<20x8xf32, #tpu.memory_space<vmem>>, vector<20x8xf32>
    %c0_1 = arith.constant 0 : index
    %c0_2 = arith.constant 0 : index
    %1 = vector.load %arg6[%c0_1, %c0_2] : memref<8x32xf32, #tpu.memory_space<vmem>>, vector<8x32xf32>
    %cst = arith.constant dense<0.000000e+00> : vector<20x32xf32>
    %2 = tpu.matmul %0, %1, %cst {dimension_numbers = #tpu.dot_dimension_numbers<[1], [0], [0], [1], [0, 0, 1, 1], [], []>} : vector<20x8xf32>, vector<8x32xf32>, vector<20x32xf32> -> vector<20x32xf32>
    %c0_3 = arith.constant 0 : index
    %c0_4 = arith.constant 0 : index
    %3 = vector.load %arg10[%c0_3, %c0_4] : memref<1x32xf32, #tpu.memory_space<vmem>>, vector<1x32xf32>
    %4 = vector.broadcast %3 : vector<1x32xf32> to vector<20x32xf32>
    %5 = arith.addf %2, %4 : vector<20x32xf32>
    %c0_5 = arith.constant 0 : index
    %c0_6 = arith.constant 0 : index
    %6 = vector.load %arg7[%c0_5, %c0_6] : memref<32x8xf32, #tpu.memory_space<vmem>>, vector<32x8xf32>
    %c0_7 = arith.constant 0 : index
    %c0_8 = arith.constant 0 : index
    %7 = vector.load %arg1[%c0_7, %c0_8] : memref<8x20xf32, #tpu.memory_space<vmem>>, vector<8x20xf32>
    %cst_9 = arith.constant dense<0.000000e+00> : vector<32x20xf32>
    %8 = tpu.matmul %6, %7, %cst_9 {dimension_numbers = #tpu.dot_dimension_numbers<[1], [0], [0], [1], [0, 0, 1, 1], [], []>} : vector<32x8xf32>, vector<8x20xf32>, vector<32x20xf32> -> vector<32x20xf32>
    %c0_10 = arith.constant 0 : index
    %c0_11 = arith.constant 0 : index
    %9 = vector.load %arg11[%c0_10, %c0_11] : memref<32x1xf32, #tpu.memory_space<vmem>>, vector<32x1xf32>
    %10 = vector.broadcast %9 : vector<32x1xf32> to vector<32x20xf32>
    %11 = arith.addf %8, %10 : vector<32x20xf32>
    %c0_12 = arith.constant 0 : index
    %c0_13 = arith.constant 0 : index
    %12 = vector.load %arg8[%c0_12, %c0_13] : memref<8x32xf32, #tpu.memory_space<vmem>>, vector<8x32xf32>
    %c0_14 = arith.constant 0 : index
    %c0_15 = arith.constant 0 : index
    %13 = vector.load %arg9[%c0_14, %c0_15] : memref<32x8xf32, #tpu.memory_space<vmem>>, vector<32x8xf32>
    %c0_16 = arith.constant 0 : index
    %c0_17 = arith.constant 0 : index
    %14 = vector.load %arg2[%c0_16, %c0_17] : memref<1x8xf32, #tpu.memory_space<vmem>>, vector<1x8xf32>
    %c0_18 = arith.constant 0 : index
    %c0_19 = arith.constant 0 : index
    %15 = vector.load %arg3[%c0_18, %c0_19] : memref<8x1xf32, #tpu.memory_space<vmem>>, vector<8x1xf32>
    %c0_20 = arith.constant 0 : index
    %c0_21 = arith.constant 0 : index
    %16 = vector.load %arg4[%c0_20, %c0_21] : memref<1x8xf32, #tpu.memory_space<vmem>>, vector<1x8xf32>
    %c0_22 = arith.constant 0 : index
    %c0_23 = arith.constant 0 : index
    %17 = vector.load %arg5[%c0_22, %c0_23] : memref<8x1xf32, #tpu.memory_space<vmem>>, vector<8x1xf32>
    %18 = vector.extract_strided_slice %5 {offsets = [0, 0], sizes = [1, 32], strides = [1, 1]} : vector<20x32xf32> to vector<1x32xf32>
    %19 = vector.shape_cast %15 : vector<8x1xf32> to vector<8x1xf32>
    %20 = vector.broadcast %19 : vector<8x1xf32> to vector<8x32xf32>
    %21 = arith.mulf %20, %12 : vector<8x32xf32>
    %cst_24 = arith.constant dense<0.000000e+00> : vector<32xf32>
    %22 = vector.multi_reduction <add>, %21, %cst_24 [0] : vector<8x32xf32> to vector<32xf32>
    %23 = vector.shape_cast %22 : vector<32xf32> to vector<1x32xf32>
    %24 = arith.addf %18, %23 : vector<1x32xf32>
    %25 = arith.negf %24 : vector<1x32xf32>
    %26 = math.exp %25 : vector<1x32xf32>
    %cst_25 = arith.constant 1.000000e+00 : f32
    %27 = vector.broadcast %cst_25 : f32 to vector<1x32xf32>
    %28 = arith.addf %27, %26 : vector<1x32xf32>
    %29 = arith.divf %27, %28 : vector<1x32xf32>
    %30 = math.tanh %24 : vector<1x32xf32>
    %31 = vector.extract_strided_slice %29 {offsets = [0, 8], sizes = [1, 8], strides = [1, 1]} : vector<1x32xf32> to vector<1x8xf32>
    %32 = arith.mulf %31, %16 : vector<1x8xf32>
    %33 = vector.extract_strided_slice %29 {offsets = [0, 0], sizes = [1, 8], strides = [1, 1]} : vector<1x32xf32> to vector<1x8xf32>
    %34 = vector.extract_strided_slice %30 {offsets = [0, 16], sizes = [1, 8], strides = [1, 1]} : vector<1x32xf32> to vector<1x8xf32>
    %35 = arith.mulf %33, %34 : vector<1x8xf32>
    %36 = arith.addf %32, %35 : vector<1x8xf32>
    %37 = vector.extract_strided_slice %29 {offsets = [0, 24], sizes = [1, 8], strides = [1, 1]} : vector<1x32xf32> to vector<1x8xf32>
    %38 = math.tanh %36 : vector<1x8xf32>
    %39 = arith.mulf %37, %38 : vector<1x8xf32>
    %40 = vector.extract_strided_slice %11 {offsets = [0, 0], sizes = [32, 1], strides = [1, 1]} : vector<32x20xf32> to vector<32x1xf32>
    %41 = vector.shape_cast %14 : vector<1x8xf32> to vector<1x8xf32>
    %42 = vector.broadcast %41 : vector<1x8xf32> to vector<32x8xf32>
    %43 = arith.mulf %42, %13 : vector<32x8xf32>
    %cst_26 = arith.constant dense<0.000000e+00> : vector<32xf32>
    %44 = vector.multi_reduction <add>, %43, %cst_26 [1] : vector<32x8xf32> to vector<32xf32>
    %45 = vector.shape_cast %44 : vector<32xf32> to vector<32x1xf32>
    %46 = arith.addf %40, %45 : vector<32x1xf32>
    %47 = arith.negf %46 : vector<32x1xf32>
    %48 = math.exp %47 : vector<32x1xf32>
    %cst_27 = arith.constant 1.000000e+00 : f32
    %49 = vector.broadcast %cst_27 : f32 to vector<32x1xf32>
    %50 = arith.addf %49, %48 : vector<32x1xf32>
    %51 = arith.divf %49, %50 : vector<32x1xf32>
    %52 = math.tanh %46 : vector<32x1xf32>
    %53 = vector.extract_strided_slice %51 {offsets = [8, 0], sizes = [8, 1], strides = [1, 1]} : vector<32x1xf32> to vector<8x1xf32>
    %54 = arith.mulf %53, %17 : vector<8x1xf32>
    %55 = vector.extract_strided_slice %51 {offsets = [0, 0], sizes = [8, 1], strides = [1, 1]} : vector<32x1xf32> to vector<8x1xf32>
    %56 = vector.extract_strided_slice %52 {offsets = [16, 0], sizes = [8, 1], strides = [1, 1]} : vector<32x1xf32> to vector<8x1xf32>
    %57 = arith.mulf %55, %56 : vector<8x1xf32>
    %58 = arith.addf %54, %57 : vector<8x1xf32>
    %59 = vector.extract_strided_slice %51 {offsets = [24, 0], sizes = [8, 1], strides = [1, 1]} : vector<32x1xf32> to vector<8x1xf32>
    %60 = math.tanh %58 : vector<8x1xf32>
    %61 = arith.mulf %59, %60 : vector<8x1xf32>
    %62 = vector.extract_strided_slice %5 {offsets = [1, 0], sizes = [1, 32], strides = [1, 1]} : vector<20x32xf32> to vector<1x32xf32>
    %63 = vector.shape_cast %61 : vector<8x1xf32> to vector<8x1xf32>
    %64 = vector.broadcast %63 : vector<8x1xf32> to vector<8x32xf32>
    %65 = arith.mulf %64, %12 : vector<8x32xf32>
    %cst_28 = arith.constant dense<0.000000e+00> : vector<32xf32>
    %66 = vector.multi_reduction <add>, %65, %cst_28 [0] : vector<8x32xf32> to vector<32xf32>
    %67 = vector.shape_cast %66 : vector<32xf32> to vector<1x32xf32>
    %68 = arith.addf %62, %67 : vector<1x32xf32>
    %69 = arith.negf %68 : vector<1x32xf32>
    %70 = math.exp %69 : vector<1x32xf32>
    %cst_29 = arith.constant 1.000000e+00 : f32
    %71 = vector.broadcast %cst_29 : f32 to vector<1x32xf32>
    %72 = arith.addf %71, %70 : vector<1x32xf32>
    %73 = arith.divf %71, %72 : vector<1x32xf32>
    %74 = math.tanh %68 : vector<1x32xf32>
    %75 = vector.extract_strided_slice %73 {offsets = [0, 8], sizes = [1, 8], strides = [1, 1]} : vector<1x32xf32> to vector<1x8xf32>
    %76 = arith.mulf %75, %36 : vector<1x8xf32>
    %77 = vector.extract_strided_slice %73 {offsets = [0, 0], sizes = [1, 8], strides = [1, 1]} : vector<1x32xf32> to vector<1x8xf32>
    %78 = vector.extract_strided_slice %74 {offsets = [0, 16], sizes = [1, 8], strides = [1, 1]} : vector<1x32xf32> to vector<1x8xf32>
    %79 = arith.mulf %77, %78 : vector<1x8xf32>
    %80 = arith.addf %76, %79 : vector<1x8xf32>
    %81 = vector.extract_strided_slice %73 {offsets = [0, 24], sizes = [1, 8], strides = [1, 1]} : vector<1x32xf32> to vector<1x8xf32>
    %82 = math.tanh %80 : vector<1x8xf32>
    %83 = arith.mulf %81, %82 : vector<1x8xf32>
    %84 = vector.extract_strided_slice %11 {offsets = [0, 1], sizes = [32, 1], strides = [1, 1]} : vector<32x20xf32> to vector<32x1xf32>
    %85 = vector.shape_cast %39 : vector<1x8xf32> to vector<1x8xf32>
    %86 = vector.broadcast %85 : vector<1x8xf32> to vector<32x8xf32>
    %87 = arith.mulf %86, %13 : vector<32x8xf32>
    %cst_30 = arith.constant dense<0.000000e+00> : vector<32xf32>
    %88 = vector.multi_reduction <add>, %87, %cst_30 [1] : vector<32x8xf32> to vector<32xf32>
    %89 = vector.shape_cast %88 : vector<32xf32> to vector<32x1xf32>
    %90 = arith.addf %84, %89 : vector<32x1xf32>
    %91 = arith.negf %90 : vector<32x1xf32>
    %92 = math.exp %91 : vector<32x1xf32>
    %cst_31 = arith.constant 1.000000e+00 : f32
    %93 = vector.broadcast %cst_31 : f32 to vector<32x1xf32>
    %94 = arith.addf %93, %92 : vector<32x1xf32>
    %95 = arith.divf %93, %94 : vector<32x1xf32>
    %96 = math.tanh %90 : vector<32x1xf32>
    %97 = vector.extract_strided_slice %95 {offsets = [8, 0], sizes = [8, 1], strides = [1, 1]} : vector<32x1xf32> to vector<8x1xf32>
    %98 = arith.mulf %97, %58 : vector<8x1xf32>
    %99 = vector.extract_strided_slice %95 {offsets = [0, 0], sizes = [8, 1], strides = [1, 1]} : vector<32x1xf32> to vector<8x1xf32>
    %100 = vector.extract_strided_slice %96 {offsets = [16, 0], sizes = [8, 1], strides = [1, 1]} : vector<32x1xf32> to vector<8x1xf32>
    %101 = arith.mulf %99, %100 : vector<8x1xf32>
    %102 = arith.addf %98, %101 : vector<8x1xf32>
    %103 = vector.extract_strided_slice %95 {offsets = [24, 0], sizes = [8, 1], strides = [1, 1]} : vector<32x1xf32> to vector<8x1xf32>
    %104 = math.tanh %102 : vector<8x1xf32>
    %105 = arith.mulf %103, %104 : vector<8x1xf32>
    %106 = vector.extract_strided_slice %5 {offsets = [2, 0], sizes = [1, 32], strides = [1, 1]} : vector<20x32xf32> to vector<1x32xf32>
    %107 = vector.shape_cast %105 : vector<8x1xf32> to vector<8x1xf32>
    %108 = vector.broadcast %107 : vector<8x1xf32> to vector<8x32xf32>
    %109 = arith.mulf %108, %12 : vector<8x32xf32>
    %cst_32 = arith.constant dense<0.000000e+00> : vector<32xf32>
    %110 = vector.multi_reduction <add>, %109, %cst_32 [0] : vector<8x32xf32> to vector<32xf32>
    %111 = vector.shape_cast %110 : vector<32xf32> to vector<1x32xf32>
    %112 = arith.addf %106, %111 : vector<1x32xf32>
    %113 = arith.negf %112 : vector<1x32xf32>
    %114 = math.exp %113 : vector<1x32xf32>
    %cst_33 = arith.constant 1.000000e+00 : f32
    %115 = vector.broadcast %cst_33 : f32 to vector<1x32xf32>
    %116 = arith.addf %115, %114 : vector<1x32xf32>
    %117 = arith.divf %115, %116 : vector<1x32xf32>
    %118 = math.tanh %112 : vector<1x32xf32>
    %119 = vector.extract_strided_slice %117 {offsets = [0, 8], sizes = [1, 8], strides = [1, 1]} : vector<1x32xf32> to vector<1x8xf32>
    %120 = arith.mulf %119, %80 : vector<1x8xf32>
    %121 = vector.extract_strided_slice %117 {offsets = [0, 0], sizes = [1, 8], strides = [1, 1]} : vector<1x32xf32> to vector<1x8xf32>
    %122 = vector.extract_strided_slice %118 {offsets = [0, 16], sizes = [1, 8], strides = [1, 1]} : vector<1x32xf32> to vector<1x8xf32>
    %123 = arith.mulf %121, %122 : vector<1x8xf32>
    %124 = arith.addf %120, %123 : vector<1x8xf32>
    %125 = vector.extract_strided_slice %117 {offsets = [0, 24], sizes = [1, 8], strides = [1, 1]} : vector<1x32xf32> to vector<1x8xf32>
    %126 = math.tanh %124 : vector<1x8xf32>
    %127 = arith.mulf %125, %126 : vector<1x8xf32>
    %128 = vector.extract_strided_slice %11 {offsets = [0, 2], sizes = [32, 1], strides = [1, 1]} : vector<32x20xf32> to vector<32x1xf32>
    %129 = vector.shape_cast %83 : vector<1x8xf32> to vector<1x8xf32>
    %130 = vector.broadcast %129 : vector<1x8xf32> to vector<32x8xf32>
    %131 = arith.mulf %130, %13 : vector<32x8xf32>
    %cst_34 = arith.constant dense<0.000000e+00> : vector<32xf32>
    %132 = vector.multi_reduction <add>, %131, %cst_34 [1] : vector<32x8xf32> to vector<32xf32>
    %133 = vector.shape_cast %132 : vector<32xf32> to vector<32x1xf32>
    %134 = arith.addf %128, %133 : vector<32x1xf32>
    %135 = arith.negf %134 : vector<32x1xf32>
    %136 = math.exp %135 : vector<32x1xf32>
    %cst_35 = arith.constant 1.000000e+00 : f32
    %137 = vector.broadcast %cst_35 : f32 to vector<32x1xf32>
    %138 = arith.addf %137, %136 : vector<32x1xf32>
    %139 = arith.divf %137, %138 : vector<32x1xf32>
    %140 = math.tanh %134 : vector<32x1xf32>
    %141 = vector.extract_strided_slice %139 {offsets = [8, 0], sizes = [8, 1], strides = [1, 1]} : vector<32x1xf32> to vector<8x1xf32>
    %142 = arith.mulf %141, %102 : vector<8x1xf32>
    %143 = vector.extract_strided_slice %139 {offsets = [0, 0], sizes = [8, 1], strides = [1, 1]} : vector<32x1xf32> to vector<8x1xf32>
    %144 = vector.extract_strided_slice %140 {offsets = [16, 0], sizes = [8, 1], strides = [1, 1]} : vector<32x1xf32> to vector<8x1xf32>
    %145 = arith.mulf %143, %144 : vector<8x1xf32>
    %146 = arith.addf %142, %145 : vector<8x1xf32>
    %147 = vector.extract_strided_slice %139 {offsets = [24, 0], sizes = [8, 1], strides = [1, 1]} : vector<32x1xf32> to vector<8x1xf32>
    %148 = math.tanh %146 : vector<8x1xf32>
    %149 = arith.mulf %147, %148 : vector<8x1xf32>
    %150 = vector.extract_strided_slice %5 {offsets = [3, 0], sizes = [1, 32], strides = [1, 1]} : vector<20x32xf32> to vector<1x32xf32>
    %151 = vector.shape_cast %149 : vector<8x1xf32> to vector<8x1xf32>
    %152 = vector.broadcast %151 : vector<8x1xf32> to vector<8x32xf32>
    %153 = arith.mulf %152, %12 : vector<8x32xf32>
    %cst_36 = arith.constant dense<0.000000e+00> : vector<32xf32>
    %154 = vector.multi_reduction <add>, %153, %cst_36 [0] : vector<8x32xf32> to vector<32xf32>
    %155 = vector.shape_cast %154 : vector<32xf32> to vector<1x32xf32>
    %156 = arith.addf %150, %155 : vector<1x32xf32>
    %157 = arith.negf %156 : vector<1x32xf32>
    %158 = math.exp %157 : vector<1x32xf32>
    %cst_37 = arith.constant 1.000000e+00 : f32
    %159 = vector.broadcast %cst_37 : f32 to vector<1x32xf32>
    %160 = arith.addf %159, %158 : vector<1x32xf32>
    %161 = arith.divf %159, %160 : vector<1x32xf32>
    %162 = math.tanh %156 : vector<1x32xf32>
    %163 = vector.extract_strided_slice %161 {offsets = [0, 8], sizes = [1, 8], strides = [1, 1]} : vector<1x32xf32> to vector<1x8xf32>
    %164 = arith.mulf %163, %124 : vector<1x8xf32>
    %165 = vector.extract_strided_slice %161 {offsets = [0, 0], sizes = [1, 8], strides = [1, 1]} : vector<1x32xf32> to vector<1x8xf32>
    %166 = vector.extract_strided_slice %162 {offsets = [0, 16], sizes = [1, 8], strides = [1, 1]} : vector<1x32xf32> to vector<1x8xf32>
    %167 = arith.mulf %165, %166 : vector<1x8xf32>
    %168 = arith.addf %164, %167 : vector<1x8xf32>
    %169 = vector.extract_strided_slice %161 {offsets = [0, 24], sizes = [1, 8], strides = [1, 1]} : vector<1x32xf32> to vector<1x8xf32>
    %170 = math.tanh %168 : vector<1x8xf32>
    %171 = arith.mulf %169, %170 : vector<1x8xf32>
    %172 = vector.extract_strided_slice %11 {offsets = [0, 3], sizes = [32, 1], strides = [1, 1]} : vector<32x20xf32> to vector<32x1xf32>
    %173 = vector.shape_cast %127 : vector<1x8xf32> to vector<1x8xf32>
    %174 = vector.broadcast %173 : vector<1x8xf32> to vector<32x8xf32>
    %175 = arith.mulf %174, %13 : vector<32x8xf32>
    %cst_38 = arith.constant dense<0.000000e+00> : vector<32xf32>
    %176 = vector.multi_reduction <add>, %175, %cst_38 [1] : vector<32x8xf32> to vector<32xf32>
    %177 = vector.shape_cast %176 : vector<32xf32> to vector<32x1xf32>
    %178 = arith.addf %172, %177 : vector<32x1xf32>
    %179 = arith.negf %178 : vector<32x1xf32>
    %180 = math.exp %179 : vector<32x1xf32>
    %cst_39 = arith.constant 1.000000e+00 : f32
    %181 = vector.broadcast %cst_39 : f32 to vector<32x1xf32>
    %182 = arith.addf %181, %180 : vector<32x1xf32>
    %183 = arith.divf %181, %182 : vector<32x1xf32>
    %184 = math.tanh %178 : vector<32x1xf32>
    %185 = vector.extract_strided_slice %183 {offsets = [8, 0], sizes = [8, 1], strides = [1, 1]} : vector<32x1xf32> to vector<8x1xf32>
    %186 = arith.mulf %185, %146 : vector<8x1xf32>
    %187 = vector.extract_strided_slice %183 {offsets = [0, 0], sizes = [8, 1], strides = [1, 1]} : vector<32x1xf32> to vector<8x1xf32>
    %188 = vector.extract_strided_slice %184 {offsets = [16, 0], sizes = [8, 1], strides = [1, 1]} : vector<32x1xf32> to vector<8x1xf32>
    %189 = arith.mulf %187, %188 : vector<8x1xf32>
    %190 = arith.addf %186, %189 : vector<8x1xf32>
    %191 = vector.extract_strided_slice %183 {offsets = [24, 0], sizes = [8, 1], strides = [1, 1]} : vector<32x1xf32> to vector<8x1xf32>
    %192 = math.tanh %190 : vector<8x1xf32>
    %193 = arith.mulf %191, %192 : vector<8x1xf32>
    %194 = vector.extract_strided_slice %5 {offsets = [4, 0], sizes = [1, 32], strides = [1, 1]} : vector<20x32xf32> to vector<1x32xf32>
    %195 = vector.shape_cast %193 : vector<8x1xf32> to vector<8x1xf32>
    %196 = vector.broadcast %195 : vector<8x1xf32> to vector<8x32xf32>
    %197 = arith.mulf %196, %12 : vector<8x32xf32>
    %cst_40 = arith.constant dense<0.000000e+00> : vector<32xf32>
    %198 = vector.multi_reduction <add>, %197, %cst_40 [0] : vector<8x32xf32> to vector<32xf32>
    %199 = vector.shape_cast %198 : vector<32xf32> to vector<1x32xf32>
    %200 = arith.addf %194, %199 : vector<1x32xf32>
    %201 = arith.negf %200 : vector<1x32xf32>
    %202 = math.exp %201 : vector<1x32xf32>
    %cst_41 = arith.constant 1.000000e+00 : f32
    %203 = vector.broadcast %cst_41 : f32 to vector<1x32xf32>
    %204 = arith.addf %203, %202 : vector<1x32xf32>
    %205 = arith.divf %203, %204 : vector<1x32xf32>
    %206 = math.tanh %200 : vector<1x32xf32>
    %207 = vector.extract_strided_slice %205 {offsets = [0, 8], sizes = [1, 8], strides = [1, 1]} : vector<1x32xf32> to vector<1x8xf32>
    %208 = arith.mulf %207, %168 : vector<1x8xf32>
    %209 = vector.extract_strided_slice %205 {offsets = [0, 0], sizes = [1, 8], strides = [1, 1]} : vector<1x32xf32> to vector<1x8xf32>
    %210 = vector.extract_strided_slice %206 {offsets = [0, 16], sizes = [1, 8], strides = [1, 1]} : vector<1x32xf32> to vector<1x8xf32>
    %211 = arith.mulf %209, %210 : vector<1x8xf32>
    %212 = arith.addf %208, %211 : vector<1x8xf32>
    %213 = vector.extract_strided_slice %205 {offsets = [0, 24], sizes = [1, 8], strides = [1, 1]} : vector<1x32xf32> to vector<1x8xf32>
    %214 = math.tanh %212 : vector<1x8xf32>
    %215 = arith.mulf %213, %214 : vector<1x8xf32>
    %216 = vector.extract_strided_slice %11 {offsets = [0, 4], sizes = [32, 1], strides = [1, 1]} : vector<32x20xf32> to vector<32x1xf32>
    %217 = vector.shape_cast %171 : vector<1x8xf32> to vector<1x8xf32>
    %218 = vector.broadcast %217 : vector<1x8xf32> to vector<32x8xf32>
    %219 = arith.mulf %218, %13 : vector<32x8xf32>
    %cst_42 = arith.constant dense<0.000000e+00> : vector<32xf32>
    %220 = vector.multi_reduction <add>, %219, %cst_42 [1] : vector<32x8xf32> to vector<32xf32>
    %221 = vector.shape_cast %220 : vector<32xf32> to vector<32x1xf32>
    %222 = arith.addf %216, %221 : vector<32x1xf32>
    %223 = arith.negf %222 : vector<32x1xf32>
    %224 = math.exp %223 : vector<32x1xf32>
    %cst_43 = arith.constant 1.000000e+00 : f32
    %225 = vector.broadcast %cst_43 : f32 to vector<32x1xf32>
    %226 = arith.addf %225, %224 : vector<32x1xf32>
    %227 = arith.divf %225, %226 : vector<32x1xf32>
    %228 = math.tanh %222 : vector<32x1xf32>
    %229 = vector.extract_strided_slice %227 {offsets = [8, 0], sizes = [8, 1], strides = [1, 1]} : vector<32x1xf32> to vector<8x1xf32>
    %230 = arith.mulf %229, %190 : vector<8x1xf32>
    %231 = vector.extract_strided_slice %227 {offsets = [0, 0], sizes = [8, 1], strides = [1, 1]} : vector<32x1xf32> to vector<8x1xf32>
    %232 = vector.extract_strided_slice %228 {offsets = [16, 0], sizes = [8, 1], strides = [1, 1]} : vector<32x1xf32> to vector<8x1xf32>
    %233 = arith.mulf %231, %232 : vector<8x1xf32>
    %234 = arith.addf %230, %233 : vector<8x1xf32>
    %235 = vector.extract_strided_slice %227 {offsets = [24, 0], sizes = [8, 1], strides = [1, 1]} : vector<32x1xf32> to vector<8x1xf32>
    %236 = math.tanh %234 : vector<8x1xf32>
    %237 = arith.mulf %235, %236 : vector<8x1xf32>
    %238 = vector.extract_strided_slice %5 {offsets = [5, 0], sizes = [1, 32], strides = [1, 1]} : vector<20x32xf32> to vector<1x32xf32>
    %239 = vector.shape_cast %237 : vector<8x1xf32> to vector<8x1xf32>
    %240 = vector.broadcast %239 : vector<8x1xf32> to vector<8x32xf32>
    %241 = arith.mulf %240, %12 : vector<8x32xf32>
    %cst_44 = arith.constant dense<0.000000e+00> : vector<32xf32>
    %242 = vector.multi_reduction <add>, %241, %cst_44 [0] : vector<8x32xf32> to vector<32xf32>
    %243 = vector.shape_cast %242 : vector<32xf32> to vector<1x32xf32>
    %244 = arith.addf %238, %243 : vector<1x32xf32>
    %245 = arith.negf %244 : vector<1x32xf32>
    %246 = math.exp %245 : vector<1x32xf32>
    %cst_45 = arith.constant 1.000000e+00 : f32
    %247 = vector.broadcast %cst_45 : f32 to vector<1x32xf32>
    %248 = arith.addf %247, %246 : vector<1x32xf32>
    %249 = arith.divf %247, %248 : vector<1x32xf32>
    %250 = math.tanh %244 : vector<1x32xf32>
    %251 = vector.extract_strided_slice %249 {offsets = [0, 8], sizes = [1, 8], strides = [1, 1]} : vector<1x32xf32> to vector<1x8xf32>
    %252 = arith.mulf %251, %212 : vector<1x8xf32>
    %253 = vector.extract_strided_slice %249 {offsets = [0, 0], sizes = [1, 8], strides = [1, 1]} : vector<1x32xf32> to vector<1x8xf32>
    %254 = vector.extract_strided_slice %250 {offsets = [0, 16], sizes = [1, 8], strides = [1, 1]} : vector<1x32xf32> to vector<1x8xf32>
    %255 = arith.mulf %253, %254 : vector<1x8xf32>
    %256 = arith.addf %252, %255 : vector<1x8xf32>
    %257 = vector.extract_strided_slice %249 {offsets = [0, 24], sizes = [1, 8], strides = [1, 1]} : vector<1x32xf32> to vector<1x8xf32>
    %258 = math.tanh %256 : vector<1x8xf32>
    %259 = arith.mulf %257, %258 : vector<1x8xf32>
    %260 = vector.extract_strided_slice %11 {offsets = [0, 5], sizes = [32, 1], strides = [1, 1]} : vector<32x20xf32> to vector<32x1xf32>
    %261 = vector.shape_cast %215 : vector<1x8xf32> to vector<1x8xf32>
    %262 = vector.broadcast %261 : vector<1x8xf32> to vector<32x8xf32>
    %263 = arith.mulf %262, %13 : vector<32x8xf32>
    %cst_46 = arith.constant dense<0.000000e+00> : vector<32xf32>
    %264 = vector.multi_reduction <add>, %263, %cst_46 [1] : vector<32x8xf32> to vector<32xf32>
    %265 = vector.shape_cast %264 : vector<32xf32> to vector<32x1xf32>
    %266 = arith.addf %260, %265 : vector<32x1xf32>
    %267 = arith.negf %266 : vector<32x1xf32>
    %268 = math.exp %267 : vector<32x1xf32>
    %cst_47 = arith.constant 1.000000e+00 : f32
    %269 = vector.broadcast %cst_47 : f32 to vector<32x1xf32>
    %270 = arith.addf %269, %268 : vector<32x1xf32>
    %271 = arith.divf %269, %270 : vector<32x1xf32>
    %272 = math.tanh %266 : vector<32x1xf32>
    %273 = vector.extract_strided_slice %271 {offsets = [8, 0], sizes = [8, 1], strides = [1, 1]} : vector<32x1xf32> to vector<8x1xf32>
    %274 = arith.mulf %273, %234 : vector<8x1xf32>
    %275 = vector.extract_strided_slice %271 {offsets = [0, 0], sizes = [8, 1], strides = [1, 1]} : vector<32x1xf32> to vector<8x1xf32>
    %276 = vector.extract_strided_slice %272 {offsets = [16, 0], sizes = [8, 1], strides = [1, 1]} : vector<32x1xf32> to vector<8x1xf32>
    %277 = arith.mulf %275, %276 : vector<8x1xf32>
    %278 = arith.addf %274, %277 : vector<8x1xf32>
    %279 = vector.extract_strided_slice %271 {offsets = [24, 0], sizes = [8, 1], strides = [1, 1]} : vector<32x1xf32> to vector<8x1xf32>
    %280 = math.tanh %278 : vector<8x1xf32>
    %281 = arith.mulf %279, %280 : vector<8x1xf32>
    %282 = vector.extract_strided_slice %5 {offsets = [6, 0], sizes = [1, 32], strides = [1, 1]} : vector<20x32xf32> to vector<1x32xf32>
    %283 = vector.shape_cast %281 : vector<8x1xf32> to vector<8x1xf32>
    %284 = vector.broadcast %283 : vector<8x1xf32> to vector<8x32xf32>
    %285 = arith.mulf %284, %12 : vector<8x32xf32>
    %cst_48 = arith.constant dense<0.000000e+00> : vector<32xf32>
    %286 = vector.multi_reduction <add>, %285, %cst_48 [0] : vector<8x32xf32> to vector<32xf32>
    %287 = vector.shape_cast %286 : vector<32xf32> to vector<1x32xf32>
    %288 = arith.addf %282, %287 : vector<1x32xf32>
    %289 = arith.negf %288 : vector<1x32xf32>
    %290 = math.exp %289 : vector<1x32xf32>
    %cst_49 = arith.constant 1.000000e+00 : f32
    %291 = vector.broadcast %cst_49 : f32 to vector<1x32xf32>
    %292 = arith.addf %291, %290 : vector<1x32xf32>
    %293 = arith.divf %291, %292 : vector<1x32xf32>
    %294 = math.tanh %288 : vector<1x32xf32>
    %295 = vector.extract_strided_slice %293 {offsets = [0, 8], sizes = [1, 8], strides = [1, 1]} : vector<1x32xf32> to vector<1x8xf32>
    %296 = arith.mulf %295, %256 : vector<1x8xf32>
    %297 = vector.extract_strided_slice %293 {offsets = [0, 0], sizes = [1, 8], strides = [1, 1]} : vector<1x32xf32> to vector<1x8xf32>
    %298 = vector.extract_strided_slice %294 {offsets = [0, 16], sizes = [1, 8], strides = [1, 1]} : vector<1x32xf32> to vector<1x8xf32>
    %299 = arith.mulf %297, %298 : vector<1x8xf32>
    %300 = arith.addf %296, %299 : vector<1x8xf32>
    %301 = vector.extract_strided_slice %293 {offsets = [0, 24], sizes = [1, 8], strides = [1, 1]} : vector<1x32xf32> to vector<1x8xf32>
    %302 = math.tanh %300 : vector<1x8xf32>
    %303 = arith.mulf %301, %302 : vector<1x8xf32>
    %304 = vector.extract_strided_slice %11 {offsets = [0, 6], sizes = [32, 1], strides = [1, 1]} : vector<32x20xf32> to vector<32x1xf32>
    %305 = vector.shape_cast %259 : vector<1x8xf32> to vector<1x8xf32>
    %306 = vector.broadcast %305 : vector<1x8xf32> to vector<32x8xf32>
    %307 = arith.mulf %306, %13 : vector<32x8xf32>
    %cst_50 = arith.constant dense<0.000000e+00> : vector<32xf32>
    %308 = vector.multi_reduction <add>, %307, %cst_50 [1] : vector<32x8xf32> to vector<32xf32>
    %309 = vector.shape_cast %308 : vector<32xf32> to vector<32x1xf32>
    %310 = arith.addf %304, %309 : vector<32x1xf32>
    %311 = arith.negf %310 : vector<32x1xf32>
    %312 = math.exp %311 : vector<32x1xf32>
    %cst_51 = arith.constant 1.000000e+00 : f32
    %313 = vector.broadcast %cst_51 : f32 to vector<32x1xf32>
    %314 = arith.addf %313, %312 : vector<32x1xf32>
    %315 = arith.divf %313, %314 : vector<32x1xf32>
    %316 = math.tanh %310 : vector<32x1xf32>
    %317 = vector.extract_strided_slice %315 {offsets = [8, 0], sizes = [8, 1], strides = [1, 1]} : vector<32x1xf32> to vector<8x1xf32>
    %318 = arith.mulf %317, %278 : vector<8x1xf32>
    %319 = vector.extract_strided_slice %315 {offsets = [0, 0], sizes = [8, 1], strides = [1, 1]} : vector<32x1xf32> to vector<8x1xf32>
    %320 = vector.extract_strided_slice %316 {offsets = [16, 0], sizes = [8, 1], strides = [1, 1]} : vector<32x1xf32> to vector<8x1xf32>
    %321 = arith.mulf %319, %320 : vector<8x1xf32>
    %322 = arith.addf %318, %321 : vector<8x1xf32>
    %323 = vector.extract_strided_slice %315 {offsets = [24, 0], sizes = [8, 1], strides = [1, 1]} : vector<32x1xf32> to vector<8x1xf32>
    %324 = math.tanh %322 : vector<8x1xf32>
    %325 = arith.mulf %323, %324 : vector<8x1xf32>
    %326 = vector.extract_strided_slice %5 {offsets = [7, 0], sizes = [1, 32], strides = [1, 1]} : vector<20x32xf32> to vector<1x32xf32>
    %327 = vector.shape_cast %325 : vector<8x1xf32> to vector<8x1xf32>
    %328 = vector.broadcast %327 : vector<8x1xf32> to vector<8x32xf32>
    %329 = arith.mulf %328, %12 : vector<8x32xf32>
    %cst_52 = arith.constant dense<0.000000e+00> : vector<32xf32>
    %330 = vector.multi_reduction <add>, %329, %cst_52 [0] : vector<8x32xf32> to vector<32xf32>
    %331 = vector.shape_cast %330 : vector<32xf32> to vector<1x32xf32>
    %332 = arith.addf %326, %331 : vector<1x32xf32>
    %333 = arith.negf %332 : vector<1x32xf32>
    %334 = math.exp %333 : vector<1x32xf32>
    %cst_53 = arith.constant 1.000000e+00 : f32
    %335 = vector.broadcast %cst_53 : f32 to vector<1x32xf32>
    %336 = arith.addf %335, %334 : vector<1x32xf32>
    %337 = arith.divf %335, %336 : vector<1x32xf32>
    %338 = math.tanh %332 : vector<1x32xf32>
    %339 = vector.extract_strided_slice %337 {offsets = [0, 8], sizes = [1, 8], strides = [1, 1]} : vector<1x32xf32> to vector<1x8xf32>
    %340 = arith.mulf %339, %300 : vector<1x8xf32>
    %341 = vector.extract_strided_slice %337 {offsets = [0, 0], sizes = [1, 8], strides = [1, 1]} : vector<1x32xf32> to vector<1x8xf32>
    %342 = vector.extract_strided_slice %338 {offsets = [0, 16], sizes = [1, 8], strides = [1, 1]} : vector<1x32xf32> to vector<1x8xf32>
    %343 = arith.mulf %341, %342 : vector<1x8xf32>
    %344 = arith.addf %340, %343 : vector<1x8xf32>
    %345 = vector.extract_strided_slice %337 {offsets = [0, 24], sizes = [1, 8], strides = [1, 1]} : vector<1x32xf32> to vector<1x8xf32>
    %346 = math.tanh %344 : vector<1x8xf32>
    %347 = arith.mulf %345, %346 : vector<1x8xf32>
    %348 = vector.extract_strided_slice %11 {offsets = [0, 7], sizes = [32, 1], strides = [1, 1]} : vector<32x20xf32> to vector<32x1xf32>
    %349 = vector.shape_cast %303 : vector<1x8xf32> to vector<1x8xf32>
    %350 = vector.broadcast %349 : vector<1x8xf32> to vector<32x8xf32>
    %351 = arith.mulf %350, %13 : vector<32x8xf32>
    %cst_54 = arith.constant dense<0.000000e+00> : vector<32xf32>
    %352 = vector.multi_reduction <add>, %351, %cst_54 [1] : vector<32x8xf32> to vector<32xf32>
    %353 = vector.shape_cast %352 : vector<32xf32> to vector<32x1xf32>
    %354 = arith.addf %348, %353 : vector<32x1xf32>
    %355 = arith.negf %354 : vector<32x1xf32>
    %356 = math.exp %355 : vector<32x1xf32>
    %cst_55 = arith.constant 1.000000e+00 : f32
    %357 = vector.broadcast %cst_55 : f32 to vector<32x1xf32>
    %358 = arith.addf %357, %356 : vector<32x1xf32>
    %359 = arith.divf %357, %358 : vector<32x1xf32>
    %360 = math.tanh %354 : vector<32x1xf32>
    %361 = vector.extract_strided_slice %359 {offsets = [8, 0], sizes = [8, 1], strides = [1, 1]} : vector<32x1xf32> to vector<8x1xf32>
    %362 = arith.mulf %361, %322 : vector<8x1xf32>
    %363 = vector.extract_strided_slice %359 {offsets = [0, 0], sizes = [8, 1], strides = [1, 1]} : vector<32x1xf32> to vector<8x1xf32>
    %364 = vector.extract_strided_slice %360 {offsets = [16, 0], sizes = [8, 1], strides = [1, 1]} : vector<32x1xf32> to vector<8x1xf32>
    %365 = arith.mulf %363, %364 : vector<8x1xf32>
    %366 = arith.addf %362, %365 : vector<8x1xf32>
    %367 = vector.extract_strided_slice %359 {offsets = [24, 0], sizes = [8, 1], strides = [1, 1]} : vector<32x1xf32> to vector<8x1xf32>
    %368 = math.tanh %366 : vector<8x1xf32>
    %369 = arith.mulf %367, %368 : vector<8x1xf32>
    %370 = vector.extract_strided_slice %5 {offsets = [8, 0], sizes = [1, 32], strides = [1, 1]} : vector<20x32xf32> to vector<1x32xf32>
    %371 = vector.shape_cast %369 : vector<8x1xf32> to vector<8x1xf32>
    %372 = vector.broadcast %371 : vector<8x1xf32> to vector<8x32xf32>
    %373 = arith.mulf %372, %12 : vector<8x32xf32>
    %cst_56 = arith.constant dense<0.000000e+00> : vector<32xf32>
    %374 = vector.multi_reduction <add>, %373, %cst_56 [0] : vector<8x32xf32> to vector<32xf32>
    %375 = vector.shape_cast %374 : vector<32xf32> to vector<1x32xf32>
    %376 = arith.addf %370, %375 : vector<1x32xf32>
    %377 = arith.negf %376 : vector<1x32xf32>
    %378 = math.exp %377 : vector<1x32xf32>
    %cst_57 = arith.constant 1.000000e+00 : f32
    %379 = vector.broadcast %cst_57 : f32 to vector<1x32xf32>
    %380 = arith.addf %379, %378 : vector<1x32xf32>
    %381 = arith.divf %379, %380 : vector<1x32xf32>
    %382 = math.tanh %376 : vector<1x32xf32>
    %383 = vector.extract_strided_slice %381 {offsets = [0, 8], sizes = [1, 8], strides = [1, 1]} : vector<1x32xf32> to vector<1x8xf32>
    %384 = arith.mulf %383, %344 : vector<1x8xf32>
    %385 = vector.extract_strided_slice %381 {offsets = [0, 0], sizes = [1, 8], strides = [1, 1]} : vector<1x32xf32> to vector<1x8xf32>
    %386 = vector.extract_strided_slice %382 {offsets = [0, 16], sizes = [1, 8], strides = [1, 1]} : vector<1x32xf32> to vector<1x8xf32>
    %387 = arith.mulf %385, %386 : vector<1x8xf32>
    %388 = arith.addf %384, %387 : vector<1x8xf32>
    %389 = vector.extract_strided_slice %381 {offsets = [0, 24], sizes = [1, 8], strides = [1, 1]} : vector<1x32xf32> to vector<1x8xf32>
    %390 = math.tanh %388 : vector<1x8xf32>
    %391 = arith.mulf %389, %390 : vector<1x8xf32>
    %392 = vector.extract_strided_slice %11 {offsets = [0, 8], sizes = [32, 1], strides = [1, 1]} : vector<32x20xf32> to vector<32x1xf32>
    %393 = vector.shape_cast %347 : vector<1x8xf32> to vector<1x8xf32>
    %394 = vector.broadcast %393 : vector<1x8xf32> to vector<32x8xf32>
    %395 = arith.mulf %394, %13 : vector<32x8xf32>
    %cst_58 = arith.constant dense<0.000000e+00> : vector<32xf32>
    %396 = vector.multi_reduction <add>, %395, %cst_58 [1] : vector<32x8xf32> to vector<32xf32>
    %397 = vector.shape_cast %396 : vector<32xf32> to vector<32x1xf32>
    %398 = arith.addf %392, %397 : vector<32x1xf32>
    %399 = arith.negf %398 : vector<32x1xf32>
    %400 = math.exp %399 : vector<32x1xf32>
    %cst_59 = arith.constant 1.000000e+00 : f32
    %401 = vector.broadcast %cst_59 : f32 to vector<32x1xf32>
    %402 = arith.addf %401, %400 : vector<32x1xf32>
    %403 = arith.divf %401, %402 : vector<32x1xf32>
    %404 = math.tanh %398 : vector<32x1xf32>
    %405 = vector.extract_strided_slice %403 {offsets = [8, 0], sizes = [8, 1], strides = [1, 1]} : vector<32x1xf32> to vector<8x1xf32>
    %406 = arith.mulf %405, %366 : vector<8x1xf32>
    %407 = vector.extract_strided_slice %403 {offsets = [0, 0], sizes = [8, 1], strides = [1, 1]} : vector<32x1xf32> to vector<8x1xf32>
    %408 = vector.extract_strided_slice %404 {offsets = [16, 0], sizes = [8, 1], strides = [1, 1]} : vector<32x1xf32> to vector<8x1xf32>
    %409 = arith.mulf %407, %408 : vector<8x1xf32>
    %410 = arith.addf %406, %409 : vector<8x1xf32>
    %411 = vector.extract_strided_slice %403 {offsets = [24, 0], sizes = [8, 1], strides = [1, 1]} : vector<32x1xf32> to vector<8x1xf32>
    %412 = math.tanh %410 : vector<8x1xf32>
    %413 = arith.mulf %411, %412 : vector<8x1xf32>
    %414 = vector.extract_strided_slice %5 {offsets = [9, 0], sizes = [1, 32], strides = [1, 1]} : vector<20x32xf32> to vector<1x32xf32>
    %415 = vector.shape_cast %413 : vector<8x1xf32> to vector<8x1xf32>
    %416 = vector.broadcast %415 : vector<8x1xf32> to vector<8x32xf32>
    %417 = arith.mulf %416, %12 : vector<8x32xf32>
    %cst_60 = arith.constant dense<0.000000e+00> : vector<32xf32>
    %418 = vector.multi_reduction <add>, %417, %cst_60 [0] : vector<8x32xf32> to vector<32xf32>
    %419 = vector.shape_cast %418 : vector<32xf32> to vector<1x32xf32>
    %420 = arith.addf %414, %419 : vector<1x32xf32>
    %421 = arith.negf %420 : vector<1x32xf32>
    %422 = math.exp %421 : vector<1x32xf32>
    %cst_61 = arith.constant 1.000000e+00 : f32
    %423 = vector.broadcast %cst_61 : f32 to vector<1x32xf32>
    %424 = arith.addf %423, %422 : vector<1x32xf32>
    %425 = arith.divf %423, %424 : vector<1x32xf32>
    %426 = math.tanh %420 : vector<1x32xf32>
    %427 = vector.extract_strided_slice %425 {offsets = [0, 8], sizes = [1, 8], strides = [1, 1]} : vector<1x32xf32> to vector<1x8xf32>
    %428 = arith.mulf %427, %388 : vector<1x8xf32>
    %429 = vector.extract_strided_slice %425 {offsets = [0, 0], sizes = [1, 8], strides = [1, 1]} : vector<1x32xf32> to vector<1x8xf32>
    %430 = vector.extract_strided_slice %426 {offsets = [0, 16], sizes = [1, 8], strides = [1, 1]} : vector<1x32xf32> to vector<1x8xf32>
    %431 = arith.mulf %429, %430 : vector<1x8xf32>
    %432 = arith.addf %428, %431 : vector<1x8xf32>
    %433 = vector.extract_strided_slice %425 {offsets = [0, 24], sizes = [1, 8], strides = [1, 1]} : vector<1x32xf32> to vector<1x8xf32>
    %434 = math.tanh %432 : vector<1x8xf32>
    %435 = arith.mulf %433, %434 : vector<1x8xf32>
    %436 = vector.extract_strided_slice %11 {offsets = [0, 9], sizes = [32, 1], strides = [1, 1]} : vector<32x20xf32> to vector<32x1xf32>
    %437 = vector.shape_cast %391 : vector<1x8xf32> to vector<1x8xf32>
    %438 = vector.broadcast %437 : vector<1x8xf32> to vector<32x8xf32>
    %439 = arith.mulf %438, %13 : vector<32x8xf32>
    %cst_62 = arith.constant dense<0.000000e+00> : vector<32xf32>
    %440 = vector.multi_reduction <add>, %439, %cst_62 [1] : vector<32x8xf32> to vector<32xf32>
    %441 = vector.shape_cast %440 : vector<32xf32> to vector<32x1xf32>
    %442 = arith.addf %436, %441 : vector<32x1xf32>
    %443 = arith.negf %442 : vector<32x1xf32>
    %444 = math.exp %443 : vector<32x1xf32>
    %cst_63 = arith.constant 1.000000e+00 : f32
    %445 = vector.broadcast %cst_63 : f32 to vector<32x1xf32>
    %446 = arith.addf %445, %444 : vector<32x1xf32>
    %447 = arith.divf %445, %446 : vector<32x1xf32>
    %448 = math.tanh %442 : vector<32x1xf32>
    %449 = vector.extract_strided_slice %447 {offsets = [8, 0], sizes = [8, 1], strides = [1, 1]} : vector<32x1xf32> to vector<8x1xf32>
    %450 = arith.mulf %449, %410 : vector<8x1xf32>
    %451 = vector.extract_strided_slice %447 {offsets = [0, 0], sizes = [8, 1], strides = [1, 1]} : vector<32x1xf32> to vector<8x1xf32>
    %452 = vector.extract_strided_slice %448 {offsets = [16, 0], sizes = [8, 1], strides = [1, 1]} : vector<32x1xf32> to vector<8x1xf32>
    %453 = arith.mulf %451, %452 : vector<8x1xf32>
    %454 = arith.addf %450, %453 : vector<8x1xf32>
    %455 = vector.extract_strided_slice %447 {offsets = [24, 0], sizes = [8, 1], strides = [1, 1]} : vector<32x1xf32> to vector<8x1xf32>
    %456 = math.tanh %454 : vector<8x1xf32>
    %457 = arith.mulf %455, %456 : vector<8x1xf32>
    %458 = vector.extract_strided_slice %5 {offsets = [10, 0], sizes = [1, 32], strides = [1, 1]} : vector<20x32xf32> to vector<1x32xf32>
    %459 = vector.shape_cast %457 : vector<8x1xf32> to vector<8x1xf32>
    %460 = vector.broadcast %459 : vector<8x1xf32> to vector<8x32xf32>
    %461 = arith.mulf %460, %12 : vector<8x32xf32>
    %cst_64 = arith.constant dense<0.000000e+00> : vector<32xf32>
    %462 = vector.multi_reduction <add>, %461, %cst_64 [0] : vector<8x32xf32> to vector<32xf32>
    %463 = vector.shape_cast %462 : vector<32xf32> to vector<1x32xf32>
    %464 = arith.addf %458, %463 : vector<1x32xf32>
    %465 = arith.negf %464 : vector<1x32xf32>
    %466 = math.exp %465 : vector<1x32xf32>
    %cst_65 = arith.constant 1.000000e+00 : f32
    %467 = vector.broadcast %cst_65 : f32 to vector<1x32xf32>
    %468 = arith.addf %467, %466 : vector<1x32xf32>
    %469 = arith.divf %467, %468 : vector<1x32xf32>
    %470 = math.tanh %464 : vector<1x32xf32>
    %471 = vector.extract_strided_slice %469 {offsets = [0, 8], sizes = [1, 8], strides = [1, 1]} : vector<1x32xf32> to vector<1x8xf32>
    %472 = arith.mulf %471, %432 : vector<1x8xf32>
    %473 = vector.extract_strided_slice %469 {offsets = [0, 0], sizes = [1, 8], strides = [1, 1]} : vector<1x32xf32> to vector<1x8xf32>
    %474 = vector.extract_strided_slice %470 {offsets = [0, 16], sizes = [1, 8], strides = [1, 1]} : vector<1x32xf32> to vector<1x8xf32>
    %475 = arith.mulf %473, %474 : vector<1x8xf32>
    %476 = arith.addf %472, %475 : vector<1x8xf32>
    %477 = vector.extract_strided_slice %469 {offsets = [0, 24], sizes = [1, 8], strides = [1, 1]} : vector<1x32xf32> to vector<1x8xf32>
    %478 = math.tanh %476 : vector<1x8xf32>
    %479 = arith.mulf %477, %478 : vector<1x8xf32>
    %480 = vector.extract_strided_slice %11 {offsets = [0, 10], sizes = [32, 1], strides = [1, 1]} : vector<32x20xf32> to vector<32x1xf32>
    %481 = vector.shape_cast %435 : vector<1x8xf32> to vector<1x8xf32>
    %482 = vector.broadcast %481 : vector<1x8xf32> to vector<32x8xf32>
    %483 = arith.mulf %482, %13 : vector<32x8xf32>
    %cst_66 = arith.constant dense<0.000000e+00> : vector<32xf32>
    %484 = vector.multi_reduction <add>, %483, %cst_66 [1] : vector<32x8xf32> to vector<32xf32>
    %485 = vector.shape_cast %484 : vector<32xf32> to vector<32x1xf32>
    %486 = arith.addf %480, %485 : vector<32x1xf32>
    %487 = arith.negf %486 : vector<32x1xf32>
    %488 = math.exp %487 : vector<32x1xf32>
    %cst_67 = arith.constant 1.000000e+00 : f32
    %489 = vector.broadcast %cst_67 : f32 to vector<32x1xf32>
    %490 = arith.addf %489, %488 : vector<32x1xf32>
    %491 = arith.divf %489, %490 : vector<32x1xf32>
    %492 = math.tanh %486 : vector<32x1xf32>
    %493 = vector.extract_strided_slice %491 {offsets = [8, 0], sizes = [8, 1], strides = [1, 1]} : vector<32x1xf32> to vector<8x1xf32>
    %494 = arith.mulf %493, %454 : vector<8x1xf32>
    %495 = vector.extract_strided_slice %491 {offsets = [0, 0], sizes = [8, 1], strides = [1, 1]} : vector<32x1xf32> to vector<8x1xf32>
    %496 = vector.extract_strided_slice %492 {offsets = [16, 0], sizes = [8, 1], strides = [1, 1]} : vector<32x1xf32> to vector<8x1xf32>
    %497 = arith.mulf %495, %496 : vector<8x1xf32>
    %498 = arith.addf %494, %497 : vector<8x1xf32>
    %499 = vector.extract_strided_slice %491 {offsets = [24, 0], sizes = [8, 1], strides = [1, 1]} : vector<32x1xf32> to vector<8x1xf32>
    %500 = math.tanh %498 : vector<8x1xf32>
    %501 = arith.mulf %499, %500 : vector<8x1xf32>
    %502 = vector.extract_strided_slice %5 {offsets = [11, 0], sizes = [1, 32], strides = [1, 1]} : vector<20x32xf32> to vector<1x32xf32>
    %503 = vector.shape_cast %501 : vector<8x1xf32> to vector<8x1xf32>
    %504 = vector.broadcast %503 : vector<8x1xf32> to vector<8x32xf32>
    %505 = arith.mulf %504, %12 : vector<8x32xf32>
    %cst_68 = arith.constant dense<0.000000e+00> : vector<32xf32>
    %506 = vector.multi_reduction <add>, %505, %cst_68 [0] : vector<8x32xf32> to vector<32xf32>
    %507 = vector.shape_cast %506 : vector<32xf32> to vector<1x32xf32>
    %508 = arith.addf %502, %507 : vector<1x32xf32>
    %509 = arith.negf %508 : vector<1x32xf32>
    %510 = math.exp %509 : vector<1x32xf32>
    %cst_69 = arith.constant 1.000000e+00 : f32
    %511 = vector.broadcast %cst_69 : f32 to vector<1x32xf32>
    %512 = arith.addf %511, %510 : vector<1x32xf32>
    %513 = arith.divf %511, %512 : vector<1x32xf32>
    %514 = math.tanh %508 : vector<1x32xf32>
    %515 = vector.extract_strided_slice %513 {offsets = [0, 8], sizes = [1, 8], strides = [1, 1]} : vector<1x32xf32> to vector<1x8xf32>
    %516 = arith.mulf %515, %476 : vector<1x8xf32>
    %517 = vector.extract_strided_slice %513 {offsets = [0, 0], sizes = [1, 8], strides = [1, 1]} : vector<1x32xf32> to vector<1x8xf32>
    %518 = vector.extract_strided_slice %514 {offsets = [0, 16], sizes = [1, 8], strides = [1, 1]} : vector<1x32xf32> to vector<1x8xf32>
    %519 = arith.mulf %517, %518 : vector<1x8xf32>
    %520 = arith.addf %516, %519 : vector<1x8xf32>
    %521 = vector.extract_strided_slice %513 {offsets = [0, 24], sizes = [1, 8], strides = [1, 1]} : vector<1x32xf32> to vector<1x8xf32>
    %522 = math.tanh %520 : vector<1x8xf32>
    %523 = arith.mulf %521, %522 : vector<1x8xf32>
    %524 = vector.extract_strided_slice %11 {offsets = [0, 11], sizes = [32, 1], strides = [1, 1]} : vector<32x20xf32> to vector<32x1xf32>
    %525 = vector.shape_cast %479 : vector<1x8xf32> to vector<1x8xf32>
    %526 = vector.broadcast %525 : vector<1x8xf32> to vector<32x8xf32>
    %527 = arith.mulf %526, %13 : vector<32x8xf32>
    %cst_70 = arith.constant dense<0.000000e+00> : vector<32xf32>
    %528 = vector.multi_reduction <add>, %527, %cst_70 [1] : vector<32x8xf32> to vector<32xf32>
    %529 = vector.shape_cast %528 : vector<32xf32> to vector<32x1xf32>
    %530 = arith.addf %524, %529 : vector<32x1xf32>
    %531 = arith.negf %530 : vector<32x1xf32>
    %532 = math.exp %531 : vector<32x1xf32>
    %cst_71 = arith.constant 1.000000e+00 : f32
    %533 = vector.broadcast %cst_71 : f32 to vector<32x1xf32>
    %534 = arith.addf %533, %532 : vector<32x1xf32>
    %535 = arith.divf %533, %534 : vector<32x1xf32>
    %536 = math.tanh %530 : vector<32x1xf32>
    %537 = vector.extract_strided_slice %535 {offsets = [8, 0], sizes = [8, 1], strides = [1, 1]} : vector<32x1xf32> to vector<8x1xf32>
    %538 = arith.mulf %537, %498 : vector<8x1xf32>
    %539 = vector.extract_strided_slice %535 {offsets = [0, 0], sizes = [8, 1], strides = [1, 1]} : vector<32x1xf32> to vector<8x1xf32>
    %540 = vector.extract_strided_slice %536 {offsets = [16, 0], sizes = [8, 1], strides = [1, 1]} : vector<32x1xf32> to vector<8x1xf32>
    %541 = arith.mulf %539, %540 : vector<8x1xf32>
    %542 = arith.addf %538, %541 : vector<8x1xf32>
    %543 = vector.extract_strided_slice %535 {offsets = [24, 0], sizes = [8, 1], strides = [1, 1]} : vector<32x1xf32> to vector<8x1xf32>
    %544 = math.tanh %542 : vector<8x1xf32>
    %545 = arith.mulf %543, %544 : vector<8x1xf32>
    %546 = vector.extract_strided_slice %5 {offsets = [12, 0], sizes = [1, 32], strides = [1, 1]} : vector<20x32xf32> to vector<1x32xf32>
    %547 = vector.shape_cast %545 : vector<8x1xf32> to vector<8x1xf32>
    %548 = vector.broadcast %547 : vector<8x1xf32> to vector<8x32xf32>
    %549 = arith.mulf %548, %12 : vector<8x32xf32>
    %cst_72 = arith.constant dense<0.000000e+00> : vector<32xf32>
    %550 = vector.multi_reduction <add>, %549, %cst_72 [0] : vector<8x32xf32> to vector<32xf32>
    %551 = vector.shape_cast %550 : vector<32xf32> to vector<1x32xf32>
    %552 = arith.addf %546, %551 : vector<1x32xf32>
    %553 = arith.negf %552 : vector<1x32xf32>
    %554 = math.exp %553 : vector<1x32xf32>
    %cst_73 = arith.constant 1.000000e+00 : f32
    %555 = vector.broadcast %cst_73 : f32 to vector<1x32xf32>
    %556 = arith.addf %555, %554 : vector<1x32xf32>
    %557 = arith.divf %555, %556 : vector<1x32xf32>
    %558 = math.tanh %552 : vector<1x32xf32>
    %559 = vector.extract_strided_slice %557 {offsets = [0, 8], sizes = [1, 8], strides = [1, 1]} : vector<1x32xf32> to vector<1x8xf32>
    %560 = arith.mulf %559, %520 : vector<1x8xf32>
    %561 = vector.extract_strided_slice %557 {offsets = [0, 0], sizes = [1, 8], strides = [1, 1]} : vector<1x32xf32> to vector<1x8xf32>
    %562 = vector.extract_strided_slice %558 {offsets = [0, 16], sizes = [1, 8], strides = [1, 1]} : vector<1x32xf32> to vector<1x8xf32>
    %563 = arith.mulf %561, %562 : vector<1x8xf32>
    %564 = arith.addf %560, %563 : vector<1x8xf32>
    %565 = vector.extract_strided_slice %557 {offsets = [0, 24], sizes = [1, 8], strides = [1, 1]} : vector<1x32xf32> to vector<1x8xf32>
    %566 = math.tanh %564 : vector<1x8xf32>
    %567 = arith.mulf %565, %566 : vector<1x8xf32>
    %568 = vector.extract_strided_slice %11 {offsets = [0, 12], sizes = [32, 1], strides = [1, 1]} : vector<32x20xf32> to vector<32x1xf32>
    %569 = vector.shape_cast %523 : vector<1x8xf32> to vector<1x8xf32>
    %570 = vector.broadcast %569 : vector<1x8xf32> to vector<32x8xf32>
    %571 = arith.mulf %570, %13 : vector<32x8xf32>
    %cst_74 = arith.constant dense<0.000000e+00> : vector<32xf32>
    %572 = vector.multi_reduction <add>, %571, %cst_74 [1] : vector<32x8xf32> to vector<32xf32>
    %573 = vector.shape_cast %572 : vector<32xf32> to vector<32x1xf32>
    %574 = arith.addf %568, %573 : vector<32x1xf32>
    %575 = arith.negf %574 : vector<32x1xf32>
    %576 = math.exp %575 : vector<32x1xf32>
    %cst_75 = arith.constant 1.000000e+00 : f32
    %577 = vector.broadcast %cst_75 : f32 to vector<32x1xf32>
    %578 = arith.addf %577, %576 : vector<32x1xf32>
    %579 = arith.divf %577, %578 : vector<32x1xf32>
    %580 = math.tanh %574 : vector<32x1xf32>
    %581 = vector.extract_strided_slice %579 {offsets = [8, 0], sizes = [8, 1], strides = [1, 1]} : vector<32x1xf32> to vector<8x1xf32>
    %582 = arith.mulf %581, %542 : vector<8x1xf32>
    %583 = vector.extract_strided_slice %579 {offsets = [0, 0], sizes = [8, 1], strides = [1, 1]} : vector<32x1xf32> to vector<8x1xf32>
    %584 = vector.extract_strided_slice %580 {offsets = [16, 0], sizes = [8, 1], strides = [1, 1]} : vector<32x1xf32> to vector<8x1xf32>
    %585 = arith.mulf %583, %584 : vector<8x1xf32>
    %586 = arith.addf %582, %585 : vector<8x1xf32>
    %587 = vector.extract_strided_slice %579 {offsets = [24, 0], sizes = [8, 1], strides = [1, 1]} : vector<32x1xf32> to vector<8x1xf32>
    %588 = math.tanh %586 : vector<8x1xf32>
    %589 = arith.mulf %587, %588 : vector<8x1xf32>
    %590 = vector.extract_strided_slice %5 {offsets = [13, 0], sizes = [1, 32], strides = [1, 1]} : vector<20x32xf32> to vector<1x32xf32>
    %591 = vector.shape_cast %589 : vector<8x1xf32> to vector<8x1xf32>
    %592 = vector.broadcast %591 : vector<8x1xf32> to vector<8x32xf32>
    %593 = arith.mulf %592, %12 : vector<8x32xf32>
    %cst_76 = arith.constant dense<0.000000e+00> : vector<32xf32>
    %594 = vector.multi_reduction <add>, %593, %cst_76 [0] : vector<8x32xf32> to vector<32xf32>
    %595 = vector.shape_cast %594 : vector<32xf32> to vector<1x32xf32>
    %596 = arith.addf %590, %595 : vector<1x32xf32>
    %597 = arith.negf %596 : vector<1x32xf32>
    %598 = math.exp %597 : vector<1x32xf32>
    %cst_77 = arith.constant 1.000000e+00 : f32
    %599 = vector.broadcast %cst_77 : f32 to vector<1x32xf32>
    %600 = arith.addf %599, %598 : vector<1x32xf32>
    %601 = arith.divf %599, %600 : vector<1x32xf32>
    %602 = math.tanh %596 : vector<1x32xf32>
    %603 = vector.extract_strided_slice %601 {offsets = [0, 8], sizes = [1, 8], strides = [1, 1]} : vector<1x32xf32> to vector<1x8xf32>
    %604 = arith.mulf %603, %564 : vector<1x8xf32>
    %605 = vector.extract_strided_slice %601 {offsets = [0, 0], sizes = [1, 8], strides = [1, 1]} : vector<1x32xf32> to vector<1x8xf32>
    %606 = vector.extract_strided_slice %602 {offsets = [0, 16], sizes = [1, 8], strides = [1, 1]} : vector<1x32xf32> to vector<1x8xf32>
    %607 = arith.mulf %605, %606 : vector<1x8xf32>
    %608 = arith.addf %604, %607 : vector<1x8xf32>
    %609 = vector.extract_strided_slice %601 {offsets = [0, 24], sizes = [1, 8], strides = [1, 1]} : vector<1x32xf32> to vector<1x8xf32>
    %610 = math.tanh %608 : vector<1x8xf32>
    %611 = arith.mulf %609, %610 : vector<1x8xf32>
    %612 = vector.extract_strided_slice %11 {offsets = [0, 13], sizes = [32, 1], strides = [1, 1]} : vector<32x20xf32> to vector<32x1xf32>
    %613 = vector.shape_cast %567 : vector<1x8xf32> to vector<1x8xf32>
    %614 = vector.broadcast %613 : vector<1x8xf32> to vector<32x8xf32>
    %615 = arith.mulf %614, %13 : vector<32x8xf32>
    %cst_78 = arith.constant dense<0.000000e+00> : vector<32xf32>
    %616 = vector.multi_reduction <add>, %615, %cst_78 [1] : vector<32x8xf32> to vector<32xf32>
    %617 = vector.shape_cast %616 : vector<32xf32> to vector<32x1xf32>
    %618 = arith.addf %612, %617 : vector<32x1xf32>
    %619 = arith.negf %618 : vector<32x1xf32>
    %620 = math.exp %619 : vector<32x1xf32>
    %cst_79 = arith.constant 1.000000e+00 : f32
    %621 = vector.broadcast %cst_79 : f32 to vector<32x1xf32>
    %622 = arith.addf %621, %620 : vector<32x1xf32>
    %623 = arith.divf %621, %622 : vector<32x1xf32>
    %624 = math.tanh %618 : vector<32x1xf32>
    %625 = vector.extract_strided_slice %623 {offsets = [8, 0], sizes = [8, 1], strides = [1, 1]} : vector<32x1xf32> to vector<8x1xf32>
    %626 = arith.mulf %625, %586 : vector<8x1xf32>
    %627 = vector.extract_strided_slice %623 {offsets = [0, 0], sizes = [8, 1], strides = [1, 1]} : vector<32x1xf32> to vector<8x1xf32>
    %628 = vector.extract_strided_slice %624 {offsets = [16, 0], sizes = [8, 1], strides = [1, 1]} : vector<32x1xf32> to vector<8x1xf32>
    %629 = arith.mulf %627, %628 : vector<8x1xf32>
    %630 = arith.addf %626, %629 : vector<8x1xf32>
    %631 = vector.extract_strided_slice %623 {offsets = [24, 0], sizes = [8, 1], strides = [1, 1]} : vector<32x1xf32> to vector<8x1xf32>
    %632 = math.tanh %630 : vector<8x1xf32>
    %633 = arith.mulf %631, %632 : vector<8x1xf32>
    %634 = vector.extract_strided_slice %5 {offsets = [14, 0], sizes = [1, 32], strides = [1, 1]} : vector<20x32xf32> to vector<1x32xf32>
    %635 = vector.shape_cast %633 : vector<8x1xf32> to vector<8x1xf32>
    %636 = vector.broadcast %635 : vector<8x1xf32> to vector<8x32xf32>
    %637 = arith.mulf %636, %12 : vector<8x32xf32>
    %cst_80 = arith.constant dense<0.000000e+00> : vector<32xf32>
    %638 = vector.multi_reduction <add>, %637, %cst_80 [0] : vector<8x32xf32> to vector<32xf32>
    %639 = vector.shape_cast %638 : vector<32xf32> to vector<1x32xf32>
    %640 = arith.addf %634, %639 : vector<1x32xf32>
    %641 = arith.negf %640 : vector<1x32xf32>
    %642 = math.exp %641 : vector<1x32xf32>
    %cst_81 = arith.constant 1.000000e+00 : f32
    %643 = vector.broadcast %cst_81 : f32 to vector<1x32xf32>
    %644 = arith.addf %643, %642 : vector<1x32xf32>
    %645 = arith.divf %643, %644 : vector<1x32xf32>
    %646 = math.tanh %640 : vector<1x32xf32>
    %647 = vector.extract_strided_slice %645 {offsets = [0, 8], sizes = [1, 8], strides = [1, 1]} : vector<1x32xf32> to vector<1x8xf32>
    %648 = arith.mulf %647, %608 : vector<1x8xf32>
    %649 = vector.extract_strided_slice %645 {offsets = [0, 0], sizes = [1, 8], strides = [1, 1]} : vector<1x32xf32> to vector<1x8xf32>
    %650 = vector.extract_strided_slice %646 {offsets = [0, 16], sizes = [1, 8], strides = [1, 1]} : vector<1x32xf32> to vector<1x8xf32>
    %651 = arith.mulf %649, %650 : vector<1x8xf32>
    %652 = arith.addf %648, %651 : vector<1x8xf32>
    %653 = vector.extract_strided_slice %645 {offsets = [0, 24], sizes = [1, 8], strides = [1, 1]} : vector<1x32xf32> to vector<1x8xf32>
    %654 = math.tanh %652 : vector<1x8xf32>
    %655 = arith.mulf %653, %654 : vector<1x8xf32>
    %656 = vector.extract_strided_slice %11 {offsets = [0, 14], sizes = [32, 1], strides = [1, 1]} : vector<32x20xf32> to vector<32x1xf32>
    %657 = vector.shape_cast %611 : vector<1x8xf32> to vector<1x8xf32>
    %658 = vector.broadcast %657 : vector<1x8xf32> to vector<32x8xf32>
    %659 = arith.mulf %658, %13 : vector<32x8xf32>
    %cst_82 = arith.constant dense<0.000000e+00> : vector<32xf32>
    %660 = vector.multi_reduction <add>, %659, %cst_82 [1] : vector<32x8xf32> to vector<32xf32>
    %661 = vector.shape_cast %660 : vector<32xf32> to vector<32x1xf32>
    %662 = arith.addf %656, %661 : vector<32x1xf32>
    %663 = arith.negf %662 : vector<32x1xf32>
    %664 = math.exp %663 : vector<32x1xf32>
    %cst_83 = arith.constant 1.000000e+00 : f32
    %665 = vector.broadcast %cst_83 : f32 to vector<32x1xf32>
    %666 = arith.addf %665, %664 : vector<32x1xf32>
    %667 = arith.divf %665, %666 : vector<32x1xf32>
    %668 = math.tanh %662 : vector<32x1xf32>
    %669 = vector.extract_strided_slice %667 {offsets = [8, 0], sizes = [8, 1], strides = [1, 1]} : vector<32x1xf32> to vector<8x1xf32>
    %670 = arith.mulf %669, %630 : vector<8x1xf32>
    %671 = vector.extract_strided_slice %667 {offsets = [0, 0], sizes = [8, 1], strides = [1, 1]} : vector<32x1xf32> to vector<8x1xf32>
    %672 = vector.extract_strided_slice %668 {offsets = [16, 0], sizes = [8, 1], strides = [1, 1]} : vector<32x1xf32> to vector<8x1xf32>
    %673 = arith.mulf %671, %672 : vector<8x1xf32>
    %674 = arith.addf %670, %673 : vector<8x1xf32>
    %675 = vector.extract_strided_slice %667 {offsets = [24, 0], sizes = [8, 1], strides = [1, 1]} : vector<32x1xf32> to vector<8x1xf32>
    %676 = math.tanh %674 : vector<8x1xf32>
    %677 = arith.mulf %675, %676 : vector<8x1xf32>
    %678 = vector.extract_strided_slice %5 {offsets = [15, 0], sizes = [1, 32], strides = [1, 1]} : vector<20x32xf32> to vector<1x32xf32>
    %679 = vector.shape_cast %677 : vector<8x1xf32> to vector<8x1xf32>
    %680 = vector.broadcast %679 : vector<8x1xf32> to vector<8x32xf32>
    %681 = arith.mulf %680, %12 : vector<8x32xf32>
    %cst_84 = arith.constant dense<0.000000e+00> : vector<32xf32>
    %682 = vector.multi_reduction <add>, %681, %cst_84 [0] : vector<8x32xf32> to vector<32xf32>
    %683 = vector.shape_cast %682 : vector<32xf32> to vector<1x32xf32>
    %684 = arith.addf %678, %683 : vector<1x32xf32>
    %685 = arith.negf %684 : vector<1x32xf32>
    %686 = math.exp %685 : vector<1x32xf32>
    %cst_85 = arith.constant 1.000000e+00 : f32
    %687 = vector.broadcast %cst_85 : f32 to vector<1x32xf32>
    %688 = arith.addf %687, %686 : vector<1x32xf32>
    %689 = arith.divf %687, %688 : vector<1x32xf32>
    %690 = math.tanh %684 : vector<1x32xf32>
    %691 = vector.extract_strided_slice %689 {offsets = [0, 8], sizes = [1, 8], strides = [1, 1]} : vector<1x32xf32> to vector<1x8xf32>
    %692 = arith.mulf %691, %652 : vector<1x8xf32>
    %693 = vector.extract_strided_slice %689 {offsets = [0, 0], sizes = [1, 8], strides = [1, 1]} : vector<1x32xf32> to vector<1x8xf32>
    %694 = vector.extract_strided_slice %690 {offsets = [0, 16], sizes = [1, 8], strides = [1, 1]} : vector<1x32xf32> to vector<1x8xf32>
    %695 = arith.mulf %693, %694 : vector<1x8xf32>
    %696 = arith.addf %692, %695 : vector<1x8xf32>
    %697 = vector.extract_strided_slice %689 {offsets = [0, 24], sizes = [1, 8], strides = [1, 1]} : vector<1x32xf32> to vector<1x8xf32>
    %698 = math.tanh %696 : vector<1x8xf32>
    %699 = arith.mulf %697, %698 : vector<1x8xf32>
    %700 = vector.extract_strided_slice %11 {offsets = [0, 15], sizes = [32, 1], strides = [1, 1]} : vector<32x20xf32> to vector<32x1xf32>
    %701 = vector.shape_cast %655 : vector<1x8xf32> to vector<1x8xf32>
    %702 = vector.broadcast %701 : vector<1x8xf32> to vector<32x8xf32>
    %703 = arith.mulf %702, %13 : vector<32x8xf32>
    %cst_86 = arith.constant dense<0.000000e+00> : vector<32xf32>
    %704 = vector.multi_reduction <add>, %703, %cst_86 [1] : vector<32x8xf32> to vector<32xf32>
    %705 = vector.shape_cast %704 : vector<32xf32> to vector<32x1xf32>
    %706 = arith.addf %700, %705 : vector<32x1xf32>
    %707 = arith.negf %706 : vector<32x1xf32>
    %708 = math.exp %707 : vector<32x1xf32>
    %cst_87 = arith.constant 1.000000e+00 : f32
    %709 = vector.broadcast %cst_87 : f32 to vector<32x1xf32>
    %710 = arith.addf %709, %708 : vector<32x1xf32>
    %711 = arith.divf %709, %710 : vector<32x1xf32>
    %712 = math.tanh %706 : vector<32x1xf32>
    %713 = vector.extract_strided_slice %711 {offsets = [8, 0], sizes = [8, 1], strides = [1, 1]} : vector<32x1xf32> to vector<8x1xf32>
    %714 = arith.mulf %713, %674 : vector<8x1xf32>
    %715 = vector.extract_strided_slice %711 {offsets = [0, 0], sizes = [8, 1], strides = [1, 1]} : vector<32x1xf32> to vector<8x1xf32>
    %716 = vector.extract_strided_slice %712 {offsets = [16, 0], sizes = [8, 1], strides = [1, 1]} : vector<32x1xf32> to vector<8x1xf32>
    %717 = arith.mulf %715, %716 : vector<8x1xf32>
    %718 = arith.addf %714, %717 : vector<8x1xf32>
    %719 = vector.extract_strided_slice %711 {offsets = [24, 0], sizes = [8, 1], strides = [1, 1]} : vector<32x1xf32> to vector<8x1xf32>
    %720 = math.tanh %718 : vector<8x1xf32>
    %721 = arith.mulf %719, %720 : vector<8x1xf32>
    %722 = vector.extract_strided_slice %5 {offsets = [16, 0], sizes = [1, 32], strides = [1, 1]} : vector<20x32xf32> to vector<1x32xf32>
    %723 = vector.shape_cast %721 : vector<8x1xf32> to vector<8x1xf32>
    %724 = vector.broadcast %723 : vector<8x1xf32> to vector<8x32xf32>
    %725 = arith.mulf %724, %12 : vector<8x32xf32>
    %cst_88 = arith.constant dense<0.000000e+00> : vector<32xf32>
    %726 = vector.multi_reduction <add>, %725, %cst_88 [0] : vector<8x32xf32> to vector<32xf32>
    %727 = vector.shape_cast %726 : vector<32xf32> to vector<1x32xf32>
    %728 = arith.addf %722, %727 : vector<1x32xf32>
    %729 = arith.negf %728 : vector<1x32xf32>
    %730 = math.exp %729 : vector<1x32xf32>
    %cst_89 = arith.constant 1.000000e+00 : f32
    %731 = vector.broadcast %cst_89 : f32 to vector<1x32xf32>
    %732 = arith.addf %731, %730 : vector<1x32xf32>
    %733 = arith.divf %731, %732 : vector<1x32xf32>
    %734 = math.tanh %728 : vector<1x32xf32>
    %735 = vector.extract_strided_slice %733 {offsets = [0, 8], sizes = [1, 8], strides = [1, 1]} : vector<1x32xf32> to vector<1x8xf32>
    %736 = arith.mulf %735, %696 : vector<1x8xf32>
    %737 = vector.extract_strided_slice %733 {offsets = [0, 0], sizes = [1, 8], strides = [1, 1]} : vector<1x32xf32> to vector<1x8xf32>
    %738 = vector.extract_strided_slice %734 {offsets = [0, 16], sizes = [1, 8], strides = [1, 1]} : vector<1x32xf32> to vector<1x8xf32>
    %739 = arith.mulf %737, %738 : vector<1x8xf32>
    %740 = arith.addf %736, %739 : vector<1x8xf32>
    %741 = vector.extract_strided_slice %733 {offsets = [0, 24], sizes = [1, 8], strides = [1, 1]} : vector<1x32xf32> to vector<1x8xf32>
    %742 = math.tanh %740 : vector<1x8xf32>
    %743 = arith.mulf %741, %742 : vector<1x8xf32>
    %744 = vector.extract_strided_slice %11 {offsets = [0, 16], sizes = [32, 1], strides = [1, 1]} : vector<32x20xf32> to vector<32x1xf32>
    %745 = vector.shape_cast %699 : vector<1x8xf32> to vector<1x8xf32>
    %746 = vector.broadcast %745 : vector<1x8xf32> to vector<32x8xf32>
    %747 = arith.mulf %746, %13 : vector<32x8xf32>
    %cst_90 = arith.constant dense<0.000000e+00> : vector<32xf32>
    %748 = vector.multi_reduction <add>, %747, %cst_90 [1] : vector<32x8xf32> to vector<32xf32>
    %749 = vector.shape_cast %748 : vector<32xf32> to vector<32x1xf32>
    %750 = arith.addf %744, %749 : vector<32x1xf32>
    %751 = arith.negf %750 : vector<32x1xf32>
    %752 = math.exp %751 : vector<32x1xf32>
    %cst_91 = arith.constant 1.000000e+00 : f32
    %753 = vector.broadcast %cst_91 : f32 to vector<32x1xf32>
    %754 = arith.addf %753, %752 : vector<32x1xf32>
    %755 = arith.divf %753, %754 : vector<32x1xf32>
    %756 = math.tanh %750 : vector<32x1xf32>
    %757 = vector.extract_strided_slice %755 {offsets = [8, 0], sizes = [8, 1], strides = [1, 1]} : vector<32x1xf32> to vector<8x1xf32>
    %758 = arith.mulf %757, %718 : vector<8x1xf32>
    %759 = vector.extract_strided_slice %755 {offsets = [0, 0], sizes = [8, 1], strides = [1, 1]} : vector<32x1xf32> to vector<8x1xf32>
    %760 = vector.extract_strided_slice %756 {offsets = [16, 0], sizes = [8, 1], strides = [1, 1]} : vector<32x1xf32> to vector<8x1xf32>
    %761 = arith.mulf %759, %760 : vector<8x1xf32>
    %762 = arith.addf %758, %761 : vector<8x1xf32>
    %763 = vector.extract_strided_slice %755 {offsets = [24, 0], sizes = [8, 1], strides = [1, 1]} : vector<32x1xf32> to vector<8x1xf32>
    %764 = math.tanh %762 : vector<8x1xf32>
    %765 = arith.mulf %763, %764 : vector<8x1xf32>
    %766 = vector.extract_strided_slice %5 {offsets = [17, 0], sizes = [1, 32], strides = [1, 1]} : vector<20x32xf32> to vector<1x32xf32>
    %767 = vector.shape_cast %765 : vector<8x1xf32> to vector<8x1xf32>
    %768 = vector.broadcast %767 : vector<8x1xf32> to vector<8x32xf32>
    %769 = arith.mulf %768, %12 : vector<8x32xf32>
    %cst_92 = arith.constant dense<0.000000e+00> : vector<32xf32>
    %770 = vector.multi_reduction <add>, %769, %cst_92 [0] : vector<8x32xf32> to vector<32xf32>
    %771 = vector.shape_cast %770 : vector<32xf32> to vector<1x32xf32>
    %772 = arith.addf %766, %771 : vector<1x32xf32>
    %773 = arith.negf %772 : vector<1x32xf32>
    %774 = math.exp %773 : vector<1x32xf32>
    %cst_93 = arith.constant 1.000000e+00 : f32
    %775 = vector.broadcast %cst_93 : f32 to vector<1x32xf32>
    %776 = arith.addf %775, %774 : vector<1x32xf32>
    %777 = arith.divf %775, %776 : vector<1x32xf32>
    %778 = math.tanh %772 : vector<1x32xf32>
    %779 = vector.extract_strided_slice %777 {offsets = [0, 8], sizes = [1, 8], strides = [1, 1]} : vector<1x32xf32> to vector<1x8xf32>
    %780 = arith.mulf %779, %740 : vector<1x8xf32>
    %781 = vector.extract_strided_slice %777 {offsets = [0, 0], sizes = [1, 8], strides = [1, 1]} : vector<1x32xf32> to vector<1x8xf32>
    %782 = vector.extract_strided_slice %778 {offsets = [0, 16], sizes = [1, 8], strides = [1, 1]} : vector<1x32xf32> to vector<1x8xf32>
    %783 = arith.mulf %781, %782 : vector<1x8xf32>
    %784 = arith.addf %780, %783 : vector<1x8xf32>
    %785 = vector.extract_strided_slice %777 {offsets = [0, 24], sizes = [1, 8], strides = [1, 1]} : vector<1x32xf32> to vector<1x8xf32>
    %786 = math.tanh %784 : vector<1x8xf32>
    %787 = arith.mulf %785, %786 : vector<1x8xf32>
    %788 = vector.extract_strided_slice %11 {offsets = [0, 17], sizes = [32, 1], strides = [1, 1]} : vector<32x20xf32> to vector<32x1xf32>
    %789 = vector.shape_cast %743 : vector<1x8xf32> to vector<1x8xf32>
    %790 = vector.broadcast %789 : vector<1x8xf32> to vector<32x8xf32>
    %791 = arith.mulf %790, %13 : vector<32x8xf32>
    %cst_94 = arith.constant dense<0.000000e+00> : vector<32xf32>
    %792 = vector.multi_reduction <add>, %791, %cst_94 [1] : vector<32x8xf32> to vector<32xf32>
    %793 = vector.shape_cast %792 : vector<32xf32> to vector<32x1xf32>
    %794 = arith.addf %788, %793 : vector<32x1xf32>
    %795 = arith.negf %794 : vector<32x1xf32>
    %796 = math.exp %795 : vector<32x1xf32>
    %cst_95 = arith.constant 1.000000e+00 : f32
    %797 = vector.broadcast %cst_95 : f32 to vector<32x1xf32>
    %798 = arith.addf %797, %796 : vector<32x1xf32>
    %799 = arith.divf %797, %798 : vector<32x1xf32>
    %800 = math.tanh %794 : vector<32x1xf32>
    %801 = vector.extract_strided_slice %799 {offsets = [8, 0], sizes = [8, 1], strides = [1, 1]} : vector<32x1xf32> to vector<8x1xf32>
    %802 = arith.mulf %801, %762 : vector<8x1xf32>
    %803 = vector.extract_strided_slice %799 {offsets = [0, 0], sizes = [8, 1], strides = [1, 1]} : vector<32x1xf32> to vector<8x1xf32>
    %804 = vector.extract_strided_slice %800 {offsets = [16, 0], sizes = [8, 1], strides = [1, 1]} : vector<32x1xf32> to vector<8x1xf32>
    %805 = arith.mulf %803, %804 : vector<8x1xf32>
    %806 = arith.addf %802, %805 : vector<8x1xf32>
    %807 = vector.extract_strided_slice %799 {offsets = [24, 0], sizes = [8, 1], strides = [1, 1]} : vector<32x1xf32> to vector<8x1xf32>
    %808 = math.tanh %806 : vector<8x1xf32>
    %809 = arith.mulf %807, %808 : vector<8x1xf32>
    %810 = vector.extract_strided_slice %5 {offsets = [18, 0], sizes = [1, 32], strides = [1, 1]} : vector<20x32xf32> to vector<1x32xf32>
    %811 = vector.shape_cast %809 : vector<8x1xf32> to vector<8x1xf32>
    %812 = vector.broadcast %811 : vector<8x1xf32> to vector<8x32xf32>
    %813 = arith.mulf %812, %12 : vector<8x32xf32>
    %cst_96 = arith.constant dense<0.000000e+00> : vector<32xf32>
    %814 = vector.multi_reduction <add>, %813, %cst_96 [0] : vector<8x32xf32> to vector<32xf32>
    %815 = vector.shape_cast %814 : vector<32xf32> to vector<1x32xf32>
    %816 = arith.addf %810, %815 : vector<1x32xf32>
    %817 = arith.negf %816 : vector<1x32xf32>
    %818 = math.exp %817 : vector<1x32xf32>
    %cst_97 = arith.constant 1.000000e+00 : f32
    %819 = vector.broadcast %cst_97 : f32 to vector<1x32xf32>
    %820 = arith.addf %819, %818 : vector<1x32xf32>
    %821 = arith.divf %819, %820 : vector<1x32xf32>
    %822 = math.tanh %816 : vector<1x32xf32>
    %823 = vector.extract_strided_slice %821 {offsets = [0, 8], sizes = [1, 8], strides = [1, 1]} : vector<1x32xf32> to vector<1x8xf32>
    %824 = arith.mulf %823, %784 : vector<1x8xf32>
    %825 = vector.extract_strided_slice %821 {offsets = [0, 0], sizes = [1, 8], strides = [1, 1]} : vector<1x32xf32> to vector<1x8xf32>
    %826 = vector.extract_strided_slice %822 {offsets = [0, 16], sizes = [1, 8], strides = [1, 1]} : vector<1x32xf32> to vector<1x8xf32>
    %827 = arith.mulf %825, %826 : vector<1x8xf32>
    %828 = arith.addf %824, %827 : vector<1x8xf32>
    %829 = vector.extract_strided_slice %821 {offsets = [0, 24], sizes = [1, 8], strides = [1, 1]} : vector<1x32xf32> to vector<1x8xf32>
    %830 = math.tanh %828 : vector<1x8xf32>
    %831 = arith.mulf %829, %830 : vector<1x8xf32>
    %832 = vector.extract_strided_slice %11 {offsets = [0, 18], sizes = [32, 1], strides = [1, 1]} : vector<32x20xf32> to vector<32x1xf32>
    %833 = vector.shape_cast %787 : vector<1x8xf32> to vector<1x8xf32>
    %834 = vector.broadcast %833 : vector<1x8xf32> to vector<32x8xf32>
    %835 = arith.mulf %834, %13 : vector<32x8xf32>
    %cst_98 = arith.constant dense<0.000000e+00> : vector<32xf32>
    %836 = vector.multi_reduction <add>, %835, %cst_98 [1] : vector<32x8xf32> to vector<32xf32>
    %837 = vector.shape_cast %836 : vector<32xf32> to vector<32x1xf32>
    %838 = arith.addf %832, %837 : vector<32x1xf32>
    %839 = arith.negf %838 : vector<32x1xf32>
    %840 = math.exp %839 : vector<32x1xf32>
    %cst_99 = arith.constant 1.000000e+00 : f32
    %841 = vector.broadcast %cst_99 : f32 to vector<32x1xf32>
    %842 = arith.addf %841, %840 : vector<32x1xf32>
    %843 = arith.divf %841, %842 : vector<32x1xf32>
    %844 = math.tanh %838 : vector<32x1xf32>
    %845 = vector.extract_strided_slice %843 {offsets = [8, 0], sizes = [8, 1], strides = [1, 1]} : vector<32x1xf32> to vector<8x1xf32>
    %846 = arith.mulf %845, %806 : vector<8x1xf32>
    %847 = vector.extract_strided_slice %843 {offsets = [0, 0], sizes = [8, 1], strides = [1, 1]} : vector<32x1xf32> to vector<8x1xf32>
    %848 = vector.extract_strided_slice %844 {offsets = [16, 0], sizes = [8, 1], strides = [1, 1]} : vector<32x1xf32> to vector<8x1xf32>
    %849 = arith.mulf %847, %848 : vector<8x1xf32>
    %850 = arith.addf %846, %849 : vector<8x1xf32>
    %851 = vector.extract_strided_slice %843 {offsets = [24, 0], sizes = [8, 1], strides = [1, 1]} : vector<32x1xf32> to vector<8x1xf32>
    %852 = math.tanh %850 : vector<8x1xf32>
    %853 = arith.mulf %851, %852 : vector<8x1xf32>
    %854 = vector.extract_strided_slice %5 {offsets = [19, 0], sizes = [1, 32], strides = [1, 1]} : vector<20x32xf32> to vector<1x32xf32>
    %855 = vector.shape_cast %853 : vector<8x1xf32> to vector<8x1xf32>
    %856 = vector.broadcast %855 : vector<8x1xf32> to vector<8x32xf32>
    %857 = arith.mulf %856, %12 : vector<8x32xf32>
    %cst_100 = arith.constant dense<0.000000e+00> : vector<32xf32>
    %858 = vector.multi_reduction <add>, %857, %cst_100 [0] : vector<8x32xf32> to vector<32xf32>
    %859 = vector.shape_cast %858 : vector<32xf32> to vector<1x32xf32>
    %860 = arith.addf %854, %859 : vector<1x32xf32>
    %861 = arith.negf %860 : vector<1x32xf32>
    %862 = math.exp %861 : vector<1x32xf32>
    %cst_101 = arith.constant 1.000000e+00 : f32
    %863 = vector.broadcast %cst_101 : f32 to vector<1x32xf32>
    %864 = arith.addf %863, %862 : vector<1x32xf32>
    %865 = arith.divf %863, %864 : vector<1x32xf32>
    %866 = math.tanh %860 : vector<1x32xf32>
    %867 = vector.extract_strided_slice %865 {offsets = [0, 8], sizes = [1, 8], strides = [1, 1]} : vector<1x32xf32> to vector<1x8xf32>
    %868 = arith.mulf %867, %828 : vector<1x8xf32>
    %869 = vector.extract_strided_slice %865 {offsets = [0, 0], sizes = [1, 8], strides = [1, 1]} : vector<1x32xf32> to vector<1x8xf32>
    %870 = vector.extract_strided_slice %866 {offsets = [0, 16], sizes = [1, 8], strides = [1, 1]} : vector<1x32xf32> to vector<1x8xf32>
    %871 = arith.mulf %869, %870 : vector<1x8xf32>
    %872 = arith.addf %868, %871 : vector<1x8xf32>
    %873 = vector.extract_strided_slice %865 {offsets = [0, 24], sizes = [1, 8], strides = [1, 1]} : vector<1x32xf32> to vector<1x8xf32>
    %874 = math.tanh %872 : vector<1x8xf32>
    %875 = arith.mulf %873, %874 : vector<1x8xf32>
    %876 = tpu.concatenate %39, %83, %127, %171, %215, %259, %303, %347, %391, %435, %479, %523, %567, %611, %655, %699 in 0 : vector<1x8xf32>, vector<1x8xf32>, vector<1x8xf32>, vector<1x8xf32>, vector<1x8xf32>, vector<1x8xf32>, vector<1x8xf32>, vector<1x8xf32>, vector<1x8xf32>, vector<1x8xf32>, vector<1x8xf32>, vector<1x8xf32>, vector<1x8xf32>, vector<1x8xf32>, vector<1x8xf32>, vector<1x8xf32> -> vector<16x8xf32>
    %877 = tpu.concatenate %743, %787, %831, %875 in 0 : vector<1x8xf32>, vector<1x8xf32>, vector<1x8xf32>, vector<1x8xf32> -> vector<4x8xf32>
    %878 = tpu.concatenate %876, %877 in 0 : vector<16x8xf32>, vector<4x8xf32> -> vector<20x8xf32>
    %c0_102 = arith.constant 0 : index
    %c0_103 = arith.constant 0 : index
    %879 = vector.load %arg12[%c0_102, %c0_103] : memref<20x8xf32, #tpu.memory_space<vmem>>, vector<20x8xf32>
    tpu.vector_store %arg12[%c0_102, %c0_103], %878 {strides = array<i32>} : memref<20x8xf32, #tpu.memory_space<vmem>>, vector<20x8xf32>,
    %c0_104 = arith.constant 0 : index
    %c0_105 = arith.constant 0 : index
    %880 = vector.load %arg13[%c0_104, %c0_105] : memref<1x8xf32, #tpu.memory_space<vmem>>, vector<1x8xf32>
    tpu.vector_store %arg13[%c0_104, %c0_105], %872 {strides = array<i32>} : memref<1x8xf32, #tpu.memory_space<vmem>>, vector<1x8xf32>,
    return
  }
}

</mosaic_0001>

<bundles_post_ra>
// kernel: lstm_forward.1
= control target key start
LH: loop header
LB: loop body
LE: loop exit
PB: predicated region body
PF: predicated region fallthrough
CT: control target
= control target key end

     0   :  { %v3118_v3 = vmov 0   ;;  %v3119_v4 = vmov 0.0   ;;  %vm55_vm0 = vcmask 64512   ;;  %vm3120_vm1 = vmmov 0   ;;  %s3993_s0 = inlined_call_operand.vmem [shape: f32[20,8], index: 0, kind: input, shape index: {}]   ;;  %s3994_s1 = inlined_call_operand.vmem [shape: f32[8,20], index: 1, kind: input, shape index: {}]   ;;  %s3995_s2 = inlined_call_operand.vmem [shape: f32[1,8], index: 2, kind: input, shape index: {}]   ;;  %s3996_s3 = inlined_call_operand.vmem [shape: f32[8,1], index: 3, kind: input, shape index: {}]   ;;  %s3997_s4 = inlined_call_operand.vmem [shape: f32[1,8], index: 4, kind: input, shape index: {}]   ;;  %s3998_s5 = inlined_call_operand.vmem [shape: f32[8,1], index: 5, kind: input, shape index: {}]   ;;  %s3999_s6 = inlined_call_operand.vmem [shape: f32[8,32], index: 6, kind: input, shape index: {}]   ;;  %s4000_s7 = inlined_call_operand.vmem [shape: f32[32,8], index: 7, kind: input, shape index: {}]   ;;  %s4001_s8 = inlined_call_operand.vmem [shape: f32[8,32], index: 8, kind: input, shape index: {}]   ;;  %s4002_s9 = inlined_call_operand.vmem [shape: f32[32,8], index: 9, kind: input, shape index: {}]   ;;  %s4003_s10 = inlined_call_operand.vmem [shape: f32[1,32], index: 10, kind: input, shape index: {}]   ;;  %s4004_s11 = inlined_call_operand.vmem [shape: f32[32,1], index: 11, kind: input, shape index: {}]   ;;  %s4005_s12 = inlined_call_operand.vmem [shape: f32[20,8], index: 12, kind: output, shape index: {0}]   ;;  %s4006_s13 = inlined_call_operand.hbm [shape: f32[1,8], index: 13, kind: output, shape index: {1}]  }
   0x1   :  { %v149_v0 = vld [vmem:[%s3994_s1] sm:$0xff]  ;;  %2604 = vset.pattern.permute.xlu1 %v3118_v3  ;;  %2556 = vmatprep.subr.mxu0 %v3119_v4  ;;  %v146_v7 = vld [vmem:[%s4000_s7 + $0x8] sm:$0xff]  ;;  %v147_v9 = vld [vmem:[%s4000_s7 + $0x10] sm:$0xff] }
   0x2   :  { %v150_v1 = vld [vmem:[%s4004_s11] sm:$0xff]  ;;  %2567 = vmatprep.subr.mxu1 %v149_v0  ;;  %v151_v8 = vld [vmem:[%s4004_s11 + $0x8] sm:$0xff]  ;;  %2558 = vmatprep.mubr.msk.f32.mxu0 %vm3120_vm1, %v3119_v4  ;;  %v3265_v15 = vld [vmem:[%s4002_s9 + $0x10] sm:$0xff] }
   0x3   :  { %v47_v2 = vld [vmem:[%s3999_s6] sm:$0xff]  ;;  %156 = vperm.xlu1 %2604, %v150_v1   ;;  %2568 = vmatpush3.msra.mxu1 %v149_v0  ;;  %v3257_v13 = vld [vmem:[%s4002_s9 + $0x8] sm:$0xff] }
   0x4   :  { %v145_v5 = vld [vmem:[%s4000_s7] sm:$0xff]  ;;  %2557 = vmatpush3.msra.mxu0 %v47_v2 }
   0x5   :  { %v44_v6 = vld [vmem:[%s3993_s0] sm:$0xff]  ;;  %2569 = vmatprep.mubr.msk.f32.mxu1 %vm55_vm0, %v145_v5 }
   0x6   :  { %v3247_v10 = vld [vmem:[%s4002_s9] sm:$0xff]  ;;  %2559 = vmatmul.mubr.msk.f32.vlgmr.msra.gmra.mrb[0].mxu0 %vm55_vm0, %v44_v6  ;;  %2570 = vmatmul.mubr.msk.f32.vlgmr.msra.gmra.mrb[0].mxu1 %vm55_vm0, %v146_v7 }
   0x7   :  { %v2470_v11 = vld [vmem:[%s3995_s2] ss:$0 sm:$0xff] }
   0x8   :  { %v333_v12 = vmul.f32 %v2470_v11, %v3247_v10  ;;  %v334_v14 = vmul.f32 %v2470_v11, %v3257_v13 }
   0x9   :  { %19 = vsyncpa [#allocation3], 0  ;;  %161 = vperm.xlu1 %2604, %v151_v8   ;;  %2572 = vmatprep.mubr.msk.f32.mxu1 %vm55_vm0, %v147_v9  ;;  %v148_v16 = vld [vmem:[%s4000_s7 + $0x18] sm:$0xff]  ;;  %v335_v19 = vmul.f32 %v2470_v11, %v3265_v15  ;;  %v152_v22 = vld [vmem:[%s4004_s11 + $0x10] sm:$0xff]  ;;  %vm286_vm2 = vcmask 261120   ;;  %s3121_s20 = smov 112  }
   0xa   :  { %v337_v17 = vsel %vm55_vm0, %v333_v12, 0.0  ;;  %2561 = vmatprep.mubr.msk.f32.mxu0 %vm3120_vm1, %v3119_v4  ;;  %v340_v18 = vsel %vm55_vm0, %v334_v14, 0.0  ;;  %2605 = vset.pattern.permute.xlu0 %v3118_v3  ;;  %v3281_v21 = vld [vmem:[%s4002_s9 + $0x18] sm:$0xff]  ;;  %v277_v24 = vld [vmem:[%s3996_s3] sm:$0xff]  ;;  %s3122_s25 = smov 8   ;;  %s3125_s26 = smov 104  }
   0xb   :  { %338 = vadd.xlane.f32.xlu0 %v337_v17  ;;  %2573 = vmatmul.mubr.msk.f32.gmra.mrb[2].mxu1 %vm55_vm0, %v148_v16  ;;  %v343_v20 = vsel %vm55_vm0, %v335_v19, 0.0  ;;  %v336_v23 = vmul.f32 %v2470_v11, %v3281_v21  ;;  %v153_v26 = vld [vmem:[%s4004_s11 + $0x18] sm:$0xff]  ;;  %v3297_v31 = vld [vmem:[%s4001_s8] sm:$0xff]  ;;  %s3126_s27 = smov 1   ;;  %vm2396_vm3 = vcmask 1040384   ;;  %vm2398_vm4 = vcmask 1041408  }
   0xc   :  { %v2460_v42 = vld [vmem:[%s4003_s10] ss:$0 sm:$0xff]  ;;  %vm2400_vm5 = vcmask 1042432   ;;  %vm2402_vm6 = vcmask 1043456   ;;  %vm2404_vm7 = vcmask 1044480   ;;  %vm2406_vm8 = vcmask 1045504  }
   0xd   :  { %v346_v25 = vsel %vm55_vm0, %v336_v23, 0.0  ;;  %v279_v9 = vld [vmem:[%s3998_s5] sm:$0xff]  ;;  %s3124_s5 = smov 24   ;;  %vm2408_vm9 = vcmask 1046528   ;;  %vm2440_vm10 = vcmask 60419   ;;  %s3146_s9 = smov [#allocation2]  }
   0xe   :  { %v2469_v23 = vld [vmem:[%s3997_s4] ss:$0 sm:$0xff]  ;;  %s3123_s4 = smov 16   ;;  %s2450_s19 = sshll.u32 %s3146_s9, 4  ;;  %s2451_s19 = int_to_ptr.vmem [resolvable:$true] %s2450_s19 }
   0xf   :  { %341 = vadd.xlane.f32.xlu0 %v340_v18  ;;  %s3094_s3 = scalar_lea.vmem %s2451_s19, 16  ;;  %s3098_s11 = scalar_lea.vmem %s2451_s19, 32 }
  0x10   :  { %p3095_p0 = scmp.ne.s32.totalorder %s2451_s19, %s3094_s3  ;;  %p3099_p1 = scmp.lt.s32.totalorder %s2451_s19, %s2451_s19 }
  0x11   :  { %p3100_p2 = scmp.lt.s32.totalorder %s3098_s11, %s3094_s3 }
  0x13   :  { %344 = vadd.xlane.f32.xlu0 %v343_v20  ;;  %p3101_p3 = por %p3100_p2, %p3099_p1 }
  0x15   :  { %p3102_p4 = pnand %p3101_p3, %p3095_p0 }
  0x29   :  { %166 = vperm.xlu0 %2605, %v152_v22  }
  0x2d   :  { %282 = vperm.xlu0 %2605, %v277_v24   ;;  %347 = vadd.xlane.f32.xlu1 %v346_v25 }
  0x3e   :  { %171 = vperm.xlu1 %2604, %v153_v26  }
  0x82   :  { %v157_v38 = vpop.permute.xlu1 %156 }
  0x88   :  { %v162_v40 = vpop.permute.xlu1 %161 }
  0x98   :  { %v339_v27 = vpop.xlane.xlu0 %338 }
  0x9c   :  { %v342_v28 = vpop.xlane.xlu0 %341 }
  0xa0   :  { %v345_v29 = vpop.xlane.xlu0 %344 }
  0xa8   :  { %v167_v30 = vpop.permute.xlu0 %166 }
  0xac   :  { %v283_v32 = vpop.permute.xlu0 %282 }
  0xad   :  { %v285_v33 = vmul.f32 %v283_v32, %v3297_v31 }
  0xaf   :  { %v287_v34 = vsel %vm286_vm2, %v285_v33, 0.0 }
  0xb0   :  { %v288_v35 = vrot.slane %v287_v34, 4 }
  0xb2   :  { %v289_v36 = vadd.f32 %v288_v35, %v287_v34 }
  0xb4   :  { %v290_v37 = vrot.slane %v289_v36, 2 }
  0xb6   :  { %v291_v39 = vadd.f32 %v290_v37, %v289_v36 }
  0xb8   :  { %v292_v41 = vrot.slane %v291_v39, 1 }
  0xba   :  { %v348_v43 = vpop.xlane.xlu1 %347  ;;  %v293_v44 = vadd.f32 %v292_v41, %v291_v39 }
  0xbe   :  { %v172_v58 = vpop.permute.xlu1 %171 }
  0xd9   :  { %v131_v45 = vpop.f32.mrb[0].mxu0  ;;  %v2571_v46 = vpop.f32.mrb[0].mxu1 }
  0xda   :  { %v3304_v47 = vadd.f32 %v2460_v42, %v131_v45  ;;  %v3306_v48 = vadd.f32 %v2571_v46, %v162_v40  ;;  %v252_v49 = vpop.f32.mrb[1].mxu1  ;;  %v2560_v50 = vpop.f32.mrb[1].mxu0 }
  0xdb   :  { %v3308_v51 = vadd.f32 %v252_v49, %v157_v38 }
  0xdc   :  { %v294_v52 = vadd.f32 %v293_v44, %v3304_v47  ;;  %v350_v53 = vadd.f32 %v342_v28, %v3306_v48 }
  0xdd   :  { %v349_v55 = vadd.f32 %v339_v27, %v3308_v51 }
  0xde   :  { %v2574_v54 = vpop.f32.mrb[2].mxu1  ;;  %2625 = vtanh.f32 %v294_v52  ;;  %v2472_v57 = vmul.f32 -1.442695, %v350_v53  ;;  %v2468_v24 = vmul.f32 -1.442695, %v294_v52 }
  0xdf   :  { %v262_v56 = vpop.f32.mrb[3].mxu1  ;;  %v2471_v59 = vmul.f32 -1.442695, %v349_v55  ;;  %v3313_v60 = vadd.f32 %v2574_v54, %v172_v58 }
  0xe0   :  { %v3316_v62 = vadd.f32 %v262_v56, %v167_v30  ;;  %v418_v56 = vlaneseq }
  0xe1   :  { %2627 = vpow2.f32 %v2471_v59  ;;  %v352_v61 = vadd.f32 %v348_v43, %v3313_v60 }
  0xe2   :  { %2629 = vpow2.f32 %v2472_v57  ;;  %v351_v1 = vadd.f32 %v345_v29, %v3316_v62  ;;  %v3341_v57 = vshrl.u32 %v418_v56, 7 }
  0xe3   :  { %v2473_v0 = vmul.f32 -1.442695, %v352_v61 }
  0xe5   :  { %2631 = vpow2.f32 %v2473_v0 }
  0xe6   :  { %2633 = vtanh.f32 %v351_v1 }
  0xe8   :  { %v2626_v63 = vpop.eup %2625 }
  0xe9   :  { %312 = vrot.lane.b32.xlu1 %v2626_v63, %s3121_s20 }
  0xeb   :  { %v2628_v2 = vpop.eup %2627 }
  0xec   :  { %v2630_v3 = vpop.eup %2629  ;;  %v362_v5 = vadd.f32 1.0, %v2628_v2 }
  0xed   :  { %v363_v6 = vadd.f32 1.0, %v2630_v3 }
  0xee   :  { %2635 = vrcp.f32 %v362_v5 }
  0xef   :  { %2637 = vrcp.f32 %v363_v6  ;;  %v2632_v7 = vpop.eup %2631 }
  0xf0   :  { %v2634_v8 = vpop.eup %2633  ;;  %v364_v14 = vadd.f32 1.0, %v2632_v7 }
  0xf2   :  { %2639 = vrcp.f32 %v364_v14 }
  0xf8   :  { %v2636_v11 = vpop.eup %2635 }
  0xf9   :  { %v2638_v12 = vpop.eup %2637  ;;  %v373_v16 = vmul.f32 %v2636_v11, %v2634_v8 }
  0xfa   :  { %v372_v17 = vmul.f32 %v2638_v12, %v279_v9 }
  0xfc   :  { %v3323_v18 = vadd.f32 %v373_v16, %v372_v17  ;;  %v2640_v19 = vpop.eup %2639 }
  0xfe   :  { %2641 = vtanh.f32 %v3323_v18 }
  0xff   :  { %2643 = vpow2.f32 %v2468_v24 }
 0x108   :  { %v2642_v20 = vpop.eup %2641 }
 0x109   :  { %v376_v22 = vmul.f32 %v2642_v20, %v2640_v19  ;;  %v2644_v25 = vpop.eup %2643  ;;  %v3373_v19 = vsub.s32 1, %v3341_v57 }
 0x10a   :  { %v298_v26 = vadd.f32 1.0, %v2644_v25 }
 0x10b   :  { %379 = vperm.xlu0 %2605, %v376_v22  }
 0x10c   :  { %2645 = vrcp.f32 %v298_v26 }
 0x10f   :  { %307 = vrot.lane.b32.xlu0 %v2469_v23, %s3122_s25 }
 0x116   :  { %v2646_v27 = vpop.eup %2645 }
 0x15b   :  { %v313_v28 = vpop.permute.xlu1 %312 }
 0x15c   :  { %v315_v29 = vmul.f32 %v2646_v27, %v313_v28 }
 0x15e   :  { %317 = vrot.lane.b32.xlu1 %v315_v29, %s3122_s25 }
 0x18a   :  { %v380_v30 = vpop.permute.xlu0 %379 }
 0x18b   :  { %v382_v32 = vmul.f32 %v380_v30, %v3297_v31 }
 0x18d   :  { %v383_v33 = vsel %vm286_vm2, %v382_v32, 0.0  ;;  %v3127_v32 = vmov 1  }
 0x18e   :  { %v384_v34 = vrot.slane %v383_v33, 4  ;;  %v308_v42 = vpop.permute.xlu0 %307  ;;  %2606 = vset.pattern.permute.xlu1 %v3127_v32 }
 0x18f   :  { %v310_v43 = vmul.f32 %v2646_v27, %v308_v42 }
 0x190   :  { %v385_v35 = vadd.f32 %v384_v34, %v383_v33 }
 0x192   :  { %v386_v36 = vrot.slane %v385_v35, 2 }
 0x194   :  { %v387_v37 = vadd.f32 %v386_v36, %v385_v35 }
 0x196   :  { %v388_v38 = vrot.slane %v387_v37, 1 }
 0x198   :  { %v389_v39 = vadd.f32 %v388_v38, %v387_v37 }
 0x19a   :  { %v390_v40 = vadd.f32 %v389_v39, %v3304_v47 }
 0x19c   :  { %2647 = vtanh.f32 %v390_v40  ;;  %v2474_v49 = vmul.f32 -1.442695, %v390_v40 }
 0x1a6   :  { %v2648_v41 = vpop.eup %2647 }
 0x1a7   :  { %403 = vrot.lane.b32.xlu0 %v2648_v41, %s3121_s20 }
 0x1d0   :  { %v318_v44 = vpop.permute.xlu1 %317 }
 0x1d1   :  { %v320_v45 = vadd.f32 %v318_v44, %v310_v43 }
 0x1d3   :  { %2649 = vtanh.f32 %v320_v45  ;;  %v399_v0 = vrot.slane %v320_v45, 7 }
 0x1d4   :  { %2651 = vpow2.f32 %v2474_v49 }
 0x1dd   :  { %v2650_v46 = vpop.eup %2649 }
 0x1de   :  { %323 = vrot.lane.b32.xlu0 %v2650_v46, %s3123_s4  ;;  %v2652_v50 = vpop.eup %2651 }
 0x1df   :  { %v394_v52 = vadd.f32 1.0, %v2652_v50 }
 0x1e1   :  { %2653 = vrcp.f32 %v394_v52 }
 0x1e2   :  { %428 = vrot.lane.b32.xlu0 %v3257_v13, %s3124_s5  ;;  %v3344_v13 = vsub.s32 0, %v3341_v57 }
 0x1e6   :  { %432 = vrot.lane.b32.xlu0 %v3281_v21, %s3124_s5 }
 0x1eb   :  { %v2654_v53 = vpop.eup %2653 }
 0x1ec   :  { %v401_v1 = vmul.f32 %v2654_v53, %v399_v0 }
 0x219   :  { %v404_v54 = vpop.permute.xlu0 %403 }
 0x21a   :  { %v406_v55 = vmul.f32 %v2654_v53, %v404_v54 }
 0x21c   :  { %408 = vrot.lane.b32.xlu1 %v406_v55, %s3122_s25 }
 0x220   :  { %426 = vrot.lane.b32.xlu1 %v3247_v10, %s3124_s5 }
 0x224   :  { %430 = vrot.lane.b32.xlu1 %v3265_v15, %s3124_s5 }
 0x250   :  { %v324_v21 = vpop.permute.xlu0 %323 }
 0x251   :  { %v3346_v58 = vmul.f32 %v2646_v27, %v324_v21 }
 0x253   :  { %v421_v59 = vrot.slane %v3346_v58, %v3344_v13 }
 0x254   :  { %v3350_v61 = vpop.permute.xlu0 %428 }
 0x255   :  { %v439_v63 = vmul.f32 %v3350_v61, %v421_v59 }
 0x257   :  { %448 = vrot.lane.b32.xlu1 %v439_v63, %s3125_s26 }
 0x258   :  { %v3354_v10 = vpop.permute.xlu0 %432 }
 0x259   :  { %v441_v15 = vmul.f32 %v3354_v10, %v421_v59 }
 0x25b   :  { %452 = vrot.lane.b32.xlu1 %v441_v15, %s3125_s26 }
 0x28e   :  { %v409_v2 = vpop.permute.xlu1 %408 }
 0x28f   :  { %v3358_v3 = vadd.f32 %v409_v2, %v401_v1 }
 0x291   :  { %2655 = vtanh.f32 %v3358_v3 }
 0x292   :  { %v3361_v5 = vpop.permute.xlu1 %426 }
 0x293   :  { %v438_v6 = vmul.f32 %v3361_v5, %v421_v59 }
 0x295   :  { %446 = vrot.lane.b32.xlu0 %v438_v6, %s3125_s26 }
 0x296   :  { %v3365_v7 = vpop.permute.xlu1 %430 }
 0x297   :  { %v440_v8 = vmul.f32 %v3365_v7, %v421_v59 }
 0x299   :  { %450 = vrot.lane.b32.xlu0 %v440_v8, %s3125_s26 }
 0x29b   :  { %v2656_v9 = vpop.eup %2655 }
 0x29c   :  { %414 = vrot.lane.b32.xlu1 %v2656_v9, %s3123_s4 }
 0x2c9   :  { %v449_v11 = vpop.permute.xlu1 %448 }
 0x2ca   :  { %v461_v12 = vsel %vm55_vm0, %v449_v11, 0.0 }
 0x2cb   :  { %462 = vadd.xlane.f32.xlu1 %v461_v12 }
 0x2cd   :  { %v453_v17 = vpop.permute.xlu1 %452 }
 0x2ce   :  { %v467_v26 = vsel %vm55_vm0, %v453_v17, 0.0 }
 0x307   :  { %v447_v14 = vpop.permute.xlu0 %446 }
 0x308   :  { %v458_v16 = vsel %vm55_vm0, %v447_v14, 0.0 }
 0x309   :  { %459 = vadd.xlane.f32.xlu0 %v458_v16  ;;  %v3128_v16 = vmov 2  }
 0x30b   :  { %v451_v27 = vpop.permute.xlu0 %450 }
 0x30c   :  { %v464_v28 = vsel %vm55_vm0, %v451_v27, 0.0 }
 0x30e   :  { %v415_v20 = vpop.permute.xlu1 %414 }
 0x30f   :  { %v3375_v22 = vmul.f32 %v2654_v53, %v415_v20 }
 0x311   :  { %v546_v23 = vrot.slane %v3375_v22, %v3373_v19 }
 0x313   :  { %v548_v24 = vmul.f32 %v546_v23, %v3350_v61  ;;  %v547_v25 = vmul.f32 %v546_v23, %v3361_v5  ;;  %v550_v29 = vmul.f32 %v546_v23, %v3354_v10  ;;  %v549_v30 = vmul.f32 %v546_v23, %v3365_v7 }
 0x315   :  { %557 = vrot.lane.b32.xlu1 %v548_v24, %s3125_s26 }
 0x31f   :  { %555 = vrot.lane.b32.xlu0 %v547_v25, %s3125_s26 }
 0x339   :  { %468 = vadd.xlane.f32.xlu1 %v467_v26 }
 0x33e   :  { %465 = vadd.xlane.f32.xlu0 %v464_v28 }
 0x34a   :  { %561 = vrot.lane.b32.xlu1 %v550_v29, %s3125_s26 }
 0x354   :  { %559 = vrot.lane.b32.xlu0 %v549_v30, %s3125_s26 }
 0x358   :  { %494 = vrot.lane.b32.xlu0 %v3323_v18, %s3126_s27  ;;  %v463_v33 = vpop.xlane.xlu1 %462 }
 0x359   :  { %v471_v39 = vadd.f32 %v463_v33, %v3306_v48 }
 0x35b   :  { %v2476_v41 = vmul.f32 -1.442695, %v471_v39 }
 0x35d   :  { %2657 = vpow2.f32 %v2476_v41 }
 0x367   :  { %v2658_v18 = vpop.eup %2657 }
 0x368   :  { %v484_v46 = vadd.f32 1.0, %v2658_v18 }
 0x387   :  { %v558_v34 = vpop.permute.xlu1 %557 }
 0x388   :  { %v570_v35 = vsel %vm55_vm0, %v558_v34, 0.0 }
 0x389   :  { %571 = vadd.xlane.f32.xlu0 %v570_v35 }
 0x396   :  { %v460_v36 = vpop.xlane.xlu0 %459 }
 0x397   :  { %v470_v40 = vadd.f32 %v460_v36, %v3308_v51 }
 0x399   :  { %v2475_v42 = vmul.f32 -1.442695, %v470_v40 }
 0x39a   :  { %v556_v37 = vpop.permute.xlu0 %555 }
 0x39b   :  { %v567_v38 = vsel %vm55_vm0, %v556_v37, 0.0  ;;  %2659 = vpow2.f32 %v2475_v42 }
 0x39c   :  { %568 = vadd.xlane.f32.xlu1 %v567_v38 }
 0x3a5   :  { %v2660_v43 = vpop.eup %2659 }
 0x3a6   :  { %v483_v49 = vadd.f32 1.0, %v2660_v43 }
 0x3c6   :  { %v469_v44 = vpop.xlane.xlu1 %468 }
 0x3c7   :  { %v473_v45 = vadd.f32 %v469_v44, %v3313_v60 }
 0x3c9   :  { %v2477_v50 = vmul.f32 -1.442695, %v473_v45 }
 0x3ca   :  { %v562_v52 = vpop.permute.xlu1 %561 }
 0x3cb   :  { %2661 = vpow2.f32 %v2477_v50  ;;  %v466_v53 = vpop.xlane.xlu0 %465  ;;  %v576_v54 = vsel %vm55_vm0, %v562_v52, 0.0 }
 0x3cc   :  { %2663 = vrcp.f32 %v484_v46  ;;  %v472_v55 = vadd.f32 %v466_v53, %v3316_v62  ;;  %577 = vadd.xlane.f32.xlu1 %v576_v54 }
 0x3cd   :  { %2665 = vrcp.f32 %v483_v49 }
 0x3ce   :  { %2667 = vtanh.f32 %v472_v55 }
 0x3cf   :  { %v560_v56 = vpop.permute.xlu0 %559 }
 0x3d0   :  { %v573_v21 = vsel %vm55_vm0, %v560_v56, 0.0 }
 0x3d1   :  { %574 = vadd.xlane.f32.xlu0 %v573_v21 }
 0x3d3   :  { %v495_v15 = vpop.permute.xlu0 %494 }
 0x3d5   :  { %v2662_v59 = vpop.eup %2661 }
 0x3d6   :  { %v2664_v63 = vpop.eup %2663  ;;  %v485_v2 = vadd.f32 1.0, %v2662_v59 }
 0x3d7   :  { %v2666_v0 = vpop.eup %2665  ;;  %v497_v8 = vmul.f32 %v2664_v63, %v495_v15 }
 0x3d8   :  { %v2668_v1 = vpop.eup %2667  ;;  %2669 = vrcp.f32 %v485_v2 }
 0x3d9   :  { %v498_v6 = vmul.f32 %v2668_v1, %v2666_v0 }
 0x3db   :  { %v499_v9 = vadd.f32 %v498_v6, %v497_v8 }
 0x3dd   :  { %2671 = vtanh.f32 %v499_v9 }
 0x3e2   :  { %v2670_v11 = vpop.eup %2669 }
 0x3e7   :  { %v2672_v12 = vpop.eup %2671  ;;  %603 = vrot.lane.b32.xlu0 %v499_v9, %s3126_s27 }
 0x3e8   :  { %v501_v14 = vmul.f32 %v2672_v12, %v2670_v11 }
 0x3ea   :  { %504 = vperm.xlu1 %2606, %v501_v14  }
 0x3ee   :  { %2607 = vset.pattern.permute.xlu1 %v3128_v16 }
 0x416   :  { %v572_v17 = vpop.xlane.xlu0 %571 }
 0x417   :  { %v580_v23 = vadd.f32 %v572_v17, %v3306_v48 }
 0x419   :  { %v2480_v25 = vmul.f32 -1.442695, %v580_v23 }
 0x41b   :  { %2673 = vpow2.f32 %v2480_v25 }
 0x425   :  { %v2674_v27 = vpop.eup %2673 }
 0x426   :  { %v593_v32 = vadd.f32 1.0, %v2674_v27 }
 0x429   :  { %v569_v20 = vpop.xlane.xlu1 %568 }
 0x42a   :  { %v579_v24 = vadd.f32 %v569_v20, %v3308_v51 }
 0x42c   :  { %v2479_v26 = vmul.f32 -1.442695, %v579_v24 }
 0x42e   :  { %2675 = vpow2.f32 %v2479_v26 }
 0x438   :  { %v2676_v28 = vpop.eup %2675 }
 0x439   :  { %v592_v33 = vadd.f32 1.0, %v2676_v28 }
 0x459   :  { %v578_v29 = vpop.xlane.xlu1 %577 }
 0x45a   :  { %v582_v30 = vadd.f32 %v578_v29, %v3313_v60  ;;  %v524_v29 = vrot.slane %v3358_v3, 7  ;;  %v654_v3 = vsub.s32 2, %v3341_v57 }
 0x45c   :  { %v2481_v34 = vmul.f32 -1.442695, %v582_v30 }
 0x45e   :  { %2677 = vpow2.f32 %v2481_v34  ;;  %v575_v35 = vpop.xlane.xlu0 %574 }
 0x45f   :  { %2679 = vrcp.f32 %v593_v32  ;;  %v581_v36 = vadd.f32 %v575_v35, %v3316_v62 }
 0x460   :  { %2681 = vrcp.f32 %v592_v33 }
 0x461   :  { %2683 = vtanh.f32 %v581_v36 }
 0x462   :  { %v604_v39 = vpop.permute.xlu0 %603 }
 0x468   :  { %v2678_v37 = vpop.eup %2677 }
 0x469   :  { %v2680_v38 = vpop.eup %2679  ;;  %v505_v40 = vpop.permute.xlu1 %504  ;;  %v594_v43 = vadd.f32 1.0, %v2678_v37 }
 0x46a   :  { %v2682_v41 = vpop.eup %2681  ;;  %v507_v42 = vmul.f32 %v505_v40, %v3297_v31  ;;  %v606_v45 = vmul.f32 %v2680_v38, %v604_v39 }
 0x46b   :  { %v2684_v18 = vpop.eup %2683  ;;  %2685 = vrcp.f32 %v594_v43 }
 0x46c   :  { %v607_v44 = vmul.f32 %v2684_v18, %v2682_v41  ;;  %v508_v46 = vsel %vm286_vm2, %v507_v42, 0.0  ;;  %v2397_v18 = vsel %vm2396_vm3, %v3346_v58, %v3375_v22 }
 0x46d   :  { %v509_v49 = vrot.slane %v508_v46, 4 }
 0x46e   :  { %v3406_v50 = vadd.f32 %v607_v44, %v606_v45 }
 0x46f   :  { %v510_v52 = vadd.f32 %v509_v49, %v508_v46 }
 0x470   :  { %2687 = vtanh.f32 %v3406_v50 }
 0x471   :  { %v511_v53 = vrot.slane %v510_v52, 2 }
 0x473   :  { %v512_v54 = vadd.f32 %v511_v53, %v510_v52 }
 0x475   :  { %v513_v55 = vrot.slane %v512_v54, 1  ;;  %v2686_v21 = vpop.eup %2685 }
 0x477   :  { %v514_v56 = vadd.f32 %v513_v55, %v512_v54 }
 0x479   :  { %v515_v59 = vadd.f32 %v514_v56, %v3304_v47 }
 0x47a   :  { %v2688_v63 = vpop.eup %2687 }
 0x47b   :  { %2689 = vtanh.f32 %v515_v59  ;;  %v610_v15 = vmul.f32 %v2688_v63, %v2686_v21  ;;  %v2478_v1 = vmul.f32 -1.442695, %v515_v59 }
 0x47d   :  { %613 = vperm.xlu1 %2607, %v610_v15   ;;  %2691 = vpow2.f32 %v2478_v1 }
 0x485   :  { %v2690_v0 = vpop.eup %2689 }
 0x486   :  { %528 = vrot.lane.b32.xlu0 %v2690_v0, %s3121_s20  ;;  %v763_v0 = vsub.s32 3, %v3341_v57 }
 0x487   :  { %v2692_v2 = vpop.eup %2691 }
 0x488   :  { %v519_v6 = vadd.f32 1.0, %v2692_v2 }
 0x48a   :  { %2693 = vrcp.f32 %v519_v6 }
 0x494   :  { %v2694_v8 = vpop.eup %2693 }
 0x495   :  { %v526_v32 = vmul.f32 %v2694_v8, %v524_v29 }
 0x4f8   :  { %v529_v9 = vpop.permute.xlu0 %528 }
 0x4f9   :  { %v531_v11 = vmul.f32 %v2694_v8, %v529_v9 }
 0x4fb   :  { %533 = vrot.lane.b32.xlu1 %v531_v11, %s3122_s25 }
 0x4fc   :  { %v614_v12 = vpop.permute.xlu1 %613 }
 0x4fd   :  { %v616_v14 = vmul.f32 %v614_v12, %v3297_v31 }
 0x4ff   :  { %v617_v16 = vsel %vm286_vm2, %v616_v14, 0.0 }
 0x500   :  { %v618_v17 = vrot.slane %v617_v16, 4 }
 0x502   :  { %v619_v20 = vadd.f32 %v618_v17, %v617_v16 }
 0x504   :  { %v620_v23 = vrot.slane %v619_v20, 2 }
 0x506   :  { %v621_v24 = vadd.f32 %v620_v23, %v619_v20  ;;  %v3129_v23 = vmov 3  }
 0x507   :  { %2608 = vset.pattern.permute.xlu1 %v3129_v23 }
 0x508   :  { %v622_v25 = vrot.slane %v621_v24, 1 }
 0x50a   :  { %v623_v26 = vadd.f32 %v622_v25, %v621_v24 }
 0x50c   :  { %v624_v27 = vadd.f32 %v623_v26, %v3304_v47 }
 0x50e   :  { %2695 = vtanh.f32 %v624_v27  ;;  %v2482_v30 = vmul.f32 -1.442695, %v624_v27 }
 0x510   :  { %2697 = vpow2.f32 %v2482_v30 }
 0x518   :  { %v2696_v28 = vpop.eup %2695 }
 0x519   :  { %637 = vrot.lane.b32.xlu0 %v2696_v28, %s3121_s20 }
 0x51a   :  { %v2698_v35 = vpop.eup %2697 }
 0x51b   :  { %v628_v37 = vadd.f32 1.0, %v2698_v35 }
 0x56d   :  { %v534_v33 = vpop.permute.xlu1 %533 }
 0x56e   :  { %v536_v34 = vadd.f32 %v534_v33, %v526_v32 }
 0x570   :  { %2699 = vtanh.f32 %v536_v34  ;;  %v633_v58 = vrot.slane %v536_v34, 7 }
 0x571   :  { %2701 = vrcp.f32 %v628_v37 }
 0x57a   :  { %v2700_v36 = vpop.eup %2699 }
 0x57b   :  { %539 = vrot.lane.b32.xlu0 %v2700_v36, %s3123_s4  ;;  %v2702_v38 = vpop.eup %2701 }
 0x57c   :  { %v635_v22 = vmul.f32 %v2702_v38, %v633_v58 }
 0x58b   :  { %v638_v39 = vpop.permute.xlu0 %637 }
 0x58c   :  { %v640_v40 = vmul.f32 %v2702_v38, %v638_v39 }
 0x58e   :  { %642 = vrot.lane.b32.xlu1 %v640_v40, %s3122_s25 }
 0x5ed   :  { %v540_v41 = vpop.permute.xlu0 %539 }
 0x5ee   :  { %v542_v42 = vmul.f32 %v2694_v8, %v540_v41 }
 0x5f0   :  { %v655_v43 = vrot.slane %v542_v42, %v654_v3  ;;  %v2399_v44 = vsel %vm2398_vm4, %v2397_v18, %v542_v42 }
 0x5f2   :  { %v657_v45 = vmul.f32 %v655_v43, %v3350_v61  ;;  %v656_v46 = vmul.f32 %v655_v43, %v3361_v5  ;;  %v659_v49 = vmul.f32 %v655_v43, %v3354_v10  ;;  %v658_v52 = vmul.f32 %v655_v43, %v3365_v7 }
 0x5f4   :  { %666 = vrot.lane.b32.xlu1 %v657_v45, %s3125_s26  ;;  %664 = vrot.lane.b32.xlu0 %v656_v46, %s3125_s26 }
 0x5f8   :  { %670 = vrot.lane.b32.xlu1 %v659_v49, %s3125_s26  ;;  %668 = vrot.lane.b32.xlu0 %v658_v52, %s3125_s26 }
 0x600   :  { %v643_v53 = vpop.permute.xlu1 %642 }
 0x601   :  { %v3434_v54 = vadd.f32 %v643_v53, %v635_v22 }
 0x603   :  { %2703 = vtanh.f32 %v3434_v54 }
 0x60d   :  { %v2704_v55 = vpop.eup %2703 }
 0x60e   :  { %648 = vrot.lane.b32.xlu1 %v2704_v55, %s3123_s4 }
 0x666   :  { %v667_v56 = vpop.permute.xlu1 %666  ;;  %v665_v21 = vpop.permute.xlu0 %664 }
 0x667   :  { %v679_v59 = vsel %vm55_vm0, %v667_v56, 0.0  ;;  %v676_v63 = vsel %vm55_vm0, %v665_v21, 0.0 }
 0x668   :  { %680 = vadd.xlane.f32.xlu1 %v679_v59  ;;  %677 = vadd.xlane.f32.xlu0 %v676_v63 }
 0x66a   :  { %v671_v15 = vpop.permute.xlu1 %670  ;;  %v669_v12 = vpop.permute.xlu0 %668 }
 0x66b   :  { %v682_v14 = vsel %vm55_vm0, %v669_v12, 0.0  ;;  %v685_v16 = vsel %vm55_vm0, %v671_v15, 0.0 }
 0x680   :  { %v649_v1 = vpop.permute.xlu1 %648 }
 0x681   :  { %v651_v2 = vmul.f32 %v2702_v38, %v649_v1  ;;  %v3130_v1 = vmov 4  }
 0x683   :  { %v764_v6 = vrot.slane %v651_v2, %v763_v0  ;;  %v3444_v8 = vsel %vm2400_vm5, %v2399_v44, %v651_v2 }
 0x685   :  { %v766_v9 = vmul.f32 %v764_v6, %v3350_v61  ;;  %v765_v11 = vmul.f32 %v764_v6, %v3361_v5  ;;  %v768_v17 = vmul.f32 %v764_v6, %v3354_v10  ;;  %v767_v20 = vmul.f32 %v764_v6, %v3365_v7 }
 0x687   :  { %775 = vrot.lane.b32.xlu1 %v766_v9, %s3125_s26  ;;  %773 = vrot.lane.b32.xlu0 %v765_v11, %s3125_s26 }
 0x6a6   :  { %683 = vadd.xlane.f32.xlu0 %v682_v14 }
 0x6ab   :  { %686 = vadd.xlane.f32.xlu1 %v685_v16 }
 0x6bc   :  { %779 = vrot.lane.b32.xlu1 %v768_v17, %s3125_s26  ;;  %777 = vrot.lane.b32.xlu0 %v767_v20, %s3125_s26 }
 0x6c0   :  { %712 = vrot.lane.b32.xlu0 %v3406_v50, %s3126_s27 }
 0x6f5   :  { %v681_v24 = vpop.xlane.xlu1 %680  ;;  %v678_v25 = vpop.xlane.xlu0 %677 }
 0x6f6   :  { %v688_v30 = vadd.f32 %v678_v25, %v3308_v51  ;;  %v689_v32 = vadd.f32 %v681_v24, %v3306_v48 }
 0x6f8   :  { %v2483_v33 = vmul.f32 -1.442695, %v688_v30  ;;  %v2484_v34 = vmul.f32 -1.442695, %v689_v32 }
 0x6f9   :  { %v776_v26 = vpop.permute.xlu1 %775  ;;  %v774_v27 = vpop.permute.xlu0 %773 }
 0x6fa   :  { %v788_v28 = vsel %vm55_vm0, %v776_v26, 0.0  ;;  %v785_v29 = vsel %vm55_vm0, %v774_v27, 0.0  ;;  %2705 = vpow2.f32 %v2483_v33 }
 0x6fb   :  { %789 = vadd.xlane.f32.xlu0 %v788_v28  ;;  %786 = vadd.xlane.f32.xlu1 %v785_v29  ;;  %2707 = vpow2.f32 %v2484_v34 }
 0x704   :  { %v2706_v50 = vpop.eup %2705 }
 0x705   :  { %v2708_v35 = vpop.eup %2707  ;;  %v701_v36 = vadd.f32 1.0, %v2706_v50 }
 0x706   :  { %v702_v38 = vadd.f32 1.0, %v2708_v35 }
 0x707   :  { %2709 = vrcp.f32 %v701_v36 }
 0x711   :  { %v2710_v46 = vpop.eup %2709 }
 0x733   :  { %v684_v37 = vpop.xlane.xlu0 %683 }
 0x734   :  { %v690_v39 = vadd.f32 %v684_v37, %v3316_v62 }
 0x736   :  { %2711 = vtanh.f32 %v690_v39 }
 0x737   :  { %v778_v40 = vpop.permute.xlu0 %777  ;;  %2713 = vrcp.f32 %v702_v38 }
 0x738   :  { %v687_v41 = vpop.xlane.xlu1 %686  ;;  %v791_v42 = vsel %vm55_vm0, %v778_v40, 0.0 }
 0x739   :  { %v691_v18 = vadd.f32 %v687_v41, %v3313_v60  ;;  %792 = vadd.xlane.f32.xlu0 %v791_v42 }
 0x73b   :  { %v2485_v43 = vmul.f32 -1.442695, %v691_v18  ;;  %v713_v52 = vpop.permute.xlu0 %712 }
 0x73c   :  { %v780_v44 = vpop.permute.xlu1 %779 }
 0x73d   :  { %2715 = vpow2.f32 %v2485_v43  ;;  %v794_v45 = vsel %vm55_vm0, %v780_v44, 0.0 }
 0x73e   :  { %795 = vadd.xlane.f32.xlu1 %v794_v45 }
 0x740   :  { %v2712_v49 = vpop.eup %2711 }
 0x741   :  { %v716_v58 = vmul.f32 %v2712_v49, %v2710_v46  ;;  %v2714_v22 = vpop.eup %2713 }
 0x742   :  { %v715_v53 = vmul.f32 %v2714_v22, %v713_v52 }
 0x744   :  { %v717_v55 = vadd.f32 %v716_v58, %v715_v53 }
 0x746   :  { %2717 = vtanh.f32 %v717_v55 }
 0x747   :  { %v2716_v56 = vpop.eup %2715 }
 0x748   :  { %v703_v21 = vadd.f32 1.0, %v2716_v56 }
 0x74a   :  { %2719 = vrcp.f32 %v703_v21 }
 0x74f   :  { %821 = vrot.lane.b32.xlu0 %v717_v55, %s3126_s27 }
 0x750   :  { %v2718_v59 = vpop.eup %2717 }
 0x754   :  { %v2720_v63 = vpop.eup %2719 }
 0x755   :  { %v719_v15 = vmul.f32 %v2720_v63, %v2718_v59 }
 0x757   :  { %722 = vperm.xlu1 %2608, %v719_v15  }
 0x75b   :  { %2609 = vset.pattern.permute.xlu1 %v3130_v1 }
 0x788   :  { %v787_v2 = vpop.xlane.xlu1 %786  ;;  %v790_v9 = vpop.xlane.xlu0 %789 }
 0x789   :  { %v797_v6 = vadd.f32 %v787_v2, %v3308_v51  ;;  %v798_v11 = vadd.f32 %v790_v9, %v3306_v48 }
 0x78b   :  { %v2487_v12 = vmul.f32 -1.442695, %v797_v6  ;;  %v2488_v14 = vmul.f32 -1.442695, %v798_v11 }
 0x78d   :  { %2721 = vpow2.f32 %v2487_v12 }
 0x78e   :  { %2723 = vpow2.f32 %v2488_v14 }
 0x797   :  { %v2722_v16 = vpop.eup %2721 }
 0x798   :  { %v2724_v17 = vpop.eup %2723  ;;  %v810_v20 = vadd.f32 1.0, %v2722_v16 }
 0x799   :  { %v811_v24 = vadd.f32 1.0, %v2724_v17 }
 0x79a   :  { %2725 = vrcp.f32 %v810_v20 }
 0x7a4   :  { %v2726_v29 = vpop.eup %2725 }
 0x7c6   :  { %v793_v23 = vpop.xlane.xlu0 %792 }
 0x7c7   :  { %v799_v25 = vadd.f32 %v793_v23, %v3316_v62  ;;  %v742_v23 = vrot.slane %v3434_v54, 7 }
 0x7c9   :  { %2727 = vtanh.f32 %v799_v25 }
 0x7ca   :  { %2729 = vrcp.f32 %v811_v24  ;;  %v822_v32 = vpop.permute.xlu0 %821 }
 0x7cb   :  { %v796_v26 = vpop.xlane.xlu1 %795 }
 0x7cc   :  { %v800_v27 = vadd.f32 %v796_v26, %v3313_v60 }
 0x7ce   :  { %v2489_v28 = vmul.f32 -1.442695, %v800_v27 }
 0x7d0   :  { %2731 = vpow2.f32 %v2489_v28 }
 0x7d3   :  { %v2728_v30 = vpop.eup %2727 }
 0x7d4   :  { %v825_v33 = vmul.f32 %v2728_v30, %v2726_v29  ;;  %v2730_v34 = vpop.eup %2729 }
 0x7d5   :  { %v824_v50 = vmul.f32 %v2730_v34, %v822_v32  ;;  %v872_v34 = vsub.s32 4, %v3341_v57 }
 0x7d6   :  { %v723_v35 = vpop.permute.xlu1 %722 }
 0x7d7   :  { %v725_v36 = vmul.f32 %v723_v35, %v3297_v31  ;;  %v3472_v37 = vadd.f32 %v825_v33, %v824_v50 }
 0x7d9   :  { %v726_v38 = vsel %vm286_vm2, %v725_v36, 0.0  ;;  %2733 = vtanh.f32 %v3472_v37 }
 0x7da   :  { %v2732_v39 = vpop.eup %2731  ;;  %v727_v40 = vrot.slane %v726_v38, 4 }
 0x7db   :  { %v812_v41 = vadd.f32 1.0, %v2732_v39 }
 0x7dc   :  { %v728_v42 = vadd.f32 %v727_v40, %v726_v38 }
 0x7dd   :  { %2735 = vrcp.f32 %v812_v41 }
 0x7de   :  { %v729_v18 = vrot.slane %v728_v42, 2 }
 0x7e0   :  { %v730_v43 = vadd.f32 %v729_v18, %v728_v42 }
 0x7e2   :  { %v731_v44 = vrot.slane %v730_v43, 1 }
 0x7e3   :  { %v2734_v46 = vpop.eup %2733 }
 0x7e4   :  { %v732_v45 = vadd.f32 %v731_v44, %v730_v43 }
 0x7e6   :  { %v733_v49 = vadd.f32 %v732_v45, %v3304_v47 }
 0x7e7   :  { %v2736_v52 = vpop.eup %2735 }
 0x7e8   :  { %2737 = vtanh.f32 %v733_v49  ;;  %v828_v58 = vmul.f32 %v2736_v52, %v2734_v46  ;;  %v2486_v53 = vmul.f32 -1.442695, %v733_v49 }
 0x7ea   :  { %831 = vperm.xlu1 %2609, %v828_v58   ;;  %2739 = vpow2.f32 %v2486_v53 }
 0x7f2   :  { %v2738_v22 = vpop.eup %2737 }
 0x7f3   :  { %746 = vrot.lane.b32.xlu0 %v2738_v22, %s3121_s20  ;;  %v981_v22 = vsub.s32 5, %v3341_v57 }
 0x7f4   :  { %v2740_v55 = vpop.eup %2739 }
 0x7f5   :  { %v737_v56 = vadd.f32 1.0, %v2740_v55 }
 0x7f7   :  { %2741 = vrcp.f32 %v737_v56 }
 0x801   :  { %v2742_v21 = vpop.eup %2741 }
 0x802   :  { %v744_v25 = vmul.f32 %v2742_v21, %v742_v23 }
 0x865   :  { %v747_v59 = vpop.permute.xlu0 %746 }
 0x866   :  { %v749_v63 = vmul.f32 %v2742_v21, %v747_v59 }
 0x868   :  { %751 = vrot.lane.b32.xlu1 %v749_v63, %s3122_s25 }
 0x869   :  { %v832_v15 = vpop.permute.xlu1 %831 }
 0x86a   :  { %v834_v1 = vmul.f32 %v832_v15, %v3297_v31 }
 0x86c   :  { %v835_v2 = vsel %vm286_vm2, %v834_v1, 0.0 }
 0x86d   :  { %v836_v6 = vrot.slane %v835_v2, 4 }
 0x86f   :  { %v837_v9 = vadd.f32 %v836_v6, %v835_v2 }
 0x871   :  { %v838_v11 = vrot.slane %v837_v9, 2 }
 0x873   :  { %v839_v12 = vadd.f32 %v838_v11, %v837_v9  ;;  %v3131_v11 = vmov 5  }
 0x874   :  { %2610 = vset.pattern.permute.xlu1 %v3131_v11 }
 0x875   :  { %v840_v14 = vrot.slane %v839_v12, 1 }
 0x877   :  { %v841_v16 = vadd.f32 %v840_v14, %v839_v12 }
 0x879   :  { %v842_v17 = vadd.f32 %v841_v16, %v3304_v47 }
 0x87b   :  { %2743 = vtanh.f32 %v842_v17  ;;  %v2490_v24 = vmul.f32 -1.442695, %v842_v17 }
 0x87d   :  { %2745 = vpow2.f32 %v2490_v24 }
 0x885   :  { %v2744_v20 = vpop.eup %2743 }
 0x886   :  { %855 = vrot.lane.b32.xlu0 %v2744_v20, %s3121_s20 }
 0x887   :  { %v2746_v27 = vpop.eup %2745 }
 0x888   :  { %v846_v29 = vadd.f32 1.0, %v2746_v27 }
 0x8da   :  { %v752_v26 = vpop.permute.xlu1 %751 }
 0x8db   :  { %v754_v31 = vadd.f32 %v752_v26, %v744_v25 }
 0x8dd   :  { %2747 = vtanh.f32 %v754_v31  ;;  %v851_v42 = vrot.slane %v754_v31, 7 }
 0x8de   :  { %2749 = vrcp.f32 %v846_v29 }
 0x8e7   :  { %v2748_v28 = vpop.eup %2747 }
 0x8e8   :  { %757 = vrot.lane.b32.xlu0 %v2748_v28, %s3123_s4  ;;  %v2750_v30 = vpop.eup %2749 }
 0x8e9   :  { %v853_v18 = vmul.f32 %v2750_v30, %v851_v42 }
 0x8f8   :  { %v856_v32 = vpop.permute.xlu0 %855 }
 0x8f9   :  { %v858_v33 = vmul.f32 %v2750_v30, %v856_v32 }
 0x8fb   :  { %860 = vrot.lane.b32.xlu1 %v858_v33, %s3122_s25 }
 0x95a   :  { %v758_v54 = vpop.permute.xlu0 %757 }
 0x95b   :  { %v760_v50 = vmul.f32 %v2742_v21, %v758_v54 }
 0x95d   :  { %v873_v35 = vrot.slane %v760_v50, %v872_v34  ;;  %v2403_v36 = vsel %vm2402_vm6, %v3444_v8, %v760_v50 }
 0x95f   :  { %v875_v38 = vmul.f32 %v873_v35, %v3350_v61  ;;  %v874_v39 = vmul.f32 %v873_v35, %v3361_v5  ;;  %v877_v40 = vmul.f32 %v873_v35, %v3354_v10  ;;  %v876_v41 = vmul.f32 %v873_v35, %v3365_v7 }
 0x961   :  { %884 = vrot.lane.b32.xlu1 %v875_v38, %s3125_s26  ;;  %882 = vrot.lane.b32.xlu0 %v874_v39, %s3125_s26 }
 0x965   :  { %888 = vrot.lane.b32.xlu1 %v877_v40, %s3125_s26  ;;  %886 = vrot.lane.b32.xlu0 %v876_v41, %s3125_s26 }
 0x96d   :  { %v861_v43 = vpop.permute.xlu1 %860 }
 0x96e   :  { %v3499_v8 = vadd.f32 %v861_v43, %v853_v18 }
 0x970   :  { %2751 = vtanh.f32 %v3499_v8 }
 0x97a   :  { %v2752_v44 = vpop.eup %2751 }
 0x97b   :  { %866 = vrot.lane.b32.xlu1 %v2752_v44, %s3123_s4 }
 0x9d3   :  { %v885_v45 = vpop.permute.xlu1 %884  ;;  %v883_v46 = vpop.permute.xlu0 %882 }
 0x9d4   :  { %v897_v49 = vsel %vm55_vm0, %v885_v45, 0.0  ;;  %v894_v52 = vsel %vm55_vm0, %v883_v46, 0.0 }
 0x9d5   :  { %898 = vadd.xlane.f32.xlu1 %v897_v49  ;;  %895 = vadd.xlane.f32.xlu0 %v894_v52 }
 0x9d7   :  { %v889_v58 = vpop.permute.xlu1 %888  ;;  %v887_v15 = vpop.permute.xlu0 %886 }
 0x9d8   :  { %v900_v1 = vsel %vm55_vm0, %v887_v15, 0.0  ;;  %v903_v2 = vsel %vm55_vm0, %v889_v58, 0.0 }
 0x9ed   :  { %v867_v53 = vpop.permute.xlu1 %866 }
 0x9ee   :  { %v869_v55 = vmul.f32 %v2750_v30, %v867_v53 }
 0x9f0   :  { %v982_v56 = vrot.slane %v869_v55, %v981_v22  ;;  %v3509_v21 = vsel %vm2404_vm7, %v2403_v36, %v869_v55  ;;  %v3132_v55 = vmov 6  }
 0x9f2   :  { %v984_v59 = vmul.f32 %v982_v56, %v3350_v61  ;;  %v983_v63 = vmul.f32 %v982_v56, %v3361_v5  ;;  %v986_v6 = vmul.f32 %v982_v56, %v3354_v10  ;;  %v985_v9 = vmul.f32 %v982_v56, %v3365_v7 }
 0x9f4   :  { %993 = vrot.lane.b32.xlu1 %v984_v59, %s3125_s26  ;;  %991 = vrot.lane.b32.xlu0 %v983_v63, %s3125_s26 }
 0xa13   :  { %901 = vadd.xlane.f32.xlu0 %v900_v1 }
 0xa18   :  { %904 = vadd.xlane.f32.xlu1 %v903_v2 }
 0xa29   :  { %997 = vrot.lane.b32.xlu1 %v986_v6, %s3125_s26  ;;  %995 = vrot.lane.b32.xlu0 %v985_v9, %s3125_s26 }
 0xa2d   :  { %930 = vrot.lane.b32.xlu0 %v3472_v37, %s3126_s27 }
 0xa62   :  { %v899_v12 = vpop.xlane.xlu1 %898  ;;  %v896_v14 = vpop.xlane.xlu0 %895 }
 0xa63   :  { %v906_v24 = vadd.f32 %v896_v14, %v3308_v51  ;;  %v907_v25 = vadd.f32 %v899_v12, %v3306_v48 }
 0xa65   :  { %v2491_v26 = vmul.f32 -1.442695, %v906_v24  ;;  %v2492_v31 = vmul.f32 -1.442695, %v907_v25 }
 0xa66   :  { %v994_v16 = vpop.permute.xlu1 %993  ;;  %v992_v17 = vpop.permute.xlu0 %991 }
 0xa67   :  { %v1006_v20 = vsel %vm55_vm0, %v994_v16, 0.0  ;;  %v1003_v23 = vsel %vm55_vm0, %v992_v17, 0.0  ;;  %2753 = vpow2.f32 %v2491_v26 }
 0xa68   :  { %1007 = vadd.xlane.f32.xlu0 %v1006_v20  ;;  %1004 = vadd.xlane.f32.xlu1 %v1003_v23  ;;  %2755 = vpow2.f32 %v2492_v31 }
 0xa71   :  { %v2754_v37 = vpop.eup %2753 }
 0xa72   :  { %v2756_v27 = vpop.eup %2755  ;;  %v919_v28 = vadd.f32 1.0, %v2754_v37 }
 0xa73   :  { %v920_v30 = vadd.f32 1.0, %v2756_v27 }
 0xa74   :  { %2757 = vrcp.f32 %v919_v28 }
 0xa7e   :  { %v2758_v40 = vpop.eup %2757 }
 0xaa0   :  { %v902_v29 = vpop.xlane.xlu0 %901 }
 0xaa1   :  { %v908_v32 = vadd.f32 %v902_v29, %v3316_v62  ;;  %v3539_v29 = vld [vmem:[%s4001_s8] sm:$0xff] }
 0xaa3   :  { %2759 = vtanh.f32 %v908_v32 }
 0xaa4   :  { %v996_v33 = vpop.permute.xlu0 %995  ;;  %2761 = vrcp.f32 %v920_v30 }
 0xaa5   :  { %v905_v54 = vpop.xlane.xlu1 %904  ;;  %v1009_v50 = vsel %vm55_vm0, %v996_v33, 0.0 }
 0xaa6   :  { %v909_v35 = vadd.f32 %v905_v54, %v3313_v60  ;;  %1010 = vadd.xlane.f32.xlu0 %v1009_v50 }
 0xaa8   :  { %v2493_v36 = vmul.f32 -1.442695, %v909_v35  ;;  %v931_v42 = vpop.permute.xlu0 %930 }
 0xaa9   :  { %v998_v38 = vpop.permute.xlu1 %997 }
 0xaaa   :  { %2763 = vpow2.f32 %v2493_v36  ;;  %v1012_v39 = vsel %vm55_vm0, %v998_v38, 0.0 }
 0xaab   :  { %1013 = vadd.xlane.f32.xlu1 %v1012_v39 }
 0xaad   :  { %v2760_v41 = vpop.eup %2759 }
 0xaae   :  { %v934_v18 = vmul.f32 %v2760_v41, %v2758_v40  ;;  %v2762_v43 = vpop.eup %2761 }
 0xaaf   :  { %v933_v44 = vmul.f32 %v2762_v43, %v931_v42 }
 0xab1   :  { %v935_v45 = vadd.f32 %v934_v18, %v933_v44 }
 0xab3   :  { %2765 = vtanh.f32 %v935_v45 }
 0xab4   :  { %v2764_v46 = vpop.eup %2763 }
 0xab5   :  { %v921_v49 = vadd.f32 1.0, %v2764_v46 }
 0xab7   :  { %2767 = vrcp.f32 %v921_v49 }
 0xabc   :  { %1039 = vrot.lane.b32.xlu0 %v935_v45, %s3126_s27 }
 0xabd   :  { %v2766_v52 = vpop.eup %2765 }
 0xac1   :  { %v2768_v58 = vpop.eup %2767 }
 0xac2   :  { %v937_v53 = vmul.f32 %v2768_v58, %v2766_v52 }
 0xac4   :  { %940 = vperm.xlu1 %2610, %v937_v53  }
 0xac8   :  { %2611 = vset.pattern.permute.xlu1 %v3132_v55 }
 0xaf5   :  { %v1005_v56 = vpop.xlane.xlu1 %1004  ;;  %v1008_v63 = vpop.xlane.xlu0 %1007 }
 0xaf6   :  { %v1015_v59 = vadd.f32 %v1005_v56, %v3308_v51  ;;  %v1016_v15 = vadd.f32 %v1008_v63, %v3306_v48 }
 0xaf8   :  { %v2495_v1 = vmul.f32 -1.442695, %v1015_v59  ;;  %v2496_v2 = vmul.f32 -1.442695, %v1016_v15 }
 0xafa   :  { %2769 = vpow2.f32 %v2495_v1 }
 0xafb   :  { %2771 = vpow2.f32 %v2496_v2 }
 0xb04   :  { %v2770_v6 = vpop.eup %2769 }
 0xb05   :  { %v2772_v9 = vpop.eup %2771  ;;  %v1028_v11 = vadd.f32 1.0, %v2770_v6 }
 0xb06   :  { %v1029_v14 = vadd.f32 1.0, %v2772_v9 }
 0xb07   :  { %2773 = vrcp.f32 %v1028_v11 }
 0xb11   :  { %v2774_v24 = vpop.eup %2773 }
 0xb33   :  { %v1011_v12 = vpop.xlane.xlu0 %1010 }
 0xb34   :  { %v1017_v16 = vadd.f32 %v1011_v12, %v3316_v62 }
 0xb36   :  { %2775 = vtanh.f32 %v1017_v16  ;;  %v960_v16 = vrot.slane %v3499_v8, 7 }
 0xb37   :  { %2777 = vrcp.f32 %v1029_v14  ;;  %v1040_v26 = vpop.permute.xlu0 %1039 }
 0xb38   :  { %v1014_v17 = vpop.xlane.xlu1 %1013 }
 0xb39   :  { %v1018_v20 = vadd.f32 %v1014_v17, %v3313_v60 }
 0xb3b   :  { %v2497_v23 = vmul.f32 -1.442695, %v1018_v20 }
 0xb3d   :  { %2779 = vpow2.f32 %v2497_v23 }
 0xb40   :  { %v2776_v25 = vpop.eup %2775 }
 0xb41   :  { %v1043_v31 = vmul.f32 %v2776_v25, %v2774_v24  ;;  %v2778_v37 = vpop.eup %2777 }
 0xb42   :  { %v1042_v27 = vmul.f32 %v2778_v37, %v1040_v26 }
 0xb43   :  { %v941_v28 = vpop.permute.xlu1 %940 }
 0xb44   :  { %v943_v30 = vmul.f32 %v3539_v29, %v941_v28  ;;  %v3542_v32 = vadd.f32 %v1043_v31, %v1042_v27  ;;  %v1090_v28 = vsub.s32 6, %v3341_v57 }
 0xb46   :  { %v944_v33 = vsel %vm286_vm2, %v943_v30, 0.0  ;;  %2781 = vtanh.f32 %v3542_v32 }
 0xb47   :  { %v2780_v54 = vpop.eup %2779  ;;  %v945_v50 = vrot.slane %v944_v33, 4 }
 0xb48   :  { %v1030_v35 = vadd.f32 1.0, %v2780_v54 }
 0xb49   :  { %v946_v36 = vadd.f32 %v945_v50, %v944_v33 }
 0xb4a   :  { %2783 = vrcp.f32 %v1030_v35 }
 0xb4b   :  { %v947_v38 = vrot.slane %v946_v36, 2 }
 0xb4d   :  { %v948_v39 = vadd.f32 %v947_v38, %v946_v36 }
 0xb4f   :  { %v949_v40 = vrot.slane %v948_v39, 1 }
 0xb50   :  { %v2782_v42 = vpop.eup %2781 }
 0xb51   :  { %v950_v41 = vadd.f32 %v949_v40, %v948_v39 }
 0xb53   :  { %v951_v18 = vadd.f32 %v950_v41, %v3304_v47 }
 0xb54   :  { %v2784_v43 = vpop.eup %2783 }
 0xb55   :  { %2785 = vtanh.f32 %v951_v18  ;;  %v1046_v44 = vmul.f32 %v2784_v43, %v2782_v42  ;;  %v2494_v46 = vmul.f32 -1.442695, %v951_v18 }
 0xb57   :  { %1049 = vperm.xlu1 %2611, %v1046_v44   ;;  %2787 = vpow2.f32 %v2494_v46 }
 0xb5f   :  { %v2786_v45 = vpop.eup %2785 }
 0xb60   :  { %964 = vrot.lane.b32.xlu0 %v2786_v45, %s3121_s20 }
 0xb61   :  { %v2788_v49 = vpop.eup %2787 }
 0xb62   :  { %v955_v52 = vadd.f32 1.0, %v2788_v49  ;;  %v1199_v49 = vsub.s32 7, %v3341_v57 }
 0xb64   :  { %2789 = vrcp.f32 %v955_v52 }
 0xb6e   :  { %v2790_v58 = vpop.eup %2789 }
 0xb6f   :  { %v962_v20 = vmul.f32 %v2790_v58, %v960_v16 }
 0xbd2   :  { %v965_v53 = vpop.permute.xlu0 %964 }
 0xbd3   :  { %v967_v55 = vmul.f32 %v2790_v58, %v965_v53 }
 0xbd5   :  { %969 = vrot.lane.b32.xlu1 %v967_v55, %s3122_s25 }
 0xbd6   :  { %v1050_v56 = vpop.permute.xlu1 %1049 }
 0xbd7   :  { %v1052_v59 = vmul.f32 %v3539_v29, %v1050_v56 }
 0xbd9   :  { %v1053_v63 = vsel %vm286_vm2, %v1052_v59, 0.0 }
 0xbda   :  { %v1054_v15 = vrot.slane %v1053_v63, 4 }
 0xbdc   :  { %v1055_v1 = vadd.f32 %v1054_v15, %v1053_v63  ;;  %v45_v63 = vld [vmem:[%s3993_s0 + $0x8] sm:$0xff] }
 0xbdd   :  { %2562 = vmatmul.mubr.msk.f32.gmra.mrb[2].mxu0 %vm55_vm0, %v45_v63  ;;  %v3134_v63 = vmov 8  }
 0xbde   :  { %v1056_v2 = vrot.slane %v1055_v1, 2  ;;  %2564 = vmatprep.mubr.msk.f32.mxu0 %vm3120_vm1, %v3119_v4 }
 0xbe0   :  { %v1057_v6 = vadd.f32 %v1056_v2, %v1055_v1 }
 0xbe2   :  { %v1058_v9 = vrot.slane %v1057_v6, 1 }
 0xbe4   :  { %v1059_v11 = vadd.f32 %v1058_v9, %v1057_v6 }
 0xbe6   :  { %v1060_v12 = vadd.f32 %v1059_v11, %v3304_v47  ;;  %v3133_v11 = vmov 7  }
 0xbe7   :  { %2612 = vset.pattern.permute.xlu1 %v3133_v11 }
 0xbe8   :  { %2791 = vtanh.f32 %v1060_v12  ;;  %v2498_v17 = vmul.f32 -1.442695, %v1060_v12 }
 0xbea   :  { %2793 = vpow2.f32 %v2498_v17 }
 0xbf2   :  { %v2792_v14 = vpop.eup %2791 }
 0xbf3   :  { %1073 = vrot.lane.b32.xlu0 %v2792_v14, %s3121_s20 }
 0xbf4   :  { %v2794_v25 = vpop.eup %2793 }
 0xbf5   :  { %v1064_v31 = vadd.f32 1.0, %v2794_v25 }
 0xc47   :  { %v970_v23 = vpop.permute.xlu1 %969 }
 0xc48   :  { %v972_v24 = vadd.f32 %v970_v23, %v962_v20 }
 0xc4a   :  { %2795 = vtanh.f32 %v972_v24  ;;  %v1069_v39 = vrot.slane %v972_v24, 7 }
 0xc4b   :  { %2797 = vrcp.f32 %v1064_v31 }
 0xc54   :  { %v2796_v26 = vpop.eup %2795 }
 0xc55   :  { %975 = vrot.lane.b32.xlu0 %v2796_v26, %s3123_s4  ;;  %v2798_v37 = vpop.eup %2797 }
 0xc56   :  { %v1071_v40 = vmul.f32 %v2798_v37, %v1069_v39 }
 0xc65   :  { %v1074_v47 = vpop.permute.xlu0 %1073 }
 0xc66   :  { %v1076_v27 = vmul.f32 %v2798_v37, %v1074_v47 }
 0xc68   :  { %1078 = vrot.lane.b32.xlu1 %v1076_v27, %s3122_s25 }
 0xcc7   :  { %v976_v8 = vpop.permute.xlu0 %975 }
 0xcc8   :  { %v978_v30 = vmul.f32 %v2790_v58, %v976_v8 }
 0xcca   :  { %v1091_v33 = vrot.slane %v978_v30, %v1090_v28  ;;  %v2407_v54 = vsel %vm2406_vm8, %v3509_v21, %v978_v30 }
 0xccc   :  { %v1093_v50 = vmul.f32 %v1091_v33, %v3350_v61  ;;  %v1092_v35 = vmul.f32 %v1091_v33, %v3361_v5  ;;  %v1095_v36 = vmul.f32 %v1091_v33, %v3354_v10  ;;  %v1094_v38 = vmul.f32 %v1091_v33, %v3365_v7 }
 0xcce   :  { %1102 = vrot.lane.b32.xlu1 %v1093_v50, %s3125_s26  ;;  %1100 = vrot.lane.b32.xlu0 %v1092_v35, %s3125_s26 }
 0xcd2   :  { %1106 = vrot.lane.b32.xlu1 %v1095_v36, %s3125_s26  ;;  %1104 = vrot.lane.b32.xlu0 %v1094_v38, %s3125_s26 }
 0xcda   :  { %v1079_v41 = vpop.permute.xlu1 %1078 }
 0xcdb   :  { %v3569_v21 = vadd.f32 %v1079_v41, %v1071_v40 }
 0xcdd   :  { %2799 = vtanh.f32 %v3569_v21 }
 0xce7   :  { %v2800_v42 = vpop.eup %2799 }
 0xce8   :  { %1084 = vrot.lane.b32.xlu1 %v2800_v42, %s3123_s4 }
 0xd40   :  { %v1103_v18 = vpop.permute.xlu1 %1102  ;;  %v1101_v43 = vpop.permute.xlu0 %1100 }
 0xd41   :  { %v1115_v44 = vsel %vm55_vm0, %v1103_v18, 0.0  ;;  %v1112_v45 = vsel %vm55_vm0, %v1101_v43, 0.0 }
 0xd42   :  { %1116 = vadd.xlane.f32.xlu1 %v1115_v44  ;;  %1113 = vadd.xlane.f32.xlu0 %v1112_v45 }
 0xd44   :  { %v1107_v46 = vpop.permute.xlu1 %1106  ;;  %v1105_v15 = vpop.permute.xlu0 %1104 }
 0xd45   :  { %v1118_v1 = vsel %vm55_vm0, %v1105_v15, 0.0  ;;  %v1121_v2 = vsel %vm55_vm0, %v1107_v46, 0.0 }
 0xd5a   :  { %v1085_v52 = vpop.permute.xlu1 %1084 }
 0xd5b   :  { %v1087_v58 = vmul.f32 %v2798_v37, %v1085_v52 }
 0xd5d   :  { %v1200_v53 = vrot.slane %v1087_v58, %v1199_v49  ;;  %v3579_v55 = vsel %vm2408_vm9, %v2407_v54, %v1087_v58 }
 0xd5f   :  { %v1202_v56 = vmul.f32 %v1200_v53, %v3350_v61  ;;  %v1201_v59 = vmul.f32 %v1200_v53, %v3361_v5  ;;  %v1204_v6 = vmul.f32 %v1200_v53, %v3354_v10  ;;  %v1203_v9 = vmul.f32 %v1200_v53, %v3365_v7 }
 0xd61   :  { %1211 = vrot.lane.b32.xlu1 %v1202_v56, %s3125_s26  ;;  %1209 = vrot.lane.b32.xlu0 %v1201_v59, %s3125_s26  ;;  %v136_v56 = vpop.f32.mrb[2].mxu0 }
 0xd62   :  { %v2563_v59 = vpop.f32.mrb[3].mxu0 }
 0xd80   :  { %1119 = vadd.xlane.f32.xlu0 %v1118_v1 }
 0xd85   :  { %1122 = vadd.xlane.f32.xlu1 %v1121_v2 }
 0xd96   :  { %1215 = vrot.lane.b32.xlu1 %v1204_v6, %s3125_s26  ;;  %1213 = vrot.lane.b32.xlu0 %v1203_v9, %s3125_s26 }
 0xd9a   :  { %1148 = vrot.lane.b32.xlu0 %v3542_v32, %s3126_s27 }
 0xdcf   :  { %v1117_v4 = vpop.xlane.xlu1 %1116  ;;  %v1114_v12 = vpop.xlane.xlu0 %1113 }
 0xdd0   :  { %v1124_v23 = vadd.f32 %v1114_v12, %v3308_v51  ;;  %v1125_v24 = vadd.f32 %v1117_v4, %v3306_v48 }
 0xdd2   :  { %v2499_v25 = vmul.f32 -1.442695, %v1124_v23  ;;  %v2500_v26 = vmul.f32 -1.442695, %v1125_v24 }
 0xdd3   :  { %v1212_v14 = vpop.permute.xlu1 %1211  ;;  %v1210_v16 = vpop.permute.xlu0 %1209 }
 0xdd4   :  { %v1224_v17 = vsel %vm55_vm0, %v1212_v14, 0.0  ;;  %v1221_v20 = vsel %vm55_vm0, %v1210_v16, 0.0  ;;  %2801 = vpow2.f32 %v2499_v25 }
 0xdd5   :  { %1225 = vadd.xlane.f32.xlu0 %v1224_v17  ;;  %1222 = vadd.xlane.f32.xlu1 %v1221_v20  ;;  %2803 = vpow2.f32 %v2500_v26 }
 0xdde   :  { %v2802_v32 = vpop.eup %2801 }
 0xddf   :  { %v2804_v31 = vpop.eup %2803  ;;  %v1137_v37 = vadd.f32 1.0, %v2802_v32 }
 0xde0   :  { %v1138_v27 = vadd.f32 1.0, %v2804_v31 }
 0xde1   :  { %2805 = vrcp.f32 %v1137_v37 }
 0xdeb   :  { %v2806_v39 = vpop.eup %2805 }
 0xe0d   :  { %v1120_v47 = vpop.xlane.xlu0 %1119 }
 0xe0e   :  { %v1126_v8 = vadd.f32 %v1120_v47, %v3316_v62 }
 0xe10   :  { %2807 = vtanh.f32 %v1126_v8 }
 0xe11   :  { %v1214_v30 = vpop.permute.xlu0 %1213  ;;  %2809 = vrcp.f32 %v1138_v27 }
 0xe12   :  { %v1123_v33 = vpop.xlane.xlu1 %1122  ;;  %v1227_v54 = vsel %vm55_vm0, %v1214_v30, 0.0 }
 0xe13   :  { %v1127_v50 = vadd.f32 %v1123_v33, %v3313_v60  ;;  %1228 = vadd.xlane.f32.xlu0 %v1227_v54 }
 0xe15   :  { %v2501_v35 = vmul.f32 -1.442695, %v1127_v50  ;;  %v1149_v41 = vpop.permute.xlu0 %1148 }
 0xe16   :  { %v1216_v36 = vpop.permute.xlu1 %1215 }
 0xe17   :  { %2811 = vpow2.f32 %v2501_v35  ;;  %v1230_v38 = vsel %vm55_vm0, %v1216_v36, 0.0 }
 0xe18   :  { %1231 = vadd.xlane.f32.xlu1 %v1230_v38 }
 0xe1a   :  { %v2808_v40 = vpop.eup %2807 }
 0xe1b   :  { %v1152_v42 = vmul.f32 %v2808_v40, %v2806_v39  ;;  %v2810_v18 = vpop.eup %2809 }
 0xe1c   :  { %v1151_v43 = vmul.f32 %v2810_v18, %v1149_v41 }
 0xe1e   :  { %v1153_v44 = vadd.f32 %v1152_v42, %v1151_v43  ;;  %v3090_v42 = vld [vmem:[%s4003_s10] ss:$0 sm:$0xff] }
 0xe1f   :  { %v3620_v18 = vadd.f32 %v3090_v42, %v136_v56 }
 0xe20   :  { %2813 = vtanh.f32 %v1153_v44 }
 0xe21   :  { %v2812_v45 = vpop.eup %2811 }
 0xe22   :  { %v1139_v46 = vadd.f32 1.0, %v2812_v45 }
 0xe24   :  { %2815 = vrcp.f32 %v1139_v46 }
 0xe29   :  { %1257 = vrot.lane.b32.xlu0 %v1153_v44, %s3126_s27 }
 0xe2a   :  { %v2814_v52 = vpop.eup %2813 }
 0xe2e   :  { %v2816_v58 = vpop.eup %2815 }
 0xe2f   :  { %v1155_v53 = vmul.f32 %v2816_v58, %v2814_v52 }
 0xe31   :  { %1158 = vperm.xlu1 %2612, %v1155_v53  }
 0xe35   :  { %2613 = vset.pattern.permute.xlu1 %v3134_v63 }
 0xe62   :  { %v1223_v15 = vpop.xlane.xlu1 %1222  ;;  %v1226_v2 = vpop.xlane.xlu0 %1225 }
 0xe63   :  { %v1233_v1 = vadd.f32 %v1223_v15, %v3308_v51  ;;  %v1234_v6 = vadd.f32 %v1226_v2, %v3306_v48 }
 0xe65   :  { %v2503_v9 = vmul.f32 -1.442695, %v1233_v1  ;;  %v2504_v11 = vmul.f32 -1.442695, %v1234_v6 }
 0xe67   :  { %2817 = vpow2.f32 %v2503_v9 }
 0xe68   :  { %2819 = vpow2.f32 %v2504_v11 }
 0xe71   :  { %v2818_v4 = vpop.eup %2817 }
 0xe72   :  { %v2820_v12 = vpop.eup %2819  ;;  %v1246_v14 = vadd.f32 1.0, %v2818_v4 }
 0xe73   :  { %v1247_v17 = vadd.f32 1.0, %v2820_v12 }
 0xe74   :  { %2821 = vrcp.f32 %v1246_v14 }
 0xe7e   :  { %v2822_v26 = vpop.eup %2821 }
 0xea0   :  { %v1229_v16 = vpop.xlane.xlu0 %1228 }
 0xea1   :  { %v1235_v20 = vadd.f32 %v1229_v16, %v3316_v62 }
 0xea3   :  { %2823 = vtanh.f32 %v1235_v20 }
 0xea4   :  { %2825 = vrcp.f32 %v1247_v17  ;;  %v1258_v31 = vpop.permute.xlu0 %1257 }
 0xea5   :  { %v1232_v23 = vpop.xlane.xlu1 %1231 }
 0xea6   :  { %v1236_v24 = vadd.f32 %v1232_v23, %v3313_v60 }
 0xea8   :  { %v2505_v25 = vmul.f32 -1.442695, %v1236_v24  ;;  %v1178_v24 = vrot.slane %v3569_v21, 7 }
 0xeaa   :  { %2827 = vpow2.f32 %v2505_v25 }
 0xead   :  { %v2824_v32 = vpop.eup %2823 }
 0xeae   :  { %v1261_v37 = vmul.f32 %v2824_v32, %v2822_v26  ;;  %v2826_v47 = vpop.eup %2825 }
 0xeaf   :  { %v1260_v27 = vmul.f32 %v2826_v47, %v1258_v31 }
 0xeb0   :  { %v1159_v8 = vpop.permute.xlu1 %1158 }
 0xeb1   :  { %v1161_v30 = vmul.f32 %v3539_v29, %v1159_v8  ;;  %v3613_v33 = vadd.f32 %v1261_v37, %v1260_v27 }
 0xeb3   :  { %v1162_v54 = vsel %vm286_vm2, %v1161_v30, 0.0  ;;  %2829 = vtanh.f32 %v3613_v33 }
 0xeb4   :  { %v2828_v50 = vpop.eup %2827  ;;  %v1163_v35 = vrot.slane %v1162_v54, 4 }
 0xeb5   :  { %v1248_v36 = vadd.f32 1.0, %v2828_v50 }
 0xeb6   :  { %v1164_v38 = vadd.f32 %v1163_v35, %v1162_v54 }
 0xeb7   :  { %2831 = vrcp.f32 %v1248_v36 }
 0xeb8   :  { %v1165_v39 = vrot.slane %v1164_v38, 2 }
 0xeba   :  { %v1166_v40 = vadd.f32 %v1165_v39, %v1164_v38 }
 0xebc   :  { %v1167_v41 = vrot.slane %v1166_v40, 1 }
 0xebd   :  { %v2830_v44 = vpop.eup %2829 }
 0xebe   :  { %v1168_v43 = vadd.f32 %v1167_v41, %v1166_v40 }
 0xec0   :  { %v1169_v45 = vadd.f32 %v1168_v43, %v3620_v18 }
 0xec1   :  { %v2832_v46 = vpop.eup %2831 }
 0xec2   :  { %2833 = vtanh.f32 %v1169_v45  ;;  %v1264_v52 = vmul.f32 %v2832_v46, %v2830_v44  ;;  %v2502_v53 = vmul.f32 -1.442695, %v1169_v45 }
 0xec4   :  { %1267 = vperm.xlu1 %2613, %v1264_v52   ;;  %2835 = vpow2.f32 %v2502_v53 }
 0xecc   :  { %v2834_v58 = vpop.eup %2833 }
 0xecd   :  { %1182 = vrot.lane.b32.xlu0 %v2834_v58, %s3121_s20 }
 0xece   :  { %v2836_v59 = vpop.eup %2835 }
 0xecf   :  { %v1173_v63 = vadd.f32 1.0, %v2836_v59 }
 0xed1   :  { %2837 = vrcp.f32 %v1173_v63 }
 0xedb   :  { %v2838_v15 = vpop.eup %2837 }
 0xedc   :  { %v1180_v26 = vmul.f32 %v2838_v15, %v1178_v24 }
 0xf3f   :  { %v1183_v1 = vpop.permute.xlu0 %1182 }
 0xf40   :  { %v1185_v56 = vmul.f32 %v2838_v15, %v1183_v1 }
 0xf42   :  { %1187 = vrot.lane.b32.xlu1 %v1185_v56, %s3122_s25 }
 0xf43   :  { %v1268_v2 = vpop.permute.xlu1 %1267 }
 0xf44   :  { %v1270_v6 = vmul.f32 %v3539_v29, %v1268_v2 }
 0xf46   :  { %v1271_v9 = vsel %vm286_vm2, %v1270_v6, 0.0 }
 0xf47   :  { %v1272_v11 = vrot.slane %v1271_v9, 4 }
 0xf49   :  { %v1273_v4 = vadd.f32 %v1272_v11, %v1271_v9 }
 0xf4b   :  { %v1274_v12 = vrot.slane %v1273_v4, 2 }
 0xf4d   :  { %v1275_v14 = vadd.f32 %v1274_v12, %v1273_v4 }
 0xf4f   :  { %v1276_v16 = vrot.slane %v1275_v14, 1 }
 0xf51   :  { %v1277_v17 = vadd.f32 %v1276_v16, %v1275_v14  ;;  %v3135_v14 = vmov 9  }
 0xf52   :  { %2614 = vset.pattern.permute.xlu1 %v3135_v14 }
 0xf53   :  { %v1278_v20 = vadd.f32 %v1277_v17, %v3620_v18 }
 0xf55   :  { %2839 = vtanh.f32 %v1278_v20  ;;  %v2506_v25 = vmul.f32 -1.442695, %v1278_v20 }
 0xf57   :  { %2841 = vpow2.f32 %v2506_v25 }
 0xf5f   :  { %v2840_v23 = vpop.eup %2839 }
 0xf60   :  { %1291 = vrot.lane.b32.xlu0 %v2840_v23, %s3121_s20 }
 0xf61   :  { %v2842_v37 = vpop.eup %2841 }
 0xf62   :  { %v1282_v27 = vadd.f32 1.0, %v2842_v37 }
 0xfb4   :  { %v1188_v32 = vpop.permute.xlu1 %1187 }
 0xfb5   :  { %v1190_v31 = vadd.f32 %v1188_v32, %v1180_v26 }
 0xfb7   :  { %2843 = vtanh.f32 %v1190_v31  ;;  %v1287_v41 = vrot.slane %v1190_v31, 7 }
 0xfb8   :  { %2845 = vrcp.f32 %v1282_v27 }
 0xfc1   :  { %v2844_v47 = vpop.eup %2843 }
 0xfc2   :  { %1193 = vrot.lane.b32.xlu0 %v2844_v47, %s3123_s4  ;;  %v2846_v8 = vpop.eup %2845 }
 0xfc3   :  { %v1289_v42 = vmul.f32 %v2846_v8, %v1287_v41 }
 0xfd2   :  { %v1292_v30 = vpop.permute.xlu0 %1291 }
 0xfd3   :  { %v1294_v54 = vmul.f32 %v2846_v8, %v1292_v30 }
 0xfd5   :  { %1296 = vrot.lane.b32.xlu1 %v1294_v54, %s3122_s25 }
0x1034   :  { %v1194_v50 = vpop.permute.xlu0 %1193 }
0x1035   :  { %v3632_v35 = vmul.f32 %v2838_v15, %v1194_v50 }
0x1037   :  { %v1309_v21 = vrot.slane %v3632_v35, %v3344_v13 }
0x1039   :  { %v1311_v36 = vmul.f32 %v1309_v21, %v3350_v61  ;;  %v1310_v38 = vmul.f32 %v1309_v21, %v3361_v5  ;;  %v1313_v39 = vmul.f32 %v1309_v21, %v3354_v10  ;;  %v1312_v40 = vmul.f32 %v1309_v21, %v3365_v7 }
0x103b   :  { %1320 = vrot.lane.b32.xlu1 %v1311_v36, %s3125_s26  ;;  %1318 = vrot.lane.b32.xlu0 %v1310_v38, %s3125_s26 }
0x103f   :  { %1324 = vrot.lane.b32.xlu1 %v1313_v39, %s3125_s26  ;;  %1322 = vrot.lane.b32.xlu0 %v1312_v40, %s3125_s26 }
0x1047   :  { %v1297_v43 = vpop.permute.xlu1 %1296 }
0x1048   :  { %v3644_v44 = vadd.f32 %v1297_v43, %v1289_v42 }
0x104a   :  { %2847 = vtanh.f32 %v3644_v44 }
0x1054   :  { %v2848_v45 = vpop.eup %2847 }
0x1055   :  { %1302 = vrot.lane.b32.xlu1 %v2848_v45, %s3123_s4 }
0x10ad   :  { %v1321_v46 = vpop.permute.xlu1 %1320  ;;  %v1319_v52 = vpop.permute.xlu0 %1318 }
0x10ae   :  { %v1333_v58 = vsel %vm55_vm0, %v1321_v46, 0.0  ;;  %v1330_v53 = vsel %vm55_vm0, %v1319_v52, 0.0 }
0x10af   :  { %1334 = vadd.xlane.f32.xlu1 %v1333_v58  ;;  %1331 = vadd.xlane.f32.xlu0 %v1330_v53 }
0x10b1   :  { %v1325_v59 = vpop.permute.xlu1 %1324  ;;  %v1323_v6 = vpop.permute.xlu0 %1322 }
0x10b2   :  { %v1336_v9 = vsel %vm55_vm0, %v1323_v6, 0.0  ;;  %v1339_v11 = vsel %vm55_vm0, %v1325_v59, 0.0  ;;  %v3136_v6 = vmov 10  }
0x10c7   :  { %v1303_v63 = vpop.permute.xlu1 %1302 }
0x10c8   :  { %v3650_v15 = vmul.f32 %v2846_v8, %v1303_v63 }
0x10ca   :  { %v1418_v1 = vrot.slane %v3650_v15, %v3373_v19 }
0x10cc   :  { %v1420_v56 = vmul.f32 %v1418_v1, %v3350_v61  ;;  %v1419_v2 = vmul.f32 %v1418_v1, %v3361_v5  ;;  %v1422_v4 = vmul.f32 %v1418_v1, %v3354_v10  ;;  %v1421_v12 = vmul.f32 %v1418_v1, %v3365_v7 }
0x10ce   :  { %1429 = vrot.lane.b32.xlu1 %v1420_v56, %s3125_s26  ;;  %1427 = vrot.lane.b32.xlu0 %v1419_v2, %s3125_s26 }
0x10ed   :  { %1337 = vadd.xlane.f32.xlu0 %v1336_v9 }
0x10f2   :  { %1340 = vadd.xlane.f32.xlu1 %v1339_v11 }
0x1103   :  { %1433 = vrot.lane.b32.xlu1 %v1422_v4, %s3125_s26  ;;  %1431 = vrot.lane.b32.xlu0 %v1421_v12, %s3125_s26 }
0x1107   :  { %1366 = vrot.lane.b32.xlu0 %v3613_v33, %s3126_s27 }
0x113c   :  { %v1335_v16 = vpop.xlane.xlu1 %1334  ;;  %v1332_v17 = vpop.xlane.xlu0 %1331 }
0x113d   :  { %v1342_v26 = vadd.f32 %v1332_v17, %v3308_v51  ;;  %v1343_v32 = vadd.f32 %v1335_v16, %v3306_v48 }
0x113f   :  { %v2507_v31 = vmul.f32 -1.442695, %v1342_v26  ;;  %v2508_v37 = vmul.f32 -1.442695, %v1343_v32 }
0x1140   :  { %v1430_v20 = vpop.permute.xlu1 %1429  ;;  %v1428_v23 = vpop.permute.xlu0 %1427 }
0x1141   :  { %v1442_v24 = vsel %vm55_vm0, %v1430_v20, 0.0  ;;  %v1439_v25 = vsel %vm55_vm0, %v1428_v23, 0.0  ;;  %2849 = vpow2.f32 %v2507_v31 }
0x1142   :  { %1443 = vadd.xlane.f32.xlu0 %v1442_v24  ;;  %1440 = vadd.xlane.f32.xlu1 %v1439_v25  ;;  %2851 = vpow2.f32 %v2508_v37 }
0x114b   :  { %v2850_v33 = vpop.eup %2849 }
0x114c   :  { %v2852_v47 = vpop.eup %2851  ;;  %v1355_v27 = vadd.f32 1.0, %v2850_v33 }
0x114d   :  { %v1356_v30 = vadd.f32 1.0, %v2852_v47 }
0x114e   :  { %2853 = vrcp.f32 %v1355_v27 }
0x1158   :  { %v2854_v42 = vpop.eup %2853 }
0x117a   :  { %v1338_v8 = vpop.xlane.xlu0 %1337 }
0x117b   :  { %v1344_v54 = vadd.f32 %v1338_v8, %v3316_v62 }
0x117d   :  { %2855 = vtanh.f32 %v1344_v54 }
0x117e   :  { %v1432_v50 = vpop.permute.xlu0 %1431  ;;  %2857 = vrcp.f32 %v1356_v30 }
0x117f   :  { %v1341_v21 = vpop.xlane.xlu1 %1340  ;;  %v1445_v36 = vsel %vm55_vm0, %v1432_v50, 0.0 }
0x1180   :  { %v1345_v38 = vadd.f32 %v1341_v21, %v3313_v60  ;;  %1446 = vadd.xlane.f32.xlu0 %v1445_v36 }
0x1182   :  { %v2509_v39 = vmul.f32 -1.442695, %v1345_v38  ;;  %v1367_v45 = vpop.permute.xlu0 %1366 }
0x1183   :  { %v1434_v40 = vpop.permute.xlu1 %1433 }
0x1184   :  { %2859 = vpow2.f32 %v2509_v39  ;;  %v1448_v41 = vsel %vm55_vm0, %v1434_v40, 0.0 }
0x1185   :  { %1449 = vadd.xlane.f32.xlu1 %v1448_v41 }
0x1187   :  { %v2856_v43 = vpop.eup %2855 }
0x1188   :  { %v1370_v46 = vmul.f32 %v2856_v43, %v2854_v42  ;;  %v2858_v52 = vpop.eup %2857 }
0x1189   :  { %v1369_v58 = vmul.f32 %v2858_v52, %v1367_v45 }
0x118b   :  { %v1371_v53 = vadd.f32 %v1370_v46, %v1369_v58 }
0x118d   :  { %2861 = vtanh.f32 %v1371_v53 }
0x118e   :  { %v2860_v59 = vpop.eup %2859 }
0x118f   :  { %v1357_v63 = vadd.f32 1.0, %v2860_v59 }
0x1191   :  { %2863 = vrcp.f32 %v1357_v63 }
0x1196   :  { %1475 = vrot.lane.b32.xlu0 %v1371_v53, %s3126_s27 }
0x1197   :  { %v2862_v1 = vpop.eup %2861 }
0x119b   :  { %v2864_v56 = vpop.eup %2863 }
0x119c   :  { %v1373_v2 = vmul.f32 %v2864_v56, %v2862_v1 }
0x119e   :  { %1376 = vperm.xlu1 %2614, %v1373_v2  }
0x11a2   :  { %2615 = vset.pattern.permute.xlu1 %v3136_v6 }
0x11cf   :  { %v1441_v9 = vpop.xlane.xlu1 %1440  ;;  %v1444_v4 = vpop.xlane.xlu0 %1443 }
0x11d0   :  { %v1451_v11 = vadd.f32 %v1441_v9, %v3308_v51  ;;  %v1452_v12 = vadd.f32 %v1444_v4, %v3306_v48 }
0x11d2   :  { %v2511_v14 = vmul.f32 -1.442695, %v1451_v11  ;;  %v2512_v16 = vmul.f32 -1.442695, %v1452_v12 }
0x11d4   :  { %2865 = vpow2.f32 %v2511_v14 }
0x11d5   :  { %2867 = vpow2.f32 %v2512_v16 }
0x11de   :  { %v2866_v17 = vpop.eup %2865 }
0x11df   :  { %v2868_v20 = vpop.eup %2867  ;;  %v1464_v23 = vadd.f32 1.0, %v2866_v17 }
0x11e0   :  { %v1465_v25 = vadd.f32 1.0, %v2868_v20 }
0x11e1   :  { %2869 = vrcp.f32 %v1464_v23 }
0x11eb   :  { %v2870_v33 = vpop.eup %2869 }
0x120d   :  { %v1447_v24 = vpop.xlane.xlu0 %1446 }
0x120e   :  { %v1453_v26 = vadd.f32 %v1447_v24, %v3316_v62 }
0x1210   :  { %2871 = vtanh.f32 %v1453_v26 }
0x1211   :  { %2873 = vrcp.f32 %v1465_v25  ;;  %v1476_v27 = vpop.permute.xlu0 %1475 }
0x1212   :  { %v1450_v32 = vpop.xlane.xlu1 %1449 }
0x1213   :  { %v1454_v31 = vadd.f32 %v1450_v32, %v3313_v60 }
0x1215   :  { %v2513_v37 = vmul.f32 -1.442695, %v1454_v31 }
0x1217   :  { %2875 = vpow2.f32 %v2513_v37  ;;  %v1396_v37 = vrot.slane %v3644_v44, 7  ;;  %v2410_v44 = vsel %vm2396_vm3, %v3632_v35, %v3650_v15 }
0x121a   :  { %v2872_v47 = vpop.eup %2871 }
0x121b   :  { %v1479_v8 = vmul.f32 %v2872_v47, %v2870_v33  ;;  %v2874_v30 = vpop.eup %2873 }
0x121c   :  { %v1478_v54 = vmul.f32 %v2874_v30, %v1476_v27 }
0x121d   :  { %v1377_v50 = vpop.permute.xlu1 %1376 }
0x121e   :  { %v1379_v21 = vmul.f32 %v3539_v29, %v1377_v50  ;;  %v3680_v36 = vadd.f32 %v1479_v8, %v1478_v54 }
0x1220   :  { %v1380_v38 = vsel %vm286_vm2, %v1379_v21, 0.0  ;;  %2877 = vtanh.f32 %v3680_v36 }
0x1221   :  { %v2876_v39 = vpop.eup %2875  ;;  %v1381_v40 = vrot.slane %v1380_v38, 4 }
0x1222   :  { %v1466_v41 = vadd.f32 1.0, %v2876_v39 }
0x1223   :  { %v1382_v42 = vadd.f32 %v1381_v40, %v1380_v38 }
0x1224   :  { %2879 = vrcp.f32 %v1466_v41 }
0x1225   :  { %v1383_v43 = vrot.slane %v1382_v42, 2 }
0x1227   :  { %v1384_v45 = vadd.f32 %v1383_v43, %v1382_v42 }
0x1229   :  { %v1385_v46 = vrot.slane %v1384_v45, 1 }
0x122a   :  { %v2878_v58 = vpop.eup %2877 }
0x122b   :  { %v1386_v52 = vadd.f32 %v1385_v46, %v1384_v45 }
0x122d   :  { %v1387_v53 = vadd.f32 %v1386_v52, %v3620_v18 }
0x122e   :  { %v2880_v59 = vpop.eup %2879 }
0x122f   :  { %2881 = vtanh.f32 %v1387_v53  ;;  %v1482_v63 = vmul.f32 %v2880_v59, %v2878_v58  ;;  %v2510_v56 = vmul.f32 -1.442695, %v1387_v53 }
0x1231   :  { %1485 = vperm.xlu1 %2615, %v1482_v63   ;;  %2883 = vpow2.f32 %v2510_v56 }
0x1239   :  { %v2882_v1 = vpop.eup %2881 }
0x123a   :  { %1400 = vrot.lane.b32.xlu0 %v2882_v1, %s3121_s20 }
0x123b   :  { %v2884_v2 = vpop.eup %2883 }
0x123c   :  { %v1391_v6 = vadd.f32 1.0, %v2884_v2 }
0x123e   :  { %2885 = vrcp.f32 %v1391_v6 }
0x1248   :  { %v2886_v9 = vpop.eup %2885 }
0x1249   :  { %v1398_v47 = vmul.f32 %v2886_v9, %v1396_v37 }
0x12ac   :  { %v1401_v11 = vpop.permute.xlu0 %1400 }
0x12ad   :  { %v1403_v4 = vmul.f32 %v2886_v9, %v1401_v11 }
0x12af   :  { %1405 = vrot.lane.b32.xlu1 %v1403_v4, %s3122_s25 }
0x12b0   :  { %v1486_v12 = vpop.permute.xlu1 %1485 }
0x12b1   :  { %v1488_v14 = vmul.f32 %v3539_v29, %v1486_v12 }
0x12b3   :  { %v1489_v16 = vsel %vm286_vm2, %v1488_v14, 0.0 }
0x12b4   :  { %v1490_v17 = vrot.slane %v1489_v16, 4 }
0x12b6   :  { %v1491_v20 = vadd.f32 %v1490_v17, %v1489_v16 }
0x12b8   :  { %v1492_v23 = vrot.slane %v1491_v20, 2 }
0x12ba   :  { %v1493_v24 = vadd.f32 %v1492_v23, %v1491_v20 }
0x12bc   :  { %v1494_v25 = vrot.slane %v1493_v24, 1 }
0x12be   :  { %v1495_v26 = vadd.f32 %v1494_v25, %v1493_v24  ;;  %v3137_v24 = vmov 11  }
0x12bf   :  { %2616 = vset.pattern.permute.xlu1 %v3137_v24 }
0x12c0   :  { %v1496_v32 = vadd.f32 %v1495_v26, %v3620_v18 }
0x12c2   :  { %2887 = vtanh.f32 %v1496_v32  ;;  %v2514_v33 = vmul.f32 -1.442695, %v1496_v32 }
0x12c4   :  { %2889 = vpow2.f32 %v2514_v33 }
0x12cc   :  { %v2888_v31 = vpop.eup %2887 }
0x12cd   :  { %1509 = vrot.lane.b32.xlu0 %v2888_v31, %s3121_s20 }
0x12ce   :  { %v2890_v8 = vpop.eup %2889 }
0x12cf   :  { %v1500_v54 = vadd.f32 1.0, %v2890_v8 }
0x1321   :  { %v1406_v27 = vpop.permute.xlu1 %1405 }
0x1322   :  { %v1408_v29 = vadd.f32 %v1406_v27, %v1398_v47 }
0x1324   :  { %2891 = vtanh.f32 %v1408_v29  ;;  %v1505_v35 = vrot.slane %v1408_v29, 7 }
0x1325   :  { %2893 = vrcp.f32 %v1500_v54 }
0x132e   :  { %v2892_v30 = vpop.eup %2891 }
0x132f   :  { %1411 = vrot.lane.b32.xlu0 %v2892_v30, %s3123_s4  ;;  %v2894_v50 = vpop.eup %2893 }
0x133f   :  { %v1510_v21 = vpop.permute.xlu0 %1509 }
0x1340   :  { %v1512_v38 = vmul.f32 %v2894_v50, %v1510_v21 }
0x1342   :  { %1514 = vrot.lane.b32.xlu1 %v1512_v38, %s3122_s25 }
0x13a1   :  { %v1412_v39 = vpop.permute.xlu0 %1411 }
0x13a2   :  { %v1414_v40 = vmul.f32 %v2886_v9, %v1412_v39 }
0x13a4   :  { %v1527_v41 = vrot.slane %v1414_v40, %v654_v3  ;;  %v2411_v42 = vsel %vm2398_vm4, %v2410_v44, %v1414_v40  ;;  %v1507_v3 = vmul.f32 %v2894_v50, %v1505_v35 }
0x13a6   :  { %v1529_v43 = vmul.f32 %v1527_v41, %v3350_v61  ;;  %v1528_v45 = vmul.f32 %v1527_v41, %v3361_v5  ;;  %v1531_v46 = vmul.f32 %v1527_v41, %v3354_v10  ;;  %v1530_v52 = vmul.f32 %v1527_v41, %v3365_v7 }
0x13a8   :  { %1538 = vrot.lane.b32.xlu1 %v1529_v43, %s3125_s26  ;;  %1536 = vrot.lane.b32.xlu0 %v1528_v45, %s3125_s26 }
0x13ac   :  { %1542 = vrot.lane.b32.xlu1 %v1531_v46, %s3125_s26  ;;  %1540 = vrot.lane.b32.xlu0 %v1530_v52, %s3125_s26 }
0x13b4   :  { %v1515_v15 = vpop.permute.xlu1 %1514 }
0x13b5   :  { %v3708_v58 = vadd.f32 %v1515_v15, %v1507_v3 }
0x13b7   :  { %2895 = vtanh.f32 %v3708_v58 }
0x13c1   :  { %v2896_v53 = vpop.eup %2895 }
0x13c2   :  { %1520 = vrot.lane.b32.xlu1 %v2896_v53, %s3123_s4 }
0x141a   :  { %v1539_v59 = vpop.permute.xlu1 %1538  ;;  %v1537_v63 = vpop.permute.xlu0 %1536 }
0x141b   :  { %v1551_v1 = vsel %vm55_vm0, %v1539_v59, 0.0  ;;  %v1548_v56 = vsel %vm55_vm0, %v1537_v63, 0.0 }
0x141c   :  { %1552 = vadd.xlane.f32.xlu1 %v1551_v1  ;;  %1549 = vadd.xlane.f32.xlu0 %v1548_v56 }
0x141e   :  { %v1543_v2 = vpop.permute.xlu1 %1542  ;;  %v1541_v16 = vpop.permute.xlu0 %1540 }
0x141f   :  { %v1554_v17 = vsel %vm55_vm0, %v1541_v16, 0.0  ;;  %v1557_v20 = vsel %vm55_vm0, %v1543_v2, 0.0 }
0x1434   :  { %v1521_v6 = vpop.permute.xlu1 %1520 }
0x1435   :  { %v1523_v9 = vmul.f32 %v2894_v50, %v1521_v6 }
0x1437   :  { %v1636_v11 = vrot.slane %v1523_v9, %v763_v0  ;;  %v3717_v4 = vsel %vm2400_vm5, %v2411_v42, %v1523_v9  ;;  %v3138_v9 = vmov 12  }
0x1439   :  { %v1638_v12 = vmul.f32 %v1636_v11, %v3350_v61  ;;  %v1637_v14 = vmul.f32 %v1636_v11, %v3361_v5  ;;  %v1640_v0 = vmul.f32 %v1636_v11, %v3354_v10  ;;  %v1639_v23 = vmul.f32 %v1636_v11, %v3365_v7 }
0x143b   :  { %1647 = vrot.lane.b32.xlu1 %v1638_v12, %s3125_s26  ;;  %1645 = vrot.lane.b32.xlu0 %v1637_v14, %s3125_s26 }
0x145a   :  { %1555 = vadd.xlane.f32.xlu0 %v1554_v17 }
0x145f   :  { %1558 = vadd.xlane.f32.xlu1 %v1557_v20 }
0x1470   :  { %1651 = vrot.lane.b32.xlu1 %v1640_v0, %s3125_s26  ;;  %1649 = vrot.lane.b32.xlu0 %v1639_v23, %s3125_s26 }
0x1474   :  { %1584 = vrot.lane.b32.xlu0 %v3680_v36, %s3126_s27 }
0x14a9   :  { %v1553_v25 = vpop.xlane.xlu1 %1552  ;;  %v1550_v26 = vpop.xlane.xlu0 %1549 }
0x14aa   :  { %v1560_v47 = vadd.f32 %v1550_v26, %v3308_v51  ;;  %v1561_v27 = vadd.f32 %v1553_v25, %v3306_v48 }
0x14ac   :  { %v2515_v29 = vmul.f32 -1.442695, %v1560_v47  ;;  %v2516_v8 = vmul.f32 -1.442695, %v1561_v27 }
0x14ad   :  { %v1648_v32 = vpop.permute.xlu1 %1647  ;;  %v1646_v31 = vpop.permute.xlu0 %1645 }
0x14ae   :  { %v1660_v37 = vsel %vm55_vm0, %v1648_v32, 0.0  ;;  %v1657_v33 = vsel %vm55_vm0, %v1646_v31, 0.0  ;;  %2897 = vpow2.f32 %v2515_v29 }
0x14af   :  { %1661 = vadd.xlane.f32.xlu0 %v1660_v37  ;;  %1658 = vadd.xlane.f32.xlu1 %v1657_v33  ;;  %2899 = vpow2.f32 %v2516_v8 }
0x14b8   :  { %v2898_v36 = vpop.eup %2897 }
0x14b9   :  { %v2900_v30 = vpop.eup %2899  ;;  %v1573_v54 = vadd.f32 1.0, %v2898_v36 }
0x14ba   :  { %v1574_v21 = vadd.f32 1.0, %v2900_v30 }
0x14bb   :  { %2901 = vrcp.f32 %v1573_v54 }
0x14c5   :  { %v2902_v46 = vpop.eup %2901 }
0x14e7   :  { %v1556_v50 = vpop.xlane.xlu0 %1555 }
0x14e8   :  { %v1562_v38 = vadd.f32 %v1556_v50, %v3316_v62  ;;  %v3747_v50 = vld [vmem:[%s4001_s8] sm:$0xff] }
0x14ea   :  { %2903 = vtanh.f32 %v1562_v38 }
0x14eb   :  { %v1650_v39 = vpop.permute.xlu0 %1649  ;;  %2905 = vrcp.f32 %v1574_v21 }
0x14ec   :  { %v1663_v40 = vsel %vm55_vm0, %v1650_v39, 0.0  ;;  %v1559_v44 = vpop.xlane.xlu1 %1558 }
0x14ed   :  { %v1563_v41 = vadd.f32 %v1559_v44, %v3313_v60  ;;  %1664 = vadd.xlane.f32.xlu0 %v1663_v40 }
0x14ef   :  { %v2517_v42 = vmul.f32 -1.442695, %v1563_v41  ;;  %v1585_v35 = vpop.permute.xlu0 %1584 }
0x14f0   :  { %v1652_v43 = vpop.permute.xlu1 %1651 }
0x14f1   :  { %2907 = vpow2.f32 %v2517_v42  ;;  %v1666_v45 = vsel %vm55_vm0, %v1652_v43, 0.0 }
0x14f2   :  { %1667 = vadd.xlane.f32.xlu1 %v1666_v45 }
0x14f4   :  { %v2904_v52 = vpop.eup %2903 }
0x14f5   :  { %v1588_v3 = vmul.f32 %v2904_v52, %v2902_v46  ;;  %v2906_v15 = vpop.eup %2905 }
0x14f6   :  { %v1587_v53 = vmul.f32 %v2906_v15, %v1585_v35 }
0x14f8   :  { %v1589_v59 = vadd.f32 %v1588_v3, %v1587_v53 }
0x14fa   :  { %2909 = vtanh.f32 %v1589_v59 }
0x14fb   :  { %v2908_v63 = vpop.eup %2907 }
0x14fc   :  { %v1575_v1 = vadd.f32 1.0, %v2908_v63 }
0x14fe   :  { %2911 = vrcp.f32 %v1575_v1 }
0x1503   :  { %1693 = vrot.lane.b32.xlu0 %v1589_v59, %s3126_s27 }
0x1504   :  { %v2910_v56 = vpop.eup %2909 }
0x1508   :  { %v2912_v2 = vpop.eup %2911 }
0x1509   :  { %v1591_v6 = vmul.f32 %v2912_v2, %v2910_v56 }
0x150b   :  { %1594 = vperm.xlu1 %2616, %v1591_v6  }
0x150f   :  { %2617 = vset.pattern.permute.xlu1 %v3138_v9 }
0x153c   :  { %v1659_v11 = vpop.xlane.xlu1 %1658  ;;  %v1662_v14 = vpop.xlane.xlu0 %1661 }
0x153d   :  { %v1669_v12 = vadd.f32 %v1659_v11, %v3308_v51  ;;  %v1670_v16 = vadd.f32 %v1662_v14, %v3306_v48 }
0x153f   :  { %v2519_v17 = vmul.f32 -1.442695, %v1669_v12  ;;  %v2520_v20 = vmul.f32 -1.442695, %v1670_v16 }
0x1541   :  { %2913 = vpow2.f32 %v2519_v17 }
0x1542   :  { %2915 = vpow2.f32 %v2520_v20 }
0x154b   :  { %v2914_v0 = vpop.eup %2913 }
0x154c   :  { %v2916_v23 = vpop.eup %2915  ;;  %v1682_v24 = vadd.f32 1.0, %v2914_v0 }
0x154d   :  { %v1683_v26 = vadd.f32 1.0, %v2916_v23 }
0x154e   :  { %2917 = vrcp.f32 %v1682_v24 }
0x1558   :  { %v2918_v47 = vpop.eup %2917 }
0x157a   :  { %v1665_v25 = vpop.xlane.xlu0 %1664 }
0x157b   :  { %v1671_v32 = vadd.f32 %v1665_v25, %v3316_v62 }
0x157d   :  { %2919 = vtanh.f32 %v1671_v32  ;;  %v1614_v32 = vrot.slane %v3708_v58, 7 }
0x157e   :  { %2921 = vrcp.f32 %v1683_v26  ;;  %v1694_v29 = vpop.permute.xlu0 %1693 }
0x157f   :  { %v1668_v31 = vpop.xlane.xlu1 %1667 }
0x1580   :  { %v1672_v37 = vadd.f32 %v1668_v31, %v3313_v60 }
0x1582   :  { %v2521_v33 = vmul.f32 -1.442695, %v1672_v37 }
0x1584   :  { %2923 = vpow2.f32 %v2521_v33 }
0x1587   :  { %v2920_v27 = vpop.eup %2919 }
0x1588   :  { %v1697_v8 = vmul.f32 %v2920_v27, %v2918_v47  ;;  %v2922_v36 = vpop.eup %2921 }
0x1589   :  { %v1696_v30 = vmul.f32 %v2922_v36, %v1694_v29 }
0x158a   :  { %v1595_v54 = vpop.permute.xlu1 %1594 }
0x158b   :  { %v1597_v21 = vmul.f32 %v3747_v50, %v1595_v54  ;;  %v3750_v38 = vadd.f32 %v1697_v8, %v1696_v30 }
0x158d   :  { %v1598_v39 = vsel %vm286_vm2, %v1597_v21, 0.0  ;;  %2925 = vtanh.f32 %v3750_v38 }
0x158e   :  { %v2924_v40 = vpop.eup %2923  ;;  %v1599_v44 = vrot.slane %v1598_v39, 4 }
0x158f   :  { %v1684_v41 = vadd.f32 1.0, %v2924_v40 }
0x1590   :  { %v1600_v42 = vadd.f32 %v1599_v44, %v1598_v39 }
0x1591   :  { %2927 = vrcp.f32 %v1684_v41 }
0x1592   :  { %v1601_v43 = vrot.slane %v1600_v42, 2 }
0x1594   :  { %v1602_v45 = vadd.f32 %v1601_v43, %v1600_v42 }
0x1596   :  { %v1603_v46 = vrot.slane %v1602_v45, 1 }
0x1597   :  { %v2926_v35 = vpop.eup %2925 }
0x1598   :  { %v1604_v52 = vadd.f32 %v1603_v46, %v1602_v45 }
0x159a   :  { %v1605_v3 = vadd.f32 %v1604_v52, %v3620_v18 }
0x159b   :  { %v2928_v15 = vpop.eup %2927 }
0x159c   :  { %2929 = vtanh.f32 %v1605_v3  ;;  %v1700_v53 = vmul.f32 %v2928_v15, %v2926_v35  ;;  %v2518_v63 = vmul.f32 -1.442695, %v1605_v3 }
0x159e   :  { %1703 = vperm.xlu1 %2617, %v1700_v53   ;;  %2931 = vpow2.f32 %v2518_v63 }
0x15a6   :  { %v2930_v59 = vpop.eup %2929 }
0x15a7   :  { %1618 = vrot.lane.b32.xlu0 %v2930_v59, %s3121_s20 }
0x15a8   :  { %v2932_v1 = vpop.eup %2931 }
0x15a9   :  { %v1609_v56 = vadd.f32 1.0, %v2932_v1 }
0x15ab   :  { %2933 = vrcp.f32 %v1609_v56 }
0x15b5   :  { %v2934_v2 = vpop.eup %2933 }
0x15b6   :  { %v1616_v37 = vmul.f32 %v2934_v2, %v1614_v32 }
0x1619   :  { %v1619_v6 = vpop.permute.xlu0 %1618 }
0x161a   :  { %v1621_v9 = vmul.f32 %v2934_v2, %v1619_v6 }
0x161c   :  { %1623 = vrot.lane.b32.xlu1 %v1621_v9, %s3122_s25 }
0x161d   :  { %v1704_v11 = vpop.permute.xlu1 %1703 }
0x161e   :  { %v1706_v12 = vmul.f32 %v3747_v50, %v1704_v11 }
0x1620   :  { %v1707_v14 = vsel %vm286_vm2, %v1706_v12, 0.0 }
0x1621   :  { %v1708_v16 = vrot.slane %v1707_v14, 4 }
0x1623   :  { %v1709_v17 = vadd.f32 %v1708_v16, %v1707_v14 }
0x1625   :  { %v1710_v20 = vrot.slane %v1709_v17, 2 }
0x1627   :  { %v1711_v0 = vadd.f32 %v1710_v20, %v1709_v17  ;;  %v3139_v17 = vmov 13  }
0x1628   :  { %2618 = vset.pattern.permute.xlu1 %v3139_v17 }
0x1629   :  { %v1712_v23 = vrot.slane %v1711_v0, 1 }
0x162b   :  { %v1713_v24 = vadd.f32 %v1712_v23, %v1711_v0 }
0x162d   :  { %v1714_v25 = vadd.f32 %v1713_v24, %v3620_v18 }
0x162f   :  { %2935 = vtanh.f32 %v1714_v25  ;;  %v2522_v31 = vmul.f32 -1.442695, %v1714_v25 }
0x1631   :  { %2937 = vpow2.f32 %v2522_v31 }
0x1639   :  { %v2936_v26 = vpop.eup %2935 }
0x163a   :  { %1727 = vrot.lane.b32.xlu0 %v2936_v26, %s3121_s20 }
0x163b   :  { %v2938_v27 = vpop.eup %2937 }
0x163c   :  { %v1718_v8 = vadd.f32 1.0, %v2938_v27 }
0x168e   :  { %v1624_v33 = vpop.permute.xlu1 %1623 }
0x168f   :  { %v1626_v47 = vadd.f32 %v1624_v33, %v1616_v37 }
0x1691   :  { %2939 = vtanh.f32 %v1626_v47 }
0x1692   :  { %2941 = vrcp.f32 %v1718_v8 }
0x169b   :  { %v2940_v29 = vpop.eup %2939 }
0x169c   :  { %1629 = vrot.lane.b32.xlu0 %v2940_v29, %s3123_s4  ;;  %v2942_v36 = vpop.eup %2941 }
0x16ac   :  { %v1728_v30 = vpop.permute.xlu0 %1727 }
0x16ad   :  { %v1730_v54 = vmul.f32 %v2942_v36, %v1728_v30 }
0x16af   :  { %1732 = vrot.lane.b32.xlu1 %v1730_v54, %s3122_s25 }
0x170e   :  { %v1630_v21 = vpop.permute.xlu0 %1629 }
0x170f   :  { %v1632_v39 = vmul.f32 %v2934_v2, %v1630_v21 }
0x1711   :  { %v1745_v58 = vrot.slane %v1632_v39, %v872_v34  ;;  %v2413_v40 = vsel %vm2402_vm6, %v3717_v4, %v1632_v39  ;;  %v1723_v34 = vrot.slane %v1626_v47, 7 }
0x1713   :  { %v1747_v44 = vmul.f32 %v1745_v58, %v3350_v61  ;;  %v1746_v41 = vmul.f32 %v1745_v58, %v3361_v5  ;;  %v1749_v42 = vmul.f32 %v1745_v58, %v3354_v10  ;;  %v1748_v43 = vmul.f32 %v1745_v58, %v3365_v7 }
0x1714   :  { %v1725_v45 = vmul.f32 %v2942_v36, %v1723_v34 }
0x1715   :  { %1756 = vrot.lane.b32.xlu1 %v1747_v44, %s3125_s26  ;;  %1754 = vrot.lane.b32.xlu0 %v1746_v41, %s3125_s26 }
0x1719   :  { %1760 = vrot.lane.b32.xlu1 %v1749_v42, %s3125_s26  ;;  %1758 = vrot.lane.b32.xlu0 %v1748_v43, %s3125_s26 }
0x1721   :  { %v1733_v46 = vpop.permute.xlu1 %1732 }
0x1722   :  { %v3776_v4 = vadd.f32 %v1733_v46, %v1725_v45 }
0x1724   :  { %2943 = vtanh.f32 %v3776_v4 }
0x172e   :  { %v2944_v52 = vpop.eup %2943 }
0x172f   :  { %1738 = vrot.lane.b32.xlu1 %v2944_v52, %s3123_s4 }
0x1787   :  { %v1757_v35 = vpop.permute.xlu1 %1756  ;;  %v1755_v3 = vpop.permute.xlu0 %1754 }
0x1788   :  { %v1769_v15 = vsel %vm55_vm0, %v1757_v35, 0.0  ;;  %v1766_v53 = vsel %vm55_vm0, %v1755_v3, 0.0 }
0x1789   :  { %1770 = vadd.xlane.f32.xlu1 %v1769_v15  ;;  %1767 = vadd.xlane.f32.xlu0 %v1766_v53 }
0x178b   :  { %v1761_v59 = vpop.permute.xlu1 %1760  ;;  %v1759_v11 = vpop.permute.xlu0 %1758 }
0x178c   :  { %v1772_v12 = vsel %vm55_vm0, %v1759_v11, 0.0  ;;  %v1775_v14 = vsel %vm55_vm0, %v1761_v59, 0.0 }
0x17a1   :  { %v1739_v63 = vpop.permute.xlu1 %1738 }
0x17a2   :  { %v1741_v1 = vmul.f32 %v2942_v36, %v1739_v63  ;;  %v3140_v63 = vmov 14  }
0x17a4   :  { %v1854_v56 = vrot.slane %v1741_v1, %v981_v22  ;;  %v3785_v2 = vsel %vm2404_vm7, %v2413_v40, %v1741_v1 }
0x17a6   :  { %v1856_v6 = vmul.f32 %v1854_v56, %v3350_v61  ;;  %v1855_v9 = vmul.f32 %v1854_v56, %v3361_v5  ;;  %v1858_v22 = vmul.f32 %v1854_v56, %v3354_v10  ;;  %v1857_v16 = vmul.f32 %v1854_v56, %v3365_v7 }
0x17a8   :  { %1865 = vrot.lane.b32.xlu1 %v1856_v6, %s3125_s26  ;;  %1863 = vrot.lane.b32.xlu0 %v1855_v9, %s3125_s26 }
0x17c7   :  { %1773 = vadd.xlane.f32.xlu0 %v1772_v12 }
0x17cc   :  { %1776 = vadd.xlane.f32.xlu1 %v1775_v14 }
0x17dd   :  { %1869 = vrot.lane.b32.xlu1 %v1858_v22, %s3125_s26  ;;  %1867 = vrot.lane.b32.xlu0 %v1857_v16, %s3125_s26 }
0x17e1   :  { %1802 = vrot.lane.b32.xlu0 %v3750_v38, %s3126_s27 }
0x1816   :  { %v1771_v20 = vpop.xlane.xlu1 %1770  ;;  %v1768_v0 = vpop.xlane.xlu0 %1767 }
0x1817   :  { %v1778_v32 = vadd.f32 %v1768_v0, %v3308_v51  ;;  %v1779_v31 = vadd.f32 %v1771_v20, %v3306_v48 }
0x1819   :  { %v2523_v37 = vmul.f32 -1.442695, %v1778_v32  ;;  %v2524_v33 = vmul.f32 -1.442695, %v1779_v31 }
0x181a   :  { %v1866_v23 = vpop.permute.xlu1 %1865  ;;  %v1864_v24 = vpop.permute.xlu0 %1863 }
0x181b   :  { %v1878_v25 = vsel %vm55_vm0, %v1866_v23, 0.0  ;;  %v1875_v26 = vsel %vm55_vm0, %v1864_v24, 0.0  ;;  %2945 = vpow2.f32 %v2523_v37 }
0x181c   :  { %1879 = vadd.xlane.f32.xlu0 %v1878_v25  ;;  %1876 = vadd.xlane.f32.xlu1 %v1875_v26  ;;  %2947 = vpow2.f32 %v2524_v33 }
0x1825   :  { %v2946_v38 = vpop.eup %2945 }
0x1826   :  { %v2948_v47 = vpop.eup %2947  ;;  %v1791_v27 = vadd.f32 1.0, %v2946_v38 }
0x1827   :  { %v1792_v8 = vadd.f32 1.0, %v2948_v47 }
0x1828   :  { %2949 = vrcp.f32 %v1791_v27 }
0x1832   :  { %v2950_v41 = vpop.eup %2949 }
0x1854   :  { %v1774_v29 = vpop.xlane.xlu0 %1773 }
0x1855   :  { %v1780_v36 = vadd.f32 %v1774_v29, %v3316_v62 }
0x1857   :  { %2951 = vtanh.f32 %v1780_v36 }
0x1858   :  { %v1868_v30 = vpop.permute.xlu0 %1867  ;;  %2953 = vrcp.f32 %v1792_v8 }
0x1859   :  { %v1881_v54 = vsel %vm55_vm0, %v1868_v30, 0.0  ;;  %v1777_v21 = vpop.xlane.xlu1 %1776 }
0x185a   :  { %v1781_v39 = vadd.f32 %v1777_v21, %v3313_v60  ;;  %1882 = vadd.xlane.f32.xlu0 %v1881_v54 }
0x185c   :  { %v2525_v58 = vmul.f32 -1.442695, %v1781_v39  ;;  %v1803_v43 = vpop.permute.xlu0 %1802 }
0x185d   :  { %v1870_v40 = vpop.permute.xlu1 %1869 }
0x185e   :  { %2955 = vpow2.f32 %v2525_v58  ;;  %v1884_v44 = vsel %vm55_vm0, %v1870_v40, 0.0 }
0x185f   :  { %1885 = vadd.xlane.f32.xlu1 %v1884_v44 }
0x1861   :  { %v2952_v42 = vpop.eup %2951 }
0x1862   :  { %v1806_v34 = vmul.f32 %v2952_v42, %v2950_v41  ;;  %v2954_v45 = vpop.eup %2953 }
0x1863   :  { %v1805_v46 = vmul.f32 %v2954_v45, %v1803_v43 }
0x1865   :  { %v1807_v52 = vadd.f32 %v1806_v34, %v1805_v46 }
0x1867   :  { %2957 = vtanh.f32 %v1807_v52 }
0x1868   :  { %v2956_v35 = vpop.eup %2955 }
0x1869   :  { %v1793_v3 = vadd.f32 1.0, %v2956_v35 }
0x186b   :  { %2959 = vrcp.f32 %v1793_v3 }
0x1870   :  { %1911 = vrot.lane.b32.xlu0 %v1807_v52, %s3126_s27 }
0x1871   :  { %v2958_v15 = vpop.eup %2957 }
0x1875   :  { %v2960_v53 = vpop.eup %2959 }
0x1876   :  { %v1809_v59 = vmul.f32 %v2960_v53, %v2958_v15 }
0x1878   :  { %1812 = vperm.xlu1 %2618, %v1809_v59  }
0x187c   :  { %2619 = vset.pattern.permute.xlu1 %v3140_v63 }
0x18a9   :  { %v1877_v1 = vpop.xlane.xlu1 %1876  ;;  %v1880_v6 = vpop.xlane.xlu0 %1879 }
0x18aa   :  { %v1887_v56 = vadd.f32 %v1877_v1, %v3308_v51  ;;  %v1888_v9 = vadd.f32 %v1880_v6, %v3306_v48 }
0x18ac   :  { %v2527_v11 = vmul.f32 -1.442695, %v1887_v56  ;;  %v2528_v12 = vmul.f32 -1.442695, %v1888_v9 }
0x18ae   :  { %2961 = vpow2.f32 %v2527_v11 }
0x18af   :  { %2963 = vpow2.f32 %v2528_v12 }
0x18b8   :  { %v2962_v14 = vpop.eup %2961 }
0x18b9   :  { %v2964_v22 = vpop.eup %2963  ;;  %v1900_v16 = vadd.f32 1.0, %v2962_v14 }
0x18ba   :  { %v1901_v20 = vadd.f32 1.0, %v2964_v22 }
0x18bb   :  { %2965 = vrcp.f32 %v1900_v16 }
0x18c5   :  { %v2966_v26 = vpop.eup %2965 }
0x18e7   :  { %v1883_v17 = vpop.xlane.xlu0 %1882 }
0x18e8   :  { %v1889_v0 = vadd.f32 %v1883_v17, %v3316_v62  ;;  %v1832_v17 = vrot.slane %v3776_v4, 7 }
0x18ea   :  { %2967 = vtanh.f32 %v1889_v0 }
0x18eb   :  { %2969 = vrcp.f32 %v1901_v20  ;;  %v1912_v31 = vpop.permute.xlu0 %1911 }
0x18ec   :  { %v1886_v23 = vpop.xlane.xlu1 %1885 }
0x18ed   :  { %v1890_v24 = vadd.f32 %v1886_v23, %v3313_v60 }
0x18ef   :  { %v2529_v25 = vmul.f32 -1.442695, %v1890_v24 }
0x18f1   :  { %2971 = vpow2.f32 %v2529_v25 }
0x18f4   :  { %v2968_v32 = vpop.eup %2967 }
0x18f5   :  { %v1915_v37 = vmul.f32 %v2968_v32, %v2966_v26  ;;  %v2970_v33 = vpop.eup %2969 }
0x18f6   :  { %v1914_v38 = vmul.f32 %v2970_v33, %v1912_v31 }
0x18f7   :  { %v1813_v47 = vpop.permute.xlu1 %1812 }
0x18f8   :  { %v1815_v27 = vmul.f32 %v3747_v50, %v1813_v47  ;;  %v3813_v29 = vadd.f32 %v1915_v37, %v1914_v38 }
0x18fa   :  { %v1816_v8 = vsel %vm286_vm2, %v1815_v27, 0.0  ;;  %2973 = vtanh.f32 %v3813_v29 }
0x18fb   :  { %v2972_v36 = vpop.eup %2971  ;;  %v1817_v30 = vrot.slane %v1816_v8, 4 }
0x18fc   :  { %v1902_v54 = vadd.f32 1.0, %v2972_v36 }
0x18fd   :  { %v1818_v21 = vadd.f32 %v1817_v30, %v1816_v8 }
0x18fe   :  { %2975 = vrcp.f32 %v1902_v54 }
0x18ff   :  { %v1819_v39 = vrot.slane %v1818_v21, 2 }
0x1901   :  { %v1820_v58 = vadd.f32 %v1819_v39, %v1818_v21 }
0x1903   :  { %v1821_v40 = vrot.slane %v1820_v58, 1 }
0x1904   :  { %v2974_v41 = vpop.eup %2973 }
0x1905   :  { %v1822_v44 = vadd.f32 %v1821_v40, %v1820_v58 }
0x1907   :  { %v1823_v42 = vadd.f32 %v1822_v44, %v3620_v18 }
0x1908   :  { %v2976_v43 = vpop.eup %2975 }
0x1909   :  { %2977 = vtanh.f32 %v1823_v42  ;;  %v1918_v34 = vmul.f32 %v2976_v43, %v2974_v41  ;;  %v2526_v46 = vmul.f32 -1.442695, %v1823_v42 }
0x190b   :  { %1921 = vperm.xlu1 %2619, %v1918_v34   ;;  %2979 = vpow2.f32 %v2526_v46 }
0x1913   :  { %v2978_v45 = vpop.eup %2977 }
0x1914   :  { %1836 = vrot.lane.b32.xlu0 %v2978_v45, %s3121_s20 }
0x1915   :  { %v2980_v52 = vpop.eup %2979 }
0x1916   :  { %v1827_v35 = vadd.f32 1.0, %v2980_v52 }
0x1918   :  { %2981 = vrcp.f32 %v1827_v35 }
0x1922   :  { %v2982_v3 = vpop.eup %2981 }
0x1923   :  { %v1834_v0 = vmul.f32 %v2982_v3, %v1832_v17 }
0x1986   :  { %v1837_v15 = vpop.permute.xlu0 %1836 }
0x1987   :  { %v1839_v53 = vmul.f32 %v2982_v3, %v1837_v15 }
0x1989   :  { %1841 = vrot.lane.b32.xlu1 %v1839_v53, %s3122_s25 }
0x198a   :  { %v1922_v59 = vpop.permute.xlu1 %1921 }
0x198b   :  { %v1924_v63 = vmul.f32 %v3747_v50, %v1922_v59 }
0x198d   :  { %v1925_v1 = vsel %vm286_vm2, %v1924_v63, 0.0  ;;  %v3141_v63 = vmov 15  }
0x198e   :  { %v1926_v56 = vrot.slane %v1925_v1, 4  ;;  %2620 = vset.pattern.permute.xlu1 %v3141_v63 }
0x1990   :  { %v1927_v6 = vadd.f32 %v1926_v56, %v1925_v1 }
0x1992   :  { %v1928_v9 = vrot.slane %v1927_v6, 2 }
0x1994   :  { %v1929_v11 = vadd.f32 %v1928_v9, %v1927_v6 }
0x1996   :  { %v1930_v12 = vrot.slane %v1929_v11, 1 }
0x1998   :  { %v1931_v14 = vadd.f32 %v1930_v12, %v1929_v11 }
0x199a   :  { %v1932_v22 = vadd.f32 %v1931_v14, %v3620_v18 }
0x199c   :  { %2983 = vtanh.f32 %v1932_v22  ;;  %v2530_v20 = vmul.f32 -1.442695, %v1932_v22 }
0x199e   :  { %2985 = vpow2.f32 %v2530_v20 }
0x19a6   :  { %v2984_v16 = vpop.eup %2983 }
0x19a7   :  { %1945 = vrot.lane.b32.xlu0 %v2984_v16, %s3121_s20 }
0x19a8   :  { %v2986_v25 = vpop.eup %2985 }
0x19a9   :  { %v1936_v32 = vadd.f32 1.0, %v2986_v25 }
0x19fb   :  { %v1842_v23 = vpop.permute.xlu1 %1841 }
0x19fc   :  { %v1844_v24 = vadd.f32 %v1842_v23, %v1834_v0 }
0x19fe   :  { %2987 = vtanh.f32 %v1844_v24 }
0x19ff   :  { %2989 = vrcp.f32 %v1936_v32 }
0x1a08   :  { %v2988_v26 = vpop.eup %2987 }
0x1a09   :  { %1847 = vrot.lane.b32.xlu0 %v2988_v26, %s3123_s4  ;;  %v2990_v31 = vpop.eup %2989 }
0x1a19   :  { %v1946_v18 = vpop.permute.xlu0 %1945 }
0x1a1a   :  { %v1948_v37 = vmul.f32 %v2990_v31, %v1946_v18 }
0x1a1c   :  { %1950 = vrot.lane.b32.xlu1 %v1948_v37, %s3122_s25 }
0x1a7b   :  { %v1848_v33 = vpop.permute.xlu0 %1847 }
0x1a7c   :  { %v1850_v38 = vmul.f32 %v2982_v3, %v1848_v33  ;;  %v46_v3 = vld [vmem:[%s3993_s0 + $0x10] sm:$0xf] }
0x1a7d   :  { %2565 = vmatmul.mubr.msk.f32.gmra.mrb[4].mxu0 %vm55_vm0, %v46_v3 }
0x1a7e   :  { %v1963_v4 = vrot.slane %v1850_v38, %v1090_v28  ;;  %v2415_v47 = vsel %vm2406_vm8, %v3785_v2, %v1850_v38  ;;  %v1941_v28 = vrot.slane %v1844_v24, 7 }
0x1a80   :  { %v1965_v27 = vmul.f32 %v1963_v4, %v3350_v61  ;;  %v1964_v8 = vmul.f32 %v1963_v4, %v3361_v5  ;;  %v1967_v36 = vmul.f32 %v1963_v4, %v3354_v10  ;;  %v1966_v30 = vmul.f32 %v1963_v4, %v3365_v7 }
0x1a81   :  { %v1943_v54 = vmul.f32 %v2990_v31, %v1941_v28 }
0x1a82   :  { %1974 = vrot.lane.b32.xlu1 %v1965_v27, %s3125_s26  ;;  %1972 = vrot.lane.b32.xlu0 %v1964_v8, %s3125_s26 }
0x1a86   :  { %1978 = vrot.lane.b32.xlu1 %v1967_v36, %s3125_s26  ;;  %1976 = vrot.lane.b32.xlu0 %v1966_v30, %s3125_s26 }
0x1a8e   :  { %v1951_v21 = vpop.permute.xlu1 %1950 }
0x1a8f   :  { %v3839_v2 = vadd.f32 %v1951_v21, %v1943_v54 }
0x1a91   :  { %2991 = vtanh.f32 %v3839_v2 }
0x1a9b   :  { %v2992_v39 = vpop.eup %2991 }
0x1a9c   :  { %1956 = vrot.lane.b32.xlu1 %v2992_v39, %s3123_s4 }
0x1af4   :  { %v1975_v58 = vpop.permute.xlu1 %1974  ;;  %v1973_v40 = vpop.permute.xlu0 %1972 }
0x1af5   :  { %v1987_v44 = vsel %vm55_vm0, %v1975_v58, 0.0  ;;  %v1984_v41 = vsel %vm55_vm0, %v1973_v40, 0.0 }
0x1af6   :  { %1988 = vadd.xlane.f32.xlu1 %v1987_v44  ;;  %1985 = vadd.xlane.f32.xlu0 %v1984_v41 }
0x1af8   :  { %v1979_v42 = vpop.permute.xlu1 %1978  ;;  %v1977_v15 = vpop.permute.xlu0 %1976 }
0x1af9   :  { %v1990_v57 = vsel %vm55_vm0, %v1977_v15, 0.0 }
0x1b0e   :  { %v1957_v43 = vpop.permute.xlu1 %1956 }
0x1b0f   :  { %v1959_v34 = vmul.f32 %v2990_v31, %v1957_v43 }
0x1b11   :  { %v2072_v45 = vrot.slane %v1959_v34, %v1199_v49  ;;  %v3848_v46 = vsel %vm2408_vm9, %v2415_v47, %v1959_v34  ;;  %v1993_v49 = vsel %vm55_vm0, %v1979_v42, 0.0  ;;  %v3142_v42 = vmov 16  }
0x1b13   :  { %v2074_v52 = vmul.f32 %v2072_v45, %v3350_v61  ;;  %v2073_v35 = vmul.f32 %v2072_v45, %v3361_v5  ;;  %v2076_v53 = vmul.f32 %v2072_v45, %v3354_v10  ;;  %v2075_v59 = vmul.f32 %v2072_v45, %v3365_v7 }
0x1b15   :  { %2083 = vrot.lane.b32.xlu1 %v2074_v52, %s3125_s26  ;;  %2081 = vrot.lane.b32.xlu0 %v2073_v35, %s3125_s26 }
0x1b34   :  { %1991 = vadd.xlane.f32.xlu0 %v1990_v57 }
0x1b39   :  { %1994 = vadd.xlane.f32.xlu1 %v1993_v49 }
0x1b4a   :  { %2087 = vrot.lane.b32.xlu1 %v2076_v53, %s3125_s26  ;;  %2085 = vrot.lane.b32.xlu0 %v2075_v59, %s3125_s26 }
0x1b4e   :  { %2020 = vrot.lane.b32.xlu0 %v3813_v29, %s3126_s27 }
0x1b50   :  { %v141_v44 = vpop.f32.mrb[4].mxu0 }
0x1b51   :  { %v2566_v41 = vpop.f32.mrb[5].mxu0 }
0x1b83   :  { %v1989_v1 = vpop.xlane.xlu1 %1988  ;;  %v1986_v56 = vpop.xlane.xlu0 %1985 }
0x1b84   :  { %v1996_v14 = vadd.f32 %v1986_v56, %v3308_v51  ;;  %v1997_v22 = vadd.f32 %v1989_v1, %v3306_v48 }
0x1b86   :  { %v2531_v16 = vmul.f32 -1.442695, %v1996_v14  ;;  %v2532_v17 = vmul.f32 -1.442695, %v1997_v22 }
0x1b87   :  { %v2084_v6 = vpop.permute.xlu1 %2083  ;;  %v2082_v9 = vpop.permute.xlu0 %2081 }
0x1b88   :  { %v2096_v11 = vsel %vm55_vm0, %v2084_v6, 0.0  ;;  %v2093_v12 = vsel %vm55_vm0, %v2082_v9, 0.0  ;;  %2993 = vpow2.f32 %v2531_v16 }
0x1b89   :  { %2097 = vadd.xlane.f32.xlu0 %v2096_v11  ;;  %2094 = vadd.xlane.f32.xlu1 %v2093_v12  ;;  %2995 = vpow2.f32 %v2532_v17 }
0x1b92   :  { %v2994_v29 = vpop.eup %2993 }
0x1b93   :  { %v2996_v20 = vpop.eup %2995  ;;  %v2009_v0 = vadd.f32 1.0, %v2994_v29 }
0x1b94   :  { %v2010_v24 = vadd.f32 1.0, %v2996_v20 }
0x1b95   :  { %2997 = vrcp.f32 %v2009_v0 }
0x1b9f   :  { %v2998_v4 = vpop.eup %2997 }
0x1bc1   :  { %v1992_v23 = vpop.xlane.xlu0 %1991 }
0x1bc2   :  { %v1998_v25 = vadd.f32 %v1992_v23, %v3316_v62 }
0x1bc4   :  { %2999 = vtanh.f32 %v1998_v25 }
0x1bc5   :  { %v2086_v26 = vpop.permute.xlu0 %2085  ;;  %3001 = vrcp.f32 %v2010_v24 }
0x1bc6   :  { %v2099_v32 = vsel %vm55_vm0, %v2086_v26, 0.0  ;;  %v1995_v31 = vpop.xlane.xlu1 %1994 }
0x1bc7   :  { %v1999_v18 = vadd.f32 %v1995_v31, %v3313_v60  ;;  %2100 = vadd.xlane.f32.xlu0 %v2099_v32 }
0x1bc9   :  { %v2533_v37 = vmul.f32 -1.442695, %v1999_v18  ;;  %v2021_v27 = vpop.permute.xlu0 %2020 }
0x1bca   :  { %v2088_v33 = vpop.permute.xlu1 %2087 }
0x1bcb   :  { %3003 = vpow2.f32 %v2533_v37  ;;  %v2102_v38 = vsel %vm55_vm0, %v2088_v33, 0.0  ;;  %v3092_v37 = vld [vmem:[%s4003_s10] ss:$0 sm:$0xff] }
0x1bcc   :  { %2103 = vadd.xlane.f32.xlu1 %v2102_v38  ;;  %v3887_v33 = vadd.f32 %v3092_v37, %v141_v44 }
0x1bce   :  { %v3000_v47 = vpop.eup %2999 }
0x1bcf   :  { %v2024_v8 = vmul.f32 %v3000_v47, %v2998_v4  ;;  %v3002_v36 = vpop.eup %3001 }
0x1bd0   :  { %v2023_v30 = vmul.f32 %v3002_v36, %v2021_v27 }
0x1bd2   :  { %v2025_v28 = vadd.f32 %v2024_v8, %v2023_v30 }
0x1bd4   :  { %3005 = vtanh.f32 %v2025_v28 }
0x1bd5   :  { %v3004_v54 = vpop.eup %3003 }
0x1bd6   :  { %v2011_v21 = vadd.f32 1.0, %v3004_v54 }
0x1bd8   :  { %3007 = vrcp.f32 %v2011_v21 }
0x1bdd   :  { %2129 = vrot.lane.b32.xlu0 %v2025_v28, %s3126_s27 }
0x1bde   :  { %v3006_v39 = vpop.eup %3005 }
0x1be2   :  { %v3008_v58 = vpop.eup %3007 }
0x1be3   :  { %v2027_v40 = vmul.f32 %v3008_v58, %v3006_v39 }
0x1be5   :  { %2030 = vperm.xlu1 %2620, %v2027_v40  }
0x1be9   :  { %2621 = vset.pattern.permute.xlu1 %v3142_v42 }
0x1c16   :  { %v2095_v43 = vpop.xlane.xlu1 %2094  ;;  %v2098_v45 = vpop.xlane.xlu0 %2097 }
0x1c17   :  { %v2105_v34 = vadd.f32 %v2095_v43, %v3308_v51  ;;  %v2106_v52 = vadd.f32 %v2098_v45, %v3306_v48 }
0x1c19   :  { %v2535_v35 = vmul.f32 -1.442695, %v2105_v34  ;;  %v2536_v3 = vmul.f32 -1.442695, %v2106_v52 }
0x1c1b   :  { %3009 = vpow2.f32 %v2535_v35 }
0x1c1c   :  { %3011 = vpow2.f32 %v2536_v3 }
0x1c25   :  { %v3010_v15 = vpop.eup %3009 }
0x1c26   :  { %v3012_v57 = vpop.eup %3011  ;;  %v2118_v49 = vadd.f32 1.0, %v3010_v15 }
0x1c27   :  { %v2119_v59 = vadd.f32 1.0, %v3012_v57  ;;  %v2050_v57 = vrot.slane %v3839_v2, 7 }
0x1c28   :  { %3013 = vrcp.f32 %v2118_v49 }
0x1c32   :  { %v3014_v9 = vpop.eup %3013 }
0x1c54   :  { %v2101_v53 = vpop.xlane.xlu0 %2100 }
0x1c55   :  { %v2107_v63 = vadd.f32 %v2101_v53, %v3316_v62 }
0x1c57   :  { %3015 = vtanh.f32 %v2107_v63 }
0x1c58   :  { %3017 = vrcp.f32 %v2119_v59  ;;  %v2130_v12 = vpop.permute.xlu0 %2129 }
0x1c59   :  { %v2104_v1 = vpop.xlane.xlu1 %2103 }
0x1c5a   :  { %v2108_v56 = vadd.f32 %v2104_v1, %v3313_v60 }
0x1c5c   :  { %v2537_v6 = vmul.f32 -1.442695, %v2108_v56 }
0x1c5e   :  { %3019 = vpow2.f32 %v2537_v6 }
0x1c61   :  { %v3016_v11 = vpop.eup %3015 }
0x1c62   :  { %v2133_v14 = vmul.f32 %v3016_v11, %v3014_v9  ;;  %v3018_v22 = vpop.eup %3017 }
0x1c63   :  { %v2132_v16 = vmul.f32 %v3018_v22, %v2130_v12 }
0x1c64   :  { %v2031_v17 = vpop.permute.xlu1 %2030 }
0x1c65   :  { %v2033_v29 = vmul.f32 %v3747_v50, %v2031_v17  ;;  %v3880_v20 = vadd.f32 %v2133_v14, %v2132_v16 }
0x1c67   :  { %v2034_v0 = vsel %vm286_vm2, %v2033_v29, 0.0  ;;  %3021 = vtanh.f32 %v3880_v20 }
0x1c68   :  { %v3020_v23 = vpop.eup %3019  ;;  %v2035_v24 = vrot.slane %v2034_v0, 4 }
0x1c69   :  { %v2120_v25 = vadd.f32 1.0, %v3020_v23 }
0x1c6a   :  { %v2036_v26 = vadd.f32 %v2035_v24, %v2034_v0 }
0x1c6b   :  { %3023 = vrcp.f32 %v2120_v25 }
0x1c6c   :  { %v2037_v32 = vrot.slane %v2036_v26, 2 }
0x1c6e   :  { %v2038_v31 = vadd.f32 %v2037_v32, %v2036_v26 }
0x1c70   :  { %v2039_v18 = vrot.slane %v2038_v31, 1 }
0x1c71   :  { %v3022_v4 = vpop.eup %3021 }
0x1c72   :  { %v2040_v38 = vadd.f32 %v2039_v18, %v2038_v31 }
0x1c74   :  { %v2041_v47 = vadd.f32 %v2040_v38, %v3887_v33 }
0x1c75   :  { %v3024_v27 = vpop.eup %3023 }
0x1c76   :  { %3025 = vtanh.f32 %v2041_v47  ;;  %v2136_v8 = vmul.f32 %v3024_v27, %v3022_v4  ;;  %v2534_v30 = vmul.f32 -1.442695, %v2041_v47 }
0x1c78   :  { %2139 = vperm.xlu1 %2621, %v2136_v8   ;;  %3027 = vpow2.f32 %v2534_v30 }
0x1c80   :  { %v3026_v36 = vpop.eup %3025 }
0x1c81   :  { %2054 = vrot.lane.b32.xlu0 %v3026_v36, %s3121_s20 }
0x1c82   :  { %v3028_v28 = vpop.eup %3027 }
0x1c83   :  { %v2045_v54 = vadd.f32 1.0, %v3028_v28 }
0x1c85   :  { %3029 = vrcp.f32 %v2045_v54 }
0x1c8f   :  { %v3030_v21 = vpop.eup %3029 }
0x1c90   :  { %v2052_v53 = vmul.f32 %v3030_v21, %v2050_v57 }
0x1cf3   :  { %v2055_v39 = vpop.permute.xlu0 %2054 }
0x1cf4   :  { %v2057_v58 = vmul.f32 %v3030_v21, %v2055_v39 }
0x1cf6   :  { %2059 = vrot.lane.b32.xlu1 %v2057_v58, %s3122_s25 }
0x1cf7   :  { %v2140_v40 = vpop.permute.xlu1 %2139 }
0x1cf8   :  { %v2142_v44 = vmul.f32 %v3747_v50, %v2140_v40 }
0x1cfa   :  { %v2143_v41 = vsel %vm286_vm2, %v2142_v44, 0.0 }
0x1cfb   :  { %v2144_v42 = vrot.slane %v2143_v41, 4 }
0x1cfd   :  { %v2145_v43 = vadd.f32 %v2144_v42, %v2143_v41  ;;  %v3143_v41 = vmov 17  }
0x1cfe   :  { %2622 = vset.pattern.permute.xlu1 %v3143_v41 }
0x1cff   :  { %v2146_v34 = vrot.slane %v2145_v43, 2 }
0x1d01   :  { %v2147_v45 = vadd.f32 %v2146_v34, %v2145_v43 }
0x1d03   :  { %v2148_v52 = vrot.slane %v2147_v45, 1 }
0x1d05   :  { %v2149_v35 = vadd.f32 %v2148_v52, %v2147_v45 }
0x1d07   :  { %v2150_v3 = vadd.f32 %v2149_v35, %v3887_v33 }
0x1d09   :  { %3031 = vtanh.f32 %v2150_v3  ;;  %v2538_v49 = vmul.f32 -1.442695, %v2150_v3 }
0x1d0b   :  { %3033 = vpow2.f32 %v2538_v49 }
0x1d13   :  { %v3032_v15 = vpop.eup %3031 }
0x1d14   :  { %2163 = vrot.lane.b32.xlu0 %v3032_v15, %s3121_s20 }
0x1d15   :  { %v3034_v63 = vpop.eup %3033 }
0x1d16   :  { %v2154_v56 = vadd.f32 1.0, %v3034_v63 }
0x1d68   :  { %v2060_v59 = vpop.permute.xlu1 %2059 }
0x1d69   :  { %v2062_v50 = vadd.f32 %v2060_v59, %v2052_v53  ;;  %v3144_v53 = vmov 18  }
0x1d6a   :  { %2624 = vset.pattern.permute.xlu0 %v3144_v53 }
0x1d6b   :  { %3035 = vtanh.f32 %v2062_v50  ;;  %v2159_v17 = vrot.slane %v2062_v50, 7 }
0x1d6c   :  { %3037 = vrcp.f32 %v2154_v56 }
0x1d75   :  { %v3036_v1 = vpop.eup %3035 }
0x1d76   :  { %2065 = vrot.lane.b32.xlu0 %v3036_v1, %s3123_s4  ;;  %v3038_v6 = vpop.eup %3037 }
0x1d77   :  { %v2161_v29 = vmul.f32 %v3038_v6, %v2159_v17 }
0x1d86   :  { %v2164_v9 = vpop.permute.xlu0 %2163 }
0x1d87   :  { %v2166_v11 = vmul.f32 %v3038_v6, %v2164_v9 }
0x1d89   :  { %2168 = vrot.lane.b32.xlu1 %v2166_v11, %s3122_s25 }
0x1de8   :  { %v2066_v12 = vpop.permute.xlu0 %2065 }
0x1de9   :  { %v3899_v14 = vmul.f32 %v3030_v21, %v2066_v12 }
0x1deb   :  { %v2181_v2 = vrot.slane %v3899_v14, %v3344_v13 }
0x1ded   :  { %v2182_v22 = vmul.f32 %v2181_v2, %v3361_v5  ;;  %v2184_v16 = vmul.f32 %v2181_v2, %v3365_v7  ;;  %v2183_v13 = vmul.f32 %v2181_v2, %v3350_v61  ;;  %v2185_v47 = vmul.f32 %v2181_v2, %v3354_v10 }
0x1def   :  { %2190 = vrot.lane.b32.xlu0 %v2182_v22, %s3125_s26 }
0x1df3   :  { %2194 = vrot.lane.b32.xlu0 %v2184_v16, %s3125_s26 }
0x1dfb   :  { %v2169_v0 = vpop.permute.xlu1 %2168 }
0x1dfc   :  { %v3907_v23 = vadd.f32 %v2169_v0, %v2161_v29 }
0x1dfe   :  { %3039 = vtanh.f32 %v3907_v23 }
0x1e08   :  { %v3040_v24 = vpop.eup %3039 }
0x1e09   :  { %2174 = vrot.lane.b32.xlu1 %v3040_v24, %s3123_s4 }
0x1e0d   :  { %2192 = vrot.lane.b32.xlu1 %v2183_v13, %s3125_s26 }
0x1e61   :  { %v2191_v25 = vpop.permute.xlu0 %2190 }
0x1e62   :  { %v2202_v26 = vsel %vm55_vm0, %v2191_v25, 0.0 }
0x1e63   :  { %2203 = vadd.xlane.f32.xlu1 %v2202_v26 }
0x1e7b   :  { %v2175_v32 = vpop.permute.xlu1 %2174 }
0x1e7c   :  { %v3914_v31 = vmul.f32 %v3038_v6, %v2175_v32 }
0x1e7e   :  { %v2290_v18 = vrot.slane %v3914_v31, %v3373_v19  ;;  %v2195_v19 = vpop.permute.xlu0 %2194 }
0x1e7f   :  { %v2193_v37 = vpop.permute.xlu1 %2192  ;;  %v2208_v36 = vsel %vm55_vm0, %v2195_v19, 0.0 }
0x1e80   :  { %v2205_v38 = vsel %vm55_vm0, %v2193_v37, 0.0  ;;  %v2292_v4 = vmul.f32 %v2290_v18, %v3350_v61  ;;  %v2293_v27 = vmul.f32 %v2290_v18, %v3365_v7  ;;  %v2294_v8 = vmul.f32 %v2290_v18, %v3354_v10 }
0x1e81   :  { %2206 = vadd.xlane.f32.xlu0 %v2205_v38  ;;  %v2291_v61 = vmul.f32 %v2290_v18, %v3361_v5 }
0x1e82   :  { %2301 = vrot.lane.b32.xlu1 %v2292_v4, %s3125_s26 }
0x1e86   :  { %2196 = vrot.lane.b32.xlu1 %v2185_v47, %s3125_s26 }
0x1e8a   :  { %2303 = vrot.lane.b32.xlu1 %v2293_v27, %s3125_s26 }
0x1e8e   :  { %2305 = vrot.lane.b32.xlu1 %v2294_v8, %s3125_s26 }
0x1e92   :  { %2238 = vrot.lane.b32.xlu1 %v3880_v20, %s3126_s27 }
0x1e97   :  { %2299 = vrot.lane.b32.xlu0 %v2291_v61, %s3125_s26 }
0x1eb6   :  { %2209 = vadd.xlane.f32.xlu0 %v2208_v36 }
0x1ef0   :  { %v2204_v30 = vpop.xlane.xlu1 %2203 }
0x1ef1   :  { %v2214_v43 = vadd.f32 %v2204_v30, %v3308_v51 }
0x1ef3   :  { %v2539_v45 = vmul.f32 -1.442695, %v2214_v43 }
0x1ef4   :  { %v2302_v28 = vpop.permute.xlu1 %2301 }
0x1ef5   :  { %v2314_v7 = vsel %vm55_vm0, %v2302_v28, 0.0 }
0x1ef6   :  { %2315 = vadd.xlane.f32.xlu0 %v2314_v7 }
0x1ef8   :  { %v2197_v54 = vpop.permute.xlu1 %2196 }
0x1ef9   :  { %v2211_v10 = vsel %vm55_vm0, %v2197_v54, 0.0 }
0x1efa   :  { %2212 = vadd.xlane.f32.xlu0 %v2211_v10 }
0x1efc   :  { %v2304_v21 = vpop.permute.xlu1 %2303 }
0x1efd   :  { %v2317_v20 = vsel %vm55_vm0, %v2304_v21, 0.0 }
0x1efe   :  { %2318 = vadd.xlane.f32.xlu0 %v2317_v20 }
0x1f00   :  { %v2306_v5 = vpop.permute.xlu1 %2305 }
0x1f01   :  { %v2320_v39 = vsel %vm55_vm0, %v2306_v5, 0.0 }
0x1f02   :  { %2321 = vadd.xlane.f32.xlu0 %v2320_v39 }
0x1f04   :  { %v2239_v1 = vpop.permute.xlu1 %2238 }
0x1f0e   :  { %v2207_v58 = vpop.xlane.xlu0 %2206 }
0x1f0f   :  { %v2215_v42 = vadd.f32 %v2207_v58, %v3306_v48  ;;  %v3093_v58 = vld [vmem:[%s4001_s8] sm:$0xff]  ;;  %s3145_s8 = smov 120  }
0x1f11   :  { %v2540_v34 = vmul.f32 -1.442695, %v2215_v42 }
0x1f12   :  { %v2300_v40 = vpop.permute.xlu0 %2299 }
0x1f13   :  { %v2311_v44 = vsel %vm55_vm0, %v2300_v40, 0.0  ;;  %3041 = vpow2.f32 %v2540_v34 }
0x1f14   :  { %2312 = vadd.xlane.f32.xlu1 %v2311_v44  ;;  %3043 = vpow2.f32 %v2539_v45 }
0x1f1d   :  { %v3042_v52 = vpop.eup %3041 }
0x1f1e   :  { %v3044_v35 = vpop.eup %3043  ;;  %v2228_v3 = vadd.f32 1.0, %v3042_v52 }
0x1f1f   :  { %v2227_v15 = vadd.f32 1.0, %v3044_v35 }
0x1f20   :  { %3045 = vrcp.f32 %v2228_v3 }
0x1f21   :  { %3047 = vrcp.f32 %v2227_v15 }
0x1f2a   :  { %v3046_v59 = vpop.eup %3045 }
0x1f2b   :  { %v3048_v50 = vpop.eup %3047  ;;  %v2241_v56 = vmul.f32 %v3046_v59, %v2239_v1 }
0x1f43   :  { %v2210_v57 = vpop.xlane.xlu0 %2209 }
0x1f44   :  { %v2216_v49 = vadd.f32 %v2210_v57, %v3316_v62 }
0x1f46   :  { %3049 = vtanh.f32 %v2216_v49 }
0x1f50   :  { %v3050_v63 = vpop.eup %3049 }
0x1f51   :  { %v2242_v6 = vmul.f32 %v3050_v63, %v3048_v50 }
0x1f53   :  { %v2243_v9 = vadd.f32 %v2242_v6, %v2241_v56 }
0x1f55   :  { %2347 = vrot.lane.b32.xlu0 %v2243_v9, %s3126_s27 }
0x1f83   :  { %v2316_v11 = vpop.xlane.xlu0 %2315 }
0x1f84   :  { %v2324_v25 = vadd.f32 %v2316_v11, %v3306_v48 }
0x1f86   :  { %v2544_v18 = vmul.f32 -1.442695, %v2324_v25 }
0x1f87   :  { %v2213_v12 = vpop.xlane.xlu0 %2212 }
0x1f88   :  { %v2217_v2 = vadd.f32 %v2213_v12, %v3313_v60 }
0x1f8a   :  { %v2541_v22 = vmul.f32 -1.442695, %v2217_v2 }
0x1f8b   :  { %v2319_v37 = vpop.xlane.xlu0 %2318 }
0x1f8c   :  { %3051 = vpow2.f32 %v2541_v22 }
0x1f8d   :  { %3053 = vtanh.f32 %v2243_v9 }
0x1f8f   :  { %v2322_v38 = vpop.xlane.xlu0 %2321 }
0x1f90   :  { %v2326_v4 = vadd.f32 %v2322_v38, %v3313_v60 }
0x1f92   :  { %v2545_v8 = vmul.f32 -1.442695, %v2326_v4 }
0x1f96   :  { %v3052_v16 = vpop.eup %3051 }
0x1f97   :  { %v2229_v17 = vadd.f32 1.0, %v3052_v16  ;;  %v3054_v0 = vpop.eup %3053 }
0x1f99   :  { %3055 = vrcp.f32 %v2229_v17 }
0x1fa1   :  { %v2313_v29 = vpop.xlane.xlu1 %2312 }
0x1fa2   :  { %v2323_v24 = vadd.f32 %v2313_v29, %v3308_v51  ;;  %v2325_v51 = vadd.f32 %v2319_v37, %v3316_v62 }
0x1fa3   :  { %v3056_v13 = vpop.eup %3055 }
0x1fa4   :  { %v2245_v26 = vmul.f32 %v3056_v13, %v3054_v0  ;;  %v2543_v32 = vmul.f32 -1.442695, %v2323_v24 }
0x1fa6   :  { %2248 = vperm.xlu1 %2622, %v2245_v26   ;;  %3057 = vpow2.f32 %v2543_v32  ;;  %v2268_v26 = vrot.slane %v3907_v23, 7 }
0x1fa7   :  { %3059 = vpow2.f32 %v2544_v18 }
0x1fa8   :  { %3061 = vpow2.f32 %v2545_v8 }
0x1faa   :  { %2623 = vset.pattern.permute.xlu1 %v3144_v53 }
0x1fb0   :  { %v3058_v47 = vpop.eup %3057 }
0x1fb1   :  { %v3060_v27 = vpop.eup %3059  ;;  %v2336_v61 = vadd.f32 1.0, %v3058_v47 }
0x1fb2   :  { %v2337_v19 = vadd.f32 1.0, %v3060_v27  ;;  %v3062_v48 = vpop.eup %3061 }
0x1fb3   :  { %3063 = vrcp.f32 %v2336_v61  ;;  %v2338_v7 = vadd.f32 1.0, %v3062_v48 }
0x1fb4   :  { %3065 = vtanh.f32 %v2325_v51 }
0x1fb5   :  { %3067 = vrcp.f32 %v2337_v19 }
0x1fb6   :  { %3069 = vrcp.f32 %v2338_v7 }
0x1fbd   :  { %v3064_v36 = vpop.eup %3063 }
0x1fbe   :  { %v3066_v30 = vpop.eup %3065 }
0x1fbf   :  { %v3068_v28 = vpop.eup %3067  ;;  %v2351_v10 = vmul.f32 %v3066_v30, %v3064_v36 }
0x1fc0   :  { %v3070_v20 = vpop.eup %3069 }
0x1fc7   :  { %v2348_v54 = vpop.permute.xlu0 %2347 }
0x1fc8   :  { %v2350_v21 = vmul.f32 %v3068_v28, %v2348_v54 }
0x1fca   :  { %v2352_v60 = vadd.f32 %v2351_v10, %v2350_v21 }
0x1fcc   :  { %3071 = vtanh.f32 %v2352_v60 }
0x1fd6   :  { %v3072_v5 = vpop.eup %3071 }
0x1fd7   :  { %v2354_v39 = vmul.f32 %v3072_v5, %v3070_v20 }
0x1fd9   :  { %2357 = vperm.xlu1 %2623, %v2354_v39  }
0x2025   :  { %v2249_v62 = vpop.permute.xlu1 %2248 }
0x2026   :  { %v2251_v40 = vmul.f32 %v3093_v58, %v2249_v62 }
0x2028   :  { %v2252_v44 = vsel %vm286_vm2, %v2251_v40, 0.0 }
0x2029   :  { %v2253_v41 = vrot.slane %v2252_v44, 4 }
0x202b   :  { %v2254_v42 = vadd.f32 %v2253_v41, %v2252_v44 }
0x202d   :  { %v2255_v43 = vrot.slane %v2254_v42, 2 }
0x202f   :  { %v2256_v34 = vadd.f32 %v2255_v43, %v2254_v42 }
0x2031   :  { %v2257_v45 = vrot.slane %v2256_v34, 1 }
0x2033   :  { %v2258_v52 = vadd.f32 %v2257_v45, %v2256_v34 }
0x2035   :  { %v2259_v35 = vadd.f32 %v2258_v52, %v3887_v33 }
0x2037   :  { %3073 = vtanh.f32 %v2259_v35  ;;  %v2542_v11 = vmul.f32 -1.442695, %v2259_v35 }
0x2041   :  { %v3074_v3 = vpop.eup %3073 }
0x2042   :  { %2272 = vrot.lane.b32.xlu0 %v3074_v3, %s3121_s20 }
0x2058   :  { %v2358_v15 = vpop.permute.xlu1 %2357 }
0x2059   :  { %v2360_v57 = vmul.f32 %v3093_v58, %v2358_v15 }
0x205b   :  { %v2361_v49 = vsel %vm286_vm2, %v2360_v57, 0.0 }
0x205c   :  { %v2362_v53 = vrot.slane %v2361_v49, 4 }
0x205e   :  { %v2363_v59 = vadd.f32 %v2362_v53, %v2361_v49 }
0x2060   :  { %v2364_v50 = vrot.slane %v2363_v59, 2 }
0x2062   :  { %v2365_v63 = vadd.f32 %v2364_v50, %v2363_v59 }
0x2064   :  { %v2366_v1 = vrot.slane %v2365_v63, 1 }
0x2066   :  { %v2367_v56 = vadd.f32 %v2366_v1, %v2365_v63 }
0x2068   :  { %v2368_v6 = vadd.f32 %v2367_v56, %v3887_v33 }
0x206a   :  { %3075 = vtanh.f32 %v2368_v6  ;;  %v2546_v29 = vmul.f32 -1.442695, %v2368_v6 }
0x206b   :  { %3077 = vpow2.f32 %v2542_v11 }
0x2074   :  { %v3076_v9 = vpop.eup %3075 }
0x2075   :  { %2381 = vrot.lane.b32.xlu1 %v3076_v9, %s3121_s20  ;;  %v3078_v12 = vpop.eup %3077 }
0x2076   :  { %v2263_v2 = vadd.f32 1.0, %v3078_v12 }
0x2078   :  { %3079 = vrcp.f32 %v2263_v2 }
0x2079   :  { %3081 = vpow2.f32 %v2546_v29 }
0x2082   :  { %v3080_v22 = vpop.eup %3079 }
0x2083   :  { %v3082_v0 = vpop.eup %3081  ;;  %v2270_v32 = vmul.f32 %v3080_v22, %v2268_v26 }
0x2084   :  { %v2372_v24 = vadd.f32 1.0, %v3082_v0 }
0x2086   :  { %3083 = vrcp.f32 %v2372_v24 }
0x2090   :  { %v3084_v33 = vpop.eup %3083 }
0x20b4   :  { %v2273_v16 = vpop.permute.xlu0 %2272 }
0x20b5   :  { %v2275_v17 = vmul.f32 %v3080_v22, %v2273_v16 }
0x20b7   :  { %2277 = vrot.lane.b32.xlu0 %v2275_v17, %s3122_s25 }
0x20e7   :  { %v2382_v13 = vpop.permute.xlu1 %2381 }
0x20e8   :  { %v2384_v25 = vmul.f32 %v3084_v33, %v2382_v13 }
0x20ea   :  { %2386 = vrot.lane.b32.xlu1 %v2384_v25, %s3122_s25 }
0x2129   :  { %v2278_v18 = vpop.permute.xlu0 %2277 }
0x212a   :  { %v2280_v37 = vadd.f32 %v2278_v18, %v2270_v32 }
0x212c   :  { %3085 = vtanh.f32 %v2280_v37  ;;  %v2377_v4 = vrot.slane %v2280_v37, 7 }
0x212e   :  { %v2379_v47 = vmul.f32 %v3084_v33, %v2377_v4 }
0x2136   :  { %v3086_v38 = vpop.eup %3085 }
0x2137   :  { %2283 = vrot.lane.b32.xlu0 %v3086_v38, %s3123_s4 }
0x215c   :  { %v2387_v27 = vpop.permute.xlu1 %2386 }
0x215d   :  { %v2389_v8 = vadd.f32 %v2387_v27, %v2379_v47 }
0x215f   :  { %3087 = vtanh.f32 %v2389_v8  ;;  %2437 = vrot.lane.b32.xlu0 %v2389_v8, %s3145_s8 }
0x2163   :  { %2425 = vrot.lane.b32.xlu0 %v3848_v46, %s3125_s26 }
0x2169   :  { %v3088_v61 = vpop.eup %3087 }
0x216a   :  { %2392 = vrot.lane.b32.xlu1 %v3088_v61, %s3123_s4 }
0x216e   :  { %2423 = vrot.lane.b32.xlu1 %v3579_v55, %s3125_s26 }
0x21a9   :  { %v2284_v23 = vpop.permute.xlu0 %2283 }
0x21d1   :  { %v2438_v51 = vpop.permute.xlu0 %2437 }
0x21d2   :  { %2441 = vst.msk [vmem:[#allocation2 - $0x3] sm:$0x8] %vm2440_vm10, %v2438_v51 }
0x21d3   :  { %3105 = shalt.err (!%p3102_p4)
}
0x21d4   :  { %s3106_s22 = scalar_lea.hbm %s4006_s13, 16 }
0x21d5   :  { %p3107_p5 = scmp.ne.s32.totalorder %s4006_s13, %s3106_s22  ;;  %p3110_p6 = scmp.lt.u32.totalorder %s3106_s22, %s4006_s13 }
0x21d7   :  { %p3112_p7 = pnand %p3110_p6, %p3107_p5 }
0x21d9   :  { %3115 = shalt.err (!%p3112_p7)
}
0x21da   :  { %2453 = dma.vmem_to_hbm [thread:$0]  %s2451_s19, 16, %s4006_s13, [#allocation3]   ;;  %v2426_v55 = vpop.permute.xlu0 %2425  ;;  %v2286_v46 = vmul.f32 %v3080_v22, %v2284_v23  ;;  %v2417_v48 = vsel %vm2396_vm3, %v3899_v14, %v3914_v31  ;;  %vm2434_vm11 = vcmask 60416  }
0x21db   :  { %2433 = vst.msk [vmem:[%s4005_s12 + $0x8] sm:$0xff] %vm55_vm0, %v2426_v55 }
0x21dc   :  { %v2393_v19 = vpop.permute.xlu1 %2392  ;;  %v2418_v30 = vsel %vm2398_vm4, %v2417_v48, %v2286_v46 }
0x21dd   :  { %v2395_v36 = vmul.f32 %v3084_v33, %v2393_v19 }
0x21df   :  { %v2419_v28 = vsel %vm2400_vm5, %v2418_v30, %v2395_v36 }
0x21e0   :  { %v2424_v7 = vpop.permute.xlu1 %2423  ;;  %2427 = vrot.lane.b32.xlu1 %v2419_v28, %s3125_s26 }
0x21e1   :  { %2432 = vst.msk [vmem:[%s4005_s12] sm:$0xff] %vm55_vm0, %v2424_v7 }
0x2252   :  { %v2428_v54 = vpop.permute.xlu1 %2427 }
0x2253   :  { %2435 = vst.msk [vmem:[%s4005_s12 + $0x10] sm:$0xf] %vm2434_vm11, %v2428_v54 }
0x2254   :  { %3116 = dma.done.wait [#allocation3], 16  }
0x2255   :  { %3117 = vsyncadd [#allocation3], 4294967280 }
0x2256   :  { %2459 = vsyncpa [#allocation3], 1 }

</bundles_post_ra>
